<compile_context>
chip_gen: v7x
topology: tpu7x:2x2x1
jax: 0.10.0
libtpu: 0.0.40
codegen_flags: <defaults>
</compile_context>

<pallas_src>
import functools

import numpy as np
import jax
import jax.numpy as jnp
from jax.experimental import pallas as pl
from jax.experimental.pallas import tpu as pltpu

EPS = 1e-5


def _round_up(x, m):
    return ((x + m - 1) // m) * m


def _pick_row_strip(H, W, target_rows):
    """Largest divisor th of H with th*W <= target_rows (always >= 1)."""
    best = 1
    for t in range(1, H + 1):
        if H % t == 0 and t * W <= target_rows:
            best = t
    return best


def _vmem_limit_bytes():
    """min(96 MiB, 3/4 of physical VMEM): ~96 MiB on v5e/v6e, ~48 MiB on v7x."""
    cap = None
    try:
        cap = getattr(pltpu.get_tpu_info(), "vmem_capacity_bytes", None)
    except Exception:
        cap = None
    if not cap or cap <= 0:
        cap = 64 * 1024 * 1024            # conservative (v7x-sized) fallback
    return int(min(96 * 1024 * 1024, (cap * 3) // 4))


# --------------------------------------------------------------------------
# Kernels
# --------------------------------------------------------------------------
def _conv1x1_stats_kernel(x_ref, w_ref, y_ref, st_ref):
    """1x1 conv (row-strip matmul) + per-step BN partial stats.

    x_ref: (1, th, W, Cp) f32   w_ref: (Cp, Pp) compute-dtype
    y_ref: (1, th, W, Pp) interm-dtype   st_ref: (1, 2, Pp) f32
    """
    _, th, W, Cp = x_ref.shape
    Pp = w_ref.shape[1]
    x2 = x_ref[0].reshape(th * W, Cp)
    y = jnp.dot(x2.astype(w_ref.dtype), w_ref[...],
                preferred_element_type=jnp.float32)
    st_ref[0:1, 0:1, :] = jnp.sum(y, axis=0, keepdims=True)[None]
    st_ref[0:1, 1:2, :] = jnp.sum(y * y, axis=0, keepdims=True)[None]
    y_ref[...] = y.reshape(1, th, W, Pp).astype(y_ref.dtype)


def _bn_relu_conv1x1_stats_kernel(x_ref, sc_ref, sh_ref, w_ref, y_ref, st_ref):
    """BN(scale/shift)+ReLU of the previous layer (f32 VPU math), 1x1 conv + stats."""
    _, th, W, Pp = x_ref.shape
    Cp = w_ref.shape[1]
    h = jnp.maximum(x_ref[0].astype(jnp.float32) * sc_ref[...] + sh_ref[...], 0.0)
    y = jnp.dot(h.reshape(th * W, Pp).astype(w_ref.dtype), w_ref[...],
                preferred_element_type=jnp.float32)
    st_ref[0:1, 0:1, :] = jnp.sum(y, axis=0, keepdims=True)[None]
    st_ref[0:1, 1:2, :] = jnp.sum(y * y, axis=0, keepdims=True)[None]
    y_ref[...] = y.reshape(1, th, W, Cp).astype(y_ref.dtype)


def _bn_relu_conv3x3_stats_kernel(y1_ref, sc_ref, sh_ref, w2_ref,
                                  y2_ref, st_ref, pad_ref, acc_ref):
    """BN1+ReLU, 3x3 conv as NINE accumulating tap matmuls, + BN2 partial stats.

    One image per grid step.  pad_ref is a (H+2, W+2, Pp) halo scratch in the
    MXU input dtype; acc_ref is an (H*W, Pp) f32 accumulator, so live VMEM per
    step stays O(H*W*Pp) instead of the 9x-wide im2col operand.
    TODO(synk): for v7x 2-TC balance at tiny N, split this grid into
    (N, H-strips) with a 1-row halo per strip (pl.Element offsets).
    """
    _, H, W, Pp = y1_ref.shape
    h = jnp.maximum(y1_ref[0].astype(jnp.float32) * sc_ref[...] + sh_ref[...],
                    0.0)                                           # (H, W, Pp) f32

    # Zero only the 1-pixel halo (interior is fully overwritten every step).
    zr = jnp.zeros((1, W + 2, Pp), pad_ref.dtype)
    zc = jnp.zeros((H, 1, Pp), pad_ref.dtype)
    pad_ref[0:1, :, :] = zr
    pad_ref[H + 1:H + 2, :, :] = zr
    pad_ref[1:H + 1, 0:1, :] = zc
    pad_ref[1:H + 1, W + 1:W + 2, :] = zc
    pad_ref[1:H + 1, 1:W + 1, :] = h.astype(pad_ref.dtype)

    # 9 accumulating matmuls (tap-major weight rows), f32 accumulation in VMEM.
    for k in range(9):
        dy, dx = k // 3, k % 3
        tap = pad_ref[dy:dy + H, dx:dx + W, :].reshape(H * W, Pp)
        contrib = jnp.dot(tap, w2_ref[k * Pp:(k + 1) * Pp, :],
                          preferred_element_type=jnp.float32)
        if k == 0:
            acc_ref[...] = contrib
        else:
            acc_ref[...] += contrib

    y2 = acc_ref[...]
    st_ref[0:1, 0:1, :] = jnp.sum(y2, axis=0, keepdims=True)[None]
    st_ref[0:1, 1:2, :] = jnp.sum(y2 * y2, axis=0, keepdims=True)[None]
    y2_ref[...] = y2.reshape(1, H, W, Pp).astype(y2_ref.dtype)


def _bn_add_relu_kernel(y_ref, res_ref, sc_ref, sh_ref, o_ref):
    """BN3 + identity residual (re-read here, not held live) + ReLU, f32 math."""
    o_ref[...] = jnp.maximum(
        y_ref[...].astype(jnp.float32) * sc_ref[...] + sh_ref[...]
        + res_ref[...], 0.0).astype(o_ref.dtype)


# --------------------------------------------------------------------------
# Host-side glue
# --------------------------------------------------------------------------
def _finalize_bn(stats, count, gamma_p, beta_p):
    """Reduce per-step [sum, sumsq] partials -> BN scale/shift (all f32).

    One-pass variance (E[x^2] - mean^2); per-step partials give a pairwise-ish
    summation.  TODO(synk): if BN drift is observed at production batch sizes,
    switch to a shifted / two-pass formulation.
    """
    s = jnp.sum(stats[:, 0, :], axis=0)
    sq = jnp.sum(stats[:, 1, :], axis=0)
    mean = s / count
    var = jnp.maximum(sq / count - mean * mean, 0.0)   # biased, like PyTorch fwd
    scale = gamma_p * jax.lax.rsqrt(var + EPS)
    shift = beta_p - mean * scale
    return scale[None, :], shift[None, :]


def bottleneck_forward_nhwc(x_nhwc, weights, *, row_tile=512,
                            compute_dtype=jnp.bfloat16,
                            interm_dtype=jnp.bfloat16):
    """x_nhwc: (N, H, W, Cin) f32.  weights in PyTorch layout."""
    (W1, g1, b1, W2, g2, b2, W3, g3, b3) = weights
    f32 = jnp.float32
    cdt = compute_dtype
    idt = interm_dtype

    N, H, W, Cin = x_nhwc.shape
    P = W1.shape[0]
    assert Cin == 4 * P, "identity residual needs inplanes == 4*planes"

    Cp = _round_up(Cin, 128)      # lane-dense channel dims (multiples of 128)
    Pp = _round_up(P, 128)
    M = N * H * W
    th = _pick_row_strip(H, W, row_tile)   # rows-per-step target ~row_tile
    G2 = H // th

    # ---- lane-dense, kernel-layout weights (zero padded; MXU input dtype) ----
    w1 = jnp.zeros((Cp, Pp), f32).at[:Cin, :P].set(W1[:, :, 0, 0].T).astype(cdt)
    w2 = (jnp.zeros((3, 3, Pp, Pp), f32)
          .at[:, :, :P, :P].set(jnp.transpose(W2, (2, 3, 1, 0)))
          .reshape(9 * Pp, Pp).astype(cdt))
    # TODO(synk): for planes<=64 blocks, pack the conv2 K axis as
    # round_up(9*P, 128) instead of 9*Pp to avoid per-tap lane padding.
    w3 = jnp.zeros((Pp, Cp), f32).at[:P, :Cin].set(W3[:, :, 0, 0].T).astype(cdt)

    def padc(v, c):
        return jnp.pad(v.astype(f32), (0, c - v.shape[0]))

    g1p, b1p = padc(g1, Pp), padc(b1, Pp)
    g2p, b2p = padc(g2, Pp), padc(b2, Pp)
    g3p, b3p = padc(g3, Cp), padc(b3, Cp)

    x4 = jnp.pad(x_nhwc.astype(f32), ((0, 0), (0, 0), (0, 0), (0, Cp - Cin)))

    vmem_limit = _vmem_limit_bytes()
    # TODO(synk): verify in the MLIR that the constant-index-map weights are
    # single-buffered; if not, stage them once into a VMEM scratch.
    cp2 = pltpu.CompilerParams(dimension_semantics=("parallel", "parallel"),
                               vmem_limit_bytes=vmem_limit)
    cp1 = pltpu.CompilerParams(dimension_semantics=("parallel",),
                               vmem_limit_bytes=vmem_limit)

    # ---- stage 1: conv1 (1x1) + BN1 partial stats ---------------------------
    y1, st1 = pl.pallas_call(
        _conv1x1_stats_kernel,
        grid=(N, G2),
        in_specs=[pl.BlockSpec((1, th, W, Cp), lambda n, g: (n, g, 0, 0)),
                  pl.BlockSpec((Cp, Pp), lambda n, g: (0, 0))],
        out_specs=(pl.BlockSpec((1, th, W, Pp), lambda n, g: (n, g, 0, 0)),
                   pl.BlockSpec((1, 2, Pp), lambda n, g: (n * G2 + g, 0, 0))),
        out_shape=(jax.ShapeDtypeStruct((N, H, W, Pp), idt),
                   jax.ShapeDtypeStruct((N * G2, 2, Pp), f32)),
        compiler_params=cp2,
    )(x4, w1)
    sc1, sh1 = _finalize_bn(st1, M, g1p, b1p)

    # ---- stage 2: BN1+ReLU -> conv2 (3x3, 9 accumulating taps) + BN2 stats --
    y2, st2 = pl.pallas_call(
        _bn_relu_conv3x3_stats_kernel,
        grid=(N,),
        in_specs=[pl.BlockSpec((1, H, W, Pp), lambda n: (n, 0, 0, 0)),
                  pl.BlockSpec((1, Pp), lambda n: (0, 0)),
                  pl.BlockSpec((1, Pp), lambda n: (0, 0)),
                  pl.BlockSpec((9 * Pp, Pp), lambda n: (0, 0))],
        out_specs=(pl.BlockSpec((1, H, W, Pp), lambda n: (n, 0, 0, 0)),
                   pl.BlockSpec((1, 2, Pp), lambda n: (n, 0, 0))),
        out_shape=(jax.ShapeDtypeStruct((N, H, W, Pp), idt),
                   jax.ShapeDtypeStruct((N, 2, Pp), f32)),
        scratch_shapes=[pltpu.VMEM((H + 2, W + 2, Pp), cdt),
                        pltpu.VMEM((H * W, Pp), f32)],
        compiler_params=cp1,
    )(y1, sc1, sh1, w2)
    sc2, sh2 = _finalize_bn(st2, M, g2p, b2p)

    # ---- stage 3: BN2+ReLU -> conv3 (1x1) + BN3 partial stats ---------------
    y3, st3 = pl.pallas_call(
        _bn_relu_conv1x1_stats_kernel,
        grid=(N, G2),
        in_specs=[pl.BlockSpec((1, th, W, Pp), lambda n, g: (n, g, 0, 0)),
                  pl.BlockSpec((1, Pp), lambda n, g: (0, 0)),
                  pl.BlockSpec((1, Pp), lambda n, g: (0, 0)),
                  pl.BlockSpec((Pp, Cp), lambda n, g: (0, 0))],
        out_specs=(pl.BlockSpec((1, th, W, Cp), lambda n, g: (n, g, 0, 0)),
                   pl.BlockSpec((1, 2, Cp), lambda n, g: (n * G2 + g, 0, 0))),
        out_shape=(jax.ShapeDtypeStruct((N, H, W, Cp), idt),
                   jax.ShapeDtypeStruct((N * G2, 2, Cp), f32)),
        compiler_params=cp2,
    )(y2, sc2, sh2, w3)
    sc3, sh3 = _finalize_bn(st3, M, g3p, b3p)

    # ---- stage 4: BN3 + identity residual + ReLU -----------------------------
    out4 = pl.pallas_call(
        _bn_add_relu_kernel,
        grid=(N, G2),
        in_specs=[pl.BlockSpec((1, th, W, Cp), lambda n, g: (n, g, 0, 0)),
                  pl.BlockSpec((1, th, W, Cp), lambda n, g: (n, g, 0, 0)),
                  pl.BlockSpec((1, Cp), lambda n, g: (0, 0)),
                  pl.BlockSpec((1, Cp), lambda n, g: (0, 0))],
        out_specs=pl.BlockSpec((1, th, W, Cp), lambda n, g: (n, g, 0, 0)),
        out_shape=jax.ShapeDtypeStruct((N, H, W, Cp), f32),
        compiler_params=cp2,
    )(y3, x4, sc3, sh3)

    return out4[..., :Cin]


@functools.partial(jax.jit,
                   static_argnames=("row_tile", "compute_dtype", "interm_dtype"))
def bottleneck_forward(x_nchw, weights, *, row_tile=512,
                       compute_dtype=jnp.bfloat16, interm_dtype=jnp.bfloat16):
    """NCHW module-boundary wrapper.  In a full NHWC model call
    bottleneck_forward_nhwc directly (transposes hoisted to model edges)."""
    x_nhwc = jnp.transpose(x_nchw, (0, 2, 3, 1))
    out = bottleneck_forward_nhwc(x_nhwc, weights, row_tile=row_tile,
                                  compute_dtype=compute_dtype,
                                  interm_dtype=interm_dtype)
    return jnp.transpose(out, (0, 3, 1, 2))


# ---------------- plain-JAX reference (NCHW, mirrors PyTorch) ----------------
def ref_forward(x, W1, W2, W3, bn_params):
    (g1, b1, g2, b2, g3, b3) = bn_params

    def bn(h, g, b):
        mean = jnp.mean(h, axis=(0, 2, 3), keepdims=True)
        var = jnp.mean((h - mean) ** 2, axis=(0, 2, 3), keepdims=True)
        return (h - mean) * jax.lax.rsqrt(var + EPS) * g[None, :, None, None] \
            + b[None, :, None, None]

    dn = ('NCHW', 'OIHW', 'NCHW')
    out = jax.lax.conv_general_dilated(x, W1, (1, 1), [(0, 0), (0, 0)],
                                       dimension_numbers=dn)
    out = jnp.maximum(bn(out, g1, b1), 0.0)
    out = jax.lax.conv_general_dilated(out, W2, (1, 1), [(1, 1), (1, 1)],
                                       dimension_numbers=dn)
    out = jnp.maximum(bn(out, g2, b2), 0.0)
    out = jax.lax.conv_general_dilated(out, W3, (1, 1), [(0, 0), (0, 0)],
                                       dimension_numbers=dn)
    out = bn(out, g3, b3)
    return jnp.maximum(out + x, 0.0)


if __name__ == "__main__":
    # Small shapes consistent with the module: inplanes = planes * expansion
    N, H, W = 2, 16, 16
    planes = 4
    inplanes = planes * 4   # identity residual valid (downsample=None)

    key = jax.random.PRNGKey(0)
    ks = jax.random.split(key, 10)

    W1 = jax.random.normal(ks[0], (planes, inplanes, 1, 1), jnp.float32) * 0.1
    W2 = jax.random.normal(ks[1], (planes, planes, 3, 3), jnp.float32) * 0.1
    W3 = jax.random.normal(ks[2], (planes * 4, planes, 1, 1), jnp.float32) * 0.1
    g1 = jax.random.uniform(ks[3], (planes,), jnp.float32, 0.5, 1.5)
    b1 = jax.random.normal(ks[4], (planes,), jnp.float32) * 0.1
    g2 = jax.random.uniform(ks[5], (planes,), jnp.float32, 0.5, 1.5)
    b2 = jax.random.normal(ks[6], (planes,), jnp.float32) * 0.1
    g3 = jax.random.uniform(ks[7], (planes * 4,), jnp.float32, 0.5, 1.5)
    b3 = jax.random.normal(ks[8], (planes * 4,), jnp.float32) * 0.1
    x = jax.random.normal(ks[9], (N, inplanes, H, W), jnp.float32)

    weights = (W1, g1, b1, W2, g2, b2, W3, g3, b3)
    ref = ref_forward(x, W1, W2, W3, (g1, b1, g2, b2, g3, b3))

    # Full-f32 path (MXU inputs + intermediates f32): tight check vs reference.
    out_f32 = jax.block_until_ready(
        bottleneck_forward(x, weights, compute_dtype=jnp.float32,
                           interm_dtype=jnp.float32))
    np.testing.assert_allclose(np.asarray(out_f32), np.asarray(ref),
                               rtol=1e-3, atol=1e-3)

    # Default fast path: bf16 MXU inputs + bf16 HBM intermediates, f32
    # accumulation and f32 BN/ReLU math -> loose numerical sanity check.
    out_bf16 = jax.block_until_ready(bottleneck_forward(x, weights))
    np.testing.assert_allclose(np.asarray(out_bf16), np.asarray(ref),
                               rtol=1e-1, atol=2e-1)

    print("KERNEL_OK")
</pallas_src>

<mosaic_0001>
module attributes {stable_mosaic.version = 11 : i64} {
  func.func @_conv1x1_stats_kernel(%arg0: i32, %arg1: i32, %arg2: memref<1x16x16x128xf32, #tpu.memory_space<vmem>>, %arg3: memref<128x128xf32, #tpu.memory_space<vmem>>, %arg4: memref<1x16x16x128xf32, #tpu.memory_space<vmem>>, %arg5: memref<1x2x128xf32, #tpu.memory_space<vmem>>) attributes {dimension_semantics = [#tpu.dimension_semantics<parallel>, #tpu.dimension_semantics<parallel>], iteration_bounds = array<i64: 2, 1>, scalar_prefetch = 0 : i64, scratch_operands = 0 : i64, tpu.core_type = #tpu.core_type<tc>, window_params = [{transform_indices = @transform_0, window_bounds = array<i64: 1, 16, 16, 128>}, {pipeline_mode = #tpu.pipeline_mode<synchronous>, transform_indices = @transform_1, window_bounds = array<i64: 128, 128>}, {transform_indices = @transform_2, window_bounds = array<i64: 1, 16, 16, 128>}, {transform_indices = @transform_3, window_bounds = array<i64: 1, 2, 128>}]} {
    %c0 = arith.constant 0 : index
    %c0_0 = arith.constant 0 : index
    %c0_1 = arith.constant 0 : index
    %c0_2 = arith.constant 0 : index
    %0 = vector.load %arg2[%c0, %c0_0, %c0_1, %c0_2] : memref<1x16x16x128xf32, #tpu.memory_space<vmem>>, vector<1x16x16x128xf32>
    %1 = vector.shape_cast %0 : vector<1x16x16x128xf32> to vector<16x16x128xf32>
    %2 = vector.shape_cast %1 : vector<16x16x128xf32> to vector<256x128xf32>
    %c0_3 = arith.constant 0 : index
    %c0_4 = arith.constant 0 : index
    %3 = vector.load %arg3[%c0_3, %c0_4] : memref<128x128xf32, #tpu.memory_space<vmem>>, vector<128x128xf32>
    %cst = arith.constant dense<0.000000e+00> : vector<256x128xf32>
    %4 = tpu.matmul %2, %3, %cst {dimension_numbers = #tpu.dot_dimension_numbers<[1], [0], [0], [1], [0, 0, 1, 1], [], []>} : vector<256x128xf32>, vector<128x128xf32>, vector<256x128xf32> -> vector<256x128xf32>
    %cst_5 = arith.constant dense<0.000000e+00> : vector<128xf32>
    %5 = vector.multi_reduction <add>, %4, %cst_5 [0] : vector<256x128xf32> to vector<128xf32>
    %6 = vector.shape_cast %5 : vector<128xf32> to vector<1x128xf32>
    %7 = vector.shape_cast %6 : vector<1x128xf32> to vector<1x1x128xf32>
    %c0_6 = arith.constant 0 : index
    %c0_7 = arith.constant 0 : index
    %c0_8 = arith.constant 0 : index
    %8 = vector.load %arg5[%c0_6, %c0_7, %c0_8] : memref<1x2x128xf32, #tpu.memory_space<vmem>>, vector<1x1x128xf32>
    tpu.vector_store %arg5[%c0_6, %c0_7, %c0_8], %7 {strides = array<i32>} : memref<1x2x128xf32, #tpu.memory_space<vmem>>, vector<1x1x128xf32>,
    %9 = arith.mulf %4, %4 : vector<256x128xf32>
    %cst_9 = arith.constant dense<0.000000e+00> : vector<128xf32>
    %10 = vector.multi_reduction <add>, %9, %cst_9 [0] : vector<256x128xf32> to vector<128xf32>
    %11 = vector.shape_cast %10 : vector<128xf32> to vector<1x128xf32>
    %12 = vector.shape_cast %11 : vector<1x128xf32> to vector<1x1x128xf32>
    %c0_10 = arith.constant 0 : index
    %c1 = arith.constant 1 : index
    %c0_11 = arith.constant 0 : index
    %13 = vector.load %arg5[%c0_10, %c1, %c0_11] : memref<1x2x128xf32, #tpu.memory_space<vmem>>, vector<1x1x128xf32>
    tpu.vector_store %arg5[%c0_10, %c1, %c0_11], %12 {strides = array<i32>} : memref<1x2x128xf32, #tpu.memory_space<vmem>>, vector<1x1x128xf32>,
    %14 = vector.shape_cast %4 : vector<256x128xf32> to vector<1x16x16x128xf32>
    %c0_12 = arith.constant 0 : index
    %c0_13 = arith.constant 0 : index
    %c0_14 = arith.constant 0 : index
    %c0_15 = arith.constant 0 : index
    %15 = vector.load %arg4[%c0_12, %c0_13, %c0_14, %c0_15] : memref<1x16x16x128xf32, #tpu.memory_space<vmem>>, vector<1x16x16x128xf32>
    tpu.vector_store %arg4[%c0_12, %c0_13, %c0_14, %c0_15], %14 {strides = array<i32>} : memref<1x16x16x128xf32, #tpu.memory_space<vmem>>, vector<1x16x16x128xf32>,
    return
  }
  func.func @transform_0(%arg0: i32, %arg1: i32) -> (i32, i32, i32, i32) {
    %c0_i32 = arith.constant 0 : i32
    %c0_i32_0 = arith.constant 0 : i32
    %c0_i32_1 = arith.constant 0 : i32
    return %arg0, %arg1, %c0_i32, %c0_i32_0 : i32, i32, i32, i32
  }
  func.func @transform_1(%arg0: i32, %arg1: i32) -> (i32, i32) {
    %c0_i32 = arith.constant 0 : i32
    %c0_i32_0 = arith.constant 0 : i32
    %c0_i32_1 = arith.constant 0 : i32
    return %c0_i32, %c0_i32_0 : i32, i32
  }
  func.func @transform_2(%arg0: i32, %arg1: i32) -> (i32, i32, i32, i32) {
    %c0_i32 = arith.constant 0 : i32
    %c0_i32_0 = arith.constant 0 : i32
    %c0_i32_1 = arith.constant 0 : i32
    return %arg0, %arg1, %c0_i32, %c0_i32_0 : i32, i32, i32, i32
  }
  func.func @transform_3(%arg0: i32, %arg1: i32) -> (i32, i32, i32) {
    %c1_i32 = arith.constant 1 : i32
    %0 = arith.muli %arg0, %c1_i32 : i32
    %1 = arith.addi %0, %arg1 : i32
    %c0_i32 = arith.constant 0 : i32
    %c0_i32_0 = arith.constant 0 : i32
    %c0_i32_1 = arith.constant 0 : i32
    return %1, %c0_i32, %c0_i32_0 : i32, i32, i32
  }
}

module attributes {stable_mosaic.version = 11 : i64} {
  func.func @_bn_relu_conv1x1_stats_kernel(%arg0: i32, %arg1: i32, %arg2: memref<1x16x16x128xf32, #tpu.memory_space<vmem>>, %arg3: memref<1x128xf32, #tpu.memory_space<vmem>>, %arg4: memref<1x128xf32, #tpu.memory_space<vmem>>, %arg5: memref<128x128xf32, #tpu.memory_space<vmem>>, %arg6: memref<1x16x16x128xf32, #tpu.memory_space<vmem>>, %arg7: memref<1x2x128xf32, #tpu.memory_space<vmem>>) attributes {dimension_semantics = [#tpu.dimension_semantics<parallel>, #tpu.dimension_semantics<parallel>], iteration_bounds = array<i64: 2, 1>, scalar_prefetch = 0 : i64, scratch_operands = 0 : i64, tpu.core_type = #tpu.core_type<tc>, window_params = [{transform_indices = @transform_0, window_bounds = array<i64: 1, 16, 16, 128>}, {pipeline_mode = #tpu.pipeline_mode<synchronous>, transform_indices = @transform_1, window_bounds = array<i64: 1, 128>}, {pipeline_mode = #tpu.pipeline_mode<synchronous>, transform_indices = @transform_2, window_bounds = array<i64: 1, 128>}, {pipeline_mode = #tpu.pipeline_mode<synchronous>, transform_indices = @transform_3, window_bounds = array<i64: 128, 128>}, {transform_indices = @transform_4, window_bounds = array<i64: 1, 16, 16, 128>}, {transform_indices = @transform_5, window_bounds = array<i64: 1, 2, 128>}]} {
    %c0 = arith.constant 0 : index
    %c0_0 = arith.constant 0 : index
    %c0_1 = arith.constant 0 : index
    %c0_2 = arith.constant 0 : index
    %0 = vector.load %arg2[%c0, %c0_0, %c0_1, %c0_2] : memref<1x16x16x128xf32, #tpu.memory_space<vmem>>, vector<1x16x16x128xf32>
    %1 = vector.shape_cast %0 : vector<1x16x16x128xf32> to vector<16x16x128xf32>
    %c0_3 = arith.constant 0 : index
    %c0_4 = arith.constant 0 : index
    %2 = vector.load %arg3[%c0_3, %c0_4] : memref<1x128xf32, #tpu.memory_space<vmem>>, vector<1x128xf32>
    %3 = vector.shape_cast %2 : vector<1x128xf32> to vector<1x1x128xf32>
    %4 = vector.broadcast %3 : vector<1x1x128xf32> to vector<16x16x128xf32>
    %5 = arith.mulf %1, %4 : vector<16x16x128xf32>
    %c0_5 = arith.constant 0 : index
    %c0_6 = arith.constant 0 : index
    %6 = vector.load %arg4[%c0_5, %c0_6] : memref<1x128xf32, #tpu.memory_space<vmem>>, vector<1x128xf32>
    %7 = vector.shape_cast %6 : vector<1x128xf32> to vector<1x1x128xf32>
    %8 = vector.broadcast %7 : vector<1x1x128xf32> to vector<16x16x128xf32>
    %9 = arith.addf %5, %8 : vector<16x16x128xf32>
    %cst = arith.constant 0.000000e+00 : f32
    %10 = vector.broadcast %cst : f32 to vector<16x16x128xf32>
    %11 = arith.maximumf %9, %10 : vector<16x16x128xf32>
    %12 = vector.shape_cast %11 : vector<16x16x128xf32> to vector<256x128xf32>
    %c0_7 = arith.constant 0 : index
    %c0_8 = arith.constant 0 : index
    %13 = vector.load %arg5[%c0_7, %c0_8] : memref<128x128xf32, #tpu.memory_space<vmem>>, vector<128x128xf32>
    %cst_9 = arith.constant dense<0.000000e+00> : vector<256x128xf32>
    %14 = tpu.matmul %12, %13, %cst_9 {dimension_numbers = #tpu.dot_dimension_numbers<[1], [0], [0], [1], [0, 0, 1, 1], [], []>} : vector<256x128xf32>, vector<128x128xf32>, vector<256x128xf32> -> vector<256x128xf32>
    %cst_10 = arith.constant dense<0.000000e+00> : vector<128xf32>
    %15 = vector.multi_reduction <add>, %14, %cst_10 [0] : vector<256x128xf32> to vector<128xf32>
    %16 = vector.shape_cast %15 : vector<128xf32> to vector<1x128xf32>
    %17 = vector.shape_cast %16 : vector<1x128xf32> to vector<1x1x128xf32>
    %c0_11 = arith.constant 0 : index
    %c0_12 = arith.constant 0 : index
    %c0_13 = arith.constant 0 : index
    %18 = vector.load %arg7[%c0_11, %c0_12, %c0_13] : memref<1x2x128xf32, #tpu.memory_space<vmem>>, vector<1x1x128xf32>
    tpu.vector_store %arg7[%c0_11, %c0_12, %c0_13], %17 {strides = array<i32>} : memref<1x2x128xf32, #tpu.memory_space<vmem>>, vector<1x1x128xf32>,
    %19 = arith.mulf %14, %14 : vector<256x128xf32>
    %cst_14 = arith.constant dense<0.000000e+00> : vector<128xf32>
    %20 = vector.multi_reduction <add>, %19, %cst_14 [0] : vector<256x128xf32> to vector<128xf32>
    %21 = vector.shape_cast %20 : vector<128xf32> to vector<1x128xf32>
    %22 = vector.shape_cast %21 : vector<1x128xf32> to vector<1x1x128xf32>
    %c0_15 = arith.constant 0 : index
    %c1 = arith.constant 1 : index
    %c0_16 = arith.constant 0 : index
    %23 = vector.load %arg7[%c0_15, %c1, %c0_16] : memref<1x2x128xf32, #tpu.memory_space<vmem>>, vector<1x1x128xf32>
    tpu.vector_store %arg7[%c0_15, %c1, %c0_16], %22 {strides = array<i32>} : memref<1x2x128xf32, #tpu.memory_space<vmem>>, vector<1x1x128xf32>,
    %24 = vector.shape_cast %14 : vector<256x128xf32> to vector<1x16x16x128xf32>
    %c0_17 = arith.constant 0 : index
    %c0_18 = arith.constant 0 : index
    %c0_19 = arith.constant 0 : index
    %c0_20 = arith.constant 0 : index
    %25 = vector.load %arg6[%c0_17, %c0_18, %c0_19, %c0_20] : memref<1x16x16x128xf32, #tpu.memory_space<vmem>>, vector<1x16x16x128xf32>
    tpu.vector_store %arg6[%c0_17, %c0_18, %c0_19, %c0_20], %24 {strides = array<i32>} : memref<1x16x16x128xf32, #tpu.memory_space<vmem>>, vector<1x16x16x128xf32>,
    return
  }
  func.func @transform_0(%arg0: i32, %arg1: i32) -> (i32, i32, i32, i32) {
    %c0_i32 = arith.constant 0 : i32
    %c0_i32_0 = arith.constant 0 : i32
    %c0_i32_1 = arith.constant 0 : i32
    return %arg0, %arg1, %c0_i32, %c0_i32_0 : i32, i32, i32, i32
  }
  func.func @transform_1(%arg0: i32, %arg1: i32) -> (i32, i32) {
    %c0_i32 = arith.constant 0 : i32
    %c0_i32_0 = arith.constant 0 : i32
    %c0_i32_1 = arith.constant 0 : i32
    return %c0_i32, %c0_i32_0 : i32, i32
  }
  func.func @transform_2(%arg0: i32, %arg1: i32) -> (i32, i32) {
    %c0_i32 = arith.constant 0 : i32
    %c0_i32_0 = arith.constant 0 : i32
    %c0_i32_1 = arith.constant 0 : i32
    return %c0_i32, %c0_i32_0 : i32, i32
  }
  func.func @transform_3(%arg0: i32, %arg1: i32) -> (i32, i32) {
    %c0_i32 = arith.constant 0 : i32
    %c0_i32_0 = arith.constant 0 : i32
    %c0_i32_1 = arith.constant 0 : i32
    return %c0_i32, %c0_i32_0 : i32, i32
  }
  func.func @transform_4(%arg0: i32, %arg1: i32) -> (i32, i32, i32, i32) {
    %c0_i32 = arith.constant 0 : i32
    %c0_i32_0 = arith.constant 0 : i32
    %c0_i32_1 = arith.constant 0 : i32
    return %arg0, %arg1, %c0_i32, %c0_i32_0 : i32, i32, i32, i32
  }
  func.func @transform_5(%arg0: i32, %arg1: i32) -> (i32, i32, i32) {
    %c1_i32 = arith.constant 1 : i32
    %0 = arith.muli %arg0, %c1_i32 : i32
    %1 = arith.addi %0, %arg1 : i32
    %c0_i32 = arith.constant 0 : i32
    %c0_i32_0 = arith.constant 0 : i32
    %c0_i32_1 = arith.constant 0 : i32
    return %1, %c0_i32, %c0_i32_0 : i32, i32, i32
  }
}

module attributes {stable_mosaic.version = 11 : i64} {
  func.func @_bn_add_relu_kernel(%arg0: i32, %arg1: i32, %arg2: memref<1x16x16x128xf32, #tpu.memory_space<vmem>>, %arg3: memref<1x16x16x128xf32, #tpu.memory_space<vmem>>, %arg4: memref<1x128xf32, #tpu.memory_space<vmem>>, %arg5: memref<1x128xf32, #tpu.memory_space<vmem>>, %arg6: memref<1x16x16x128xf32, #tpu.memory_space<vmem>>) attributes {dimension_semantics = [#tpu.dimension_semantics<parallel>, #tpu.dimension_semantics<parallel>], iteration_bounds = array<i64: 2, 1>, scalar_prefetch = 0 : i64, scratch_operands = 0 : i64, tpu.core_type = #tpu.core_type<tc>, window_params = [{transform_indices = @transform_0, window_bounds = array<i64: 1, 16, 16, 128>}, {transform_indices = @transform_1, window_bounds = array<i64: 1, 16, 16, 128>}, {pipeline_mode = #tpu.pipeline_mode<synchronous>, transform_indices = @transform_2, window_bounds = array<i64: 1, 128>}, {pipeline_mode = #tpu.pipeline_mode<synchronous>, transform_indices = @transform_3, window_bounds = array<i64: 1, 128>}, {transform_indices = @transform_4, window_bounds = array<i64: 1, 16, 16, 128>}]} {
    %c0 = arith.constant 0 : index
    %c0_0 = arith.constant 0 : index
    %c0_1 = arith.constant 0 : index
    %c0_2 = arith.constant 0 : index
    %0 = vector.load %arg2[%c0, %c0_0, %c0_1, %c0_2] : memref<1x16x16x128xf32, #tpu.memory_space<vmem>>, vector<1x16x16x128xf32>
    %c0_3 = arith.constant 0 : index
    %c0_4 = arith.constant 0 : index
    %1 = vector.load %arg4[%c0_3, %c0_4] : memref<1x128xf32, #tpu.memory_space<vmem>>, vector<1x128xf32>
    %2 = vector.shape_cast %1 : vector<1x128xf32> to vector<1x1x1x128xf32>
    %3 = vector.broadcast %2 : vector<1x1x1x128xf32> to vector<1x16x16x128xf32>
    %4 = arith.mulf %0, %3 : vector<1x16x16x128xf32>
    %c0_5 = arith.constant 0 : index
    %c0_6 = arith.constant 0 : index
    %5 = vector.load %arg5[%c0_5, %c0_6] : memref<1x128xf32, #tpu.memory_space<vmem>>, vector<1x128xf32>
    %6 = vector.shape_cast %5 : vector<1x128xf32> to vector<1x1x1x128xf32>
    %7 = vector.broadcast %6 : vector<1x1x1x128xf32> to vector<1x16x16x128xf32>
    %8 = arith.addf %4, %7 : vector<1x16x16x128xf32>
    %c0_7 = arith.constant 0 : index
    %c0_8 = arith.constant 0 : index
    %c0_9 = arith.constant 0 : index
    %c0_10 = arith.constant 0 : index
    %9 = vector.load %arg3[%c0_7, %c0_8, %c0_9, %c0_10] : memref<1x16x16x128xf32, #tpu.memory_space<vmem>>, vector<1x16x16x128xf32>
    %10 = arith.addf %8, %9 : vector<1x16x16x128xf32>
    %cst = arith.constant 0.000000e+00 : f32
    %11 = vector.broadcast %cst : f32 to vector<1x16x16x128xf32>
    %12 = arith.maximumf %10, %11 : vector<1x16x16x128xf32>
    %c0_11 = arith.constant 0 : index
    %c0_12 = arith.constant 0 : index
    %c0_13 = arith.constant 0 : index
    %c0_14 = arith.constant 0 : index
    %13 = vector.load %arg6[%c0_11, %c0_12, %c0_13, %c0_14] : memref<1x16x16x128xf32, #tpu.memory_space<vmem>>, vector<1x16x16x128xf32>
    tpu.vector_store %arg6[%c0_11, %c0_12, %c0_13, %c0_14], %12 {strides = array<i32>} : memref<1x16x16x128xf32, #tpu.memory_space<vmem>>, vector<1x16x16x128xf32>,
    return
  }
  func.func @transform_0(%arg0: i32, %arg1: i32) -> (i32, i32, i32, i32) {
    %c0_i32 = arith.constant 0 : i32
    %c0_i32_0 = arith.constant 0 : i32
    %c0_i32_1 = arith.constant 0 : i32
    return %arg0, %arg1, %c0_i32, %c0_i32_0 : i32, i32, i32, i32
  }
  func.func @transform_1(%arg0: i32, %arg1: i32) -> (i32, i32, i32, i32) {
    %c0_i32 = arith.constant 0 : i32
    %c0_i32_0 = arith.constant 0 : i32
    %c0_i32_1 = arith.constant 0 : i32
    return %arg0, %arg1, %c0_i32, %c0_i32_0 : i32, i32, i32, i32
  }
  func.func @transform_2(%arg0: i32, %arg1: i32) -> (i32, i32) {
    %c0_i32 = arith.constant 0 : i32
    %c0_i32_0 = arith.constant 0 : i32
    %c0_i32_1 = arith.constant 0 : i32
    return %c0_i32, %c0_i32_0 : i32, i32
  }
  func.func @transform_3(%arg0: i32, %arg1: i32) -> (i32, i32) {
    %c0_i32 = arith.constant 0 : i32
    %c0_i32_0 = arith.constant 0 : i32
    %c0_i32_1 = arith.constant 0 : i32
    return %c0_i32, %c0_i32_0 : i32, i32
  }
  func.func @transform_4(%arg0: i32, %arg1: i32) -> (i32, i32, i32, i32) {
    %c0_i32 = arith.constant 0 : i32
    %c0_i32_0 = arith.constant 0 : i32
    %c0_i32_1 = arith.constant 0 : i32
    return %arg0, %arg1, %c0_i32, %c0_i32_0 : i32, i32, i32, i32
  }
}

module attributes {stable_mosaic.version = 11 : i64} {
  func.func @_bn_relu_conv3x3_stats_kernel(%arg0: i32, %arg1: memref<1x16x16x128xf32, #tpu.memory_space<vmem>>, %arg2: memref<1x128xf32, #tpu.memory_space<vmem>>, %arg3: memref<1x128xf32, #tpu.memory_space<vmem>>, %arg4: memref<1152x128xf32, #tpu.memory_space<vmem>>, %arg5: memref<1x16x16x128xf32, #tpu.memory_space<vmem>>, %arg6: memref<1x2x128xf32, #tpu.memory_space<vmem>>, %arg7: memref<18x18x128xf32, #tpu.memory_space<vmem>>, %arg8: memref<256x128xf32, #tpu.memory_space<vmem>>) attributes {dimension_semantics = [#tpu.dimension_semantics<parallel>], iteration_bounds = array<i64: 2>, scalar_prefetch = 0 : i64, scratch_operands = 2 : i64, tpu.core_type = #tpu.core_type<tc>, window_params = [{transform_indices = @transform_0, window_bounds = array<i64: 1, 16, 16, 128>}, {pipeline_mode = #tpu.pipeline_mode<synchronous>, transform_indices = @transform_1, window_bounds = array<i64: 1, 128>}, {pipeline_mode = #tpu.pipeline_mode<synchronous>, transform_indices = @transform_2, window_bounds = array<i64: 1, 128>}, {pipeline_mode = #tpu.pipeline_mode<synchronous>, transform_indices = @transform_3, window_bounds = array<i64: 1152, 128>}, {transform_indices = @transform_4, window_bounds = array<i64: 1, 16, 16, 128>}, {transform_indices = @transform_5, window_bounds = array<i64: 1, 2, 128>}]} {
    %c0 = arith.constant 0 : index
    %c0_0 = arith.constant 0 : index
    %c0_1 = arith.constant 0 : index
    %c0_2 = arith.constant 0 : index
    %0 = vector.load %arg1[%c0, %c0_0, %c0_1, %c0_2] : memref<1x16x16x128xf32, #tpu.memory_space<vmem>>, vector<1x16x16x128xf32>
    %1 = vector.shape_cast %0 : vector<1x16x16x128xf32> to vector<16x16x128xf32>
    %c0_3 = arith.constant 0 : index
    %c0_4 = arith.constant 0 : index
    %2 = vector.load %arg2[%c0_3, %c0_4] : memref<1x128xf32, #tpu.memory_space<vmem>>, vector<1x128xf32>
    %3 = vector.shape_cast %2 : vector<1x128xf32> to vector<1x1x128xf32>
    %4 = vector.broadcast %3 : vector<1x1x128xf32> to vector<16x16x128xf32>
    %5 = arith.mulf %1, %4 : vector<16x16x128xf32>
    %c0_5 = arith.constant 0 : index
    %c0_6 = arith.constant 0 : index
    %6 = vector.load %arg3[%c0_5, %c0_6] : memref<1x128xf32, #tpu.memory_space<vmem>>, vector<1x128xf32>
    %7 = vector.shape_cast %6 : vector<1x128xf32> to vector<1x1x128xf32>
    %8 = vector.broadcast %7 : vector<1x1x128xf32> to vector<16x16x128xf32>
    %9 = arith.addf %5, %8 : vector<16x16x128xf32>
    %cst = arith.constant 0.000000e+00 : f32
    %10 = vector.broadcast %cst : f32 to vector<16x16x128xf32>
    %11 = arith.maximumf %9, %10 : vector<16x16x128xf32>
    %cst_7 = arith.constant 0.000000e+00 : f32
    %12 = vector.broadcast %cst_7 : f32 to vector<1x18x128xf32>
    %cst_8 = arith.constant 0.000000e+00 : f32
    %13 = vector.broadcast %cst_8 : f32 to vector<16x1x128xf32>
    %c0_9 = arith.constant 0 : index
    %c0_10 = arith.constant 0 : index
    %c0_11 = arith.constant 0 : index
    %14 = vector.load %arg7[%c0_9, %c0_10, %c0_11] : memref<18x18x128xf32, #tpu.memory_space<vmem>>, vector<1x18x128xf32>
    tpu.vector_store %arg7[%c0_9, %c0_10, %c0_11], %12 {strides = array<i32>} : memref<18x18x128xf32, #tpu.memory_space<vmem>>, vector<1x18x128xf32>,
    %c17 = arith.constant 17 : index
    %c0_12 = arith.constant 0 : index
    %c0_13 = arith.constant 0 : index
    %15 = vector.load %arg7[%c17, %c0_12, %c0_13] : memref<18x18x128xf32, #tpu.memory_space<vmem>>, vector<1x18x128xf32>
    tpu.vector_store %arg7[%c17, %c0_12, %c0_13], %12 {strides = array<i32>} : memref<18x18x128xf32, #tpu.memory_space<vmem>>, vector<1x18x128xf32>,
    %c1 = arith.constant 1 : index
    %c0_14 = arith.constant 0 : index
    %c0_15 = arith.constant 0 : index
    %16 = vector.load %arg7[%c1, %c0_14, %c0_15] : memref<18x18x128xf32, #tpu.memory_space<vmem>>, vector<16x1x128xf32>
    tpu.vector_store %arg7[%c1, %c0_14, %c0_15], %13 {strides = array<i32>} : memref<18x18x128xf32, #tpu.memory_space<vmem>>, vector<16x1x128xf32>,
    %c1_16 = arith.constant 1 : index
    %c17_17 = arith.constant 17 : index
    %c0_18 = arith.constant 0 : index
    %17 = vector.load %arg7[%c1_16, %c17_17, %c0_18] : memref<18x18x128xf32, #tpu.memory_space<vmem>>, vector<16x1x128xf32>
    tpu.vector_store %arg7[%c1_16, %c17_17, %c0_18], %13 {strides = array<i32>} : memref<18x18x128xf32, #tpu.memory_space<vmem>>, vector<16x1x128xf32>,
    %c1_19 = arith.constant 1 : index
    %c1_20 = arith.constant 1 : index
    %c0_21 = arith.constant 0 : index
    %18 = vector.load %arg7[%c1_19, %c1_20, %c0_21] : memref<18x18x128xf32, #tpu.memory_space<vmem>>, vector<16x16x128xf32>
    tpu.vector_store %arg7[%c1_19, %c1_20, %c0_21], %11 {strides = array<i32>} : memref<18x18x128xf32, #tpu.memory_space<vmem>>, vector<16x16x128xf32>,
    %c0_22 = arith.constant 0 : index
    %c0_23 = arith.constant 0 : index
    %c0_24 = arith.constant 0 : index
    %19 = vector.load %arg7[%c0_22, %c0_23, %c0_24] : memref<18x18x128xf32, #tpu.memory_space<vmem>>, vector<16x16x128xf32>
    %20 = vector.shape_cast %19 : vector<16x16x128xf32> to vector<256x128xf32>
    %c0_25 = arith.constant 0 : index
    %c0_26 = arith.constant 0 : index
    %21 = vector.load %arg4[%c0_25, %c0_26] : memref<1152x128xf32, #tpu.memory_space<vmem>>, vector<128x128xf32>
    %cst_27 = arith.constant dense<0.000000e+00> : vector<256x128xf32>
    %22 = tpu.matmul %20, %21, %cst_27 {dimension_numbers = #tpu.dot_dimension_numbers<[1], [0], [0], [1], [0, 0, 1, 1], [], []>} : vector<256x128xf32>, vector<128x128xf32>, vector<256x128xf32> -> vector<256x128xf32>
    %c0_28 = arith.constant 0 : index
    %c0_29 = arith.constant 0 : index
    %23 = vector.load %arg8[%c0_28, %c0_29] : memref<256x128xf32, #tpu.memory_space<vmem>>, vector<256x128xf32>
    tpu.vector_store %arg8[%c0_28, %c0_29], %22 {strides = array<i32>} : memref<256x128xf32, #tpu.memory_space<vmem>>, vector<256x128xf32>,
    %c0_30 = arith.constant 0 : index
    %c1_31 = arith.constant 1 : index
    %c0_32 = arith.constant 0 : index
    %24 = vector.load %arg7[%c0_30, %c1_31, %c0_32] : memref<18x18x128xf32, #tpu.memory_space<vmem>>, vector<16x16x128xf32>
    %25 = vector.shape_cast %24 : vector<16x16x128xf32> to vector<256x128xf32>
    %c128 = arith.constant 128 : index
    %c0_33 = arith.constant 0 : index
    %26 = vector.load %arg4[%c128, %c0_33] : memref<1152x128xf32, #tpu.memory_space<vmem>>, vector<128x128xf32>
    %cst_34 = arith.constant dense<0.000000e+00> : vector<256x128xf32>
    %27 = tpu.matmul %25, %26, %cst_34 {dimension_numbers = #tpu.dot_dimension_numbers<[1], [0], [0], [1], [0, 0, 1, 1], [], []>} : vector<256x128xf32>, vector<128x128xf32>, vector<256x128xf32> -> vector<256x128xf32>
    %c0_35 = arith.constant 0 : index
    %c0_36 = arith.constant 0 : index
    %28 = vector.load %arg8[%c0_35, %c0_36] : memref<256x128xf32, #tpu.memory_space<vmem>>, vector<256x128xf32>
    %29 = arith.addf %28, %27 : vector<256x128xf32>
    %c0_37 = arith.constant 0 : index
    %c0_38 = arith.constant 0 : index
    %30 = vector.load %arg8[%c0_37, %c0_38] : memref<256x128xf32, #tpu.memory_space<vmem>>, vector<256x128xf32>
    tpu.vector_store %arg8[%c0_37, %c0_38], %29 {strides = array<i32>} : memref<256x128xf32, #tpu.memory_space<vmem>>, vector<256x128xf32>,
    %c0_39 = arith.constant 0 : index
    %c2 = arith.constant 2 : index
    %c0_40 = arith.constant 0 : index
    %31 = vector.load %arg7[%c0_39, %c2, %c0_40] : memref<18x18x128xf32, #tpu.memory_space<vmem>>, vector<16x16x128xf32>
    %32 = vector.shape_cast %31 : vector<16x16x128xf32> to vector<256x128xf32>
    %c256 = arith.constant 256 : index
    %c0_41 = arith.constant 0 : index
    %33 = vector.load %arg4[%c256, %c0_41] : memref<1152x128xf32, #tpu.memory_space<vmem>>, vector<128x128xf32>
    %cst_42 = arith.constant dense<0.000000e+00> : vector<256x128xf32>
    %34 = tpu.matmul %32, %33, %cst_42 {dimension_numbers = #tpu.dot_dimension_numbers<[1], [0], [0], [1], [0, 0, 1, 1], [], []>} : vector<256x128xf32>, vector<128x128xf32>, vector<256x128xf32> -> vector<256x128xf32>
    %c0_43 = arith.constant 0 : index
    %c0_44 = arith.constant 0 : index
    %35 = vector.load %arg8[%c0_43, %c0_44] : memref<256x128xf32, #tpu.memory_space<vmem>>, vector<256x128xf32>
    %36 = arith.addf %35, %34 : vector<256x128xf32>
    %c0_45 = arith.constant 0 : index
    %c0_46 = arith.constant 0 : index
    %37 = vector.load %arg8[%c0_45, %c0_46] : memref<256x128xf32, #tpu.memory_space<vmem>>, vector<256x128xf32>
    tpu.vector_store %arg8[%c0_45, %c0_46], %36 {strides = array<i32>} : memref<256x128xf32, #tpu.memory_space<vmem>>, vector<256x128xf32>,
    %c1_47 = arith.constant 1 : index
    %c0_48 = arith.constant 0 : index
    %c0_49 = arith.constant 0 : index
    %38 = vector.load %arg7[%c1_47, %c0_48, %c0_49] : memref<18x18x128xf32, #tpu.memory_space<vmem>>, vector<16x16x128xf32>
    %39 = vector.shape_cast %38 : vector<16x16x128xf32> to vector<256x128xf32>
    %c384 = arith.constant 384 : index
    %c0_50 = arith.constant 0 : index
    %40 = vector.load %arg4[%c384, %c0_50] : memref<1152x128xf32, #tpu.memory_space<vmem>>, vector<128x128xf32>
    %cst_51 = arith.constant dense<0.000000e+00> : vector<256x128xf32>
    %41 = tpu.matmul %39, %40, %cst_51 {dimension_numbers = #tpu.dot_dimension_numbers<[1], [0], [0], [1], [0, 0, 1, 1], [], []>} : vector<256x128xf32>, vector<128x128xf32>, vector<256x128xf32> -> vector<256x128xf32>
    %c0_52 = arith.constant 0 : index
    %c0_53 = arith.constant 0 : index
    %42 = vector.load %arg8[%c0_52, %c0_53] : memref<256x128xf32, #tpu.memory_space<vmem>>, vector<256x128xf32>
    %43 = arith.addf %42, %41 : vector<256x128xf32>
    %c0_54 = arith.constant 0 : index
    %c0_55 = arith.constant 0 : index
    %44 = vector.load %arg8[%c0_54, %c0_55] : memref<256x128xf32, #tpu.memory_space<vmem>>, vector<256x128xf32>
    tpu.vector_store %arg8[%c0_54, %c0_55], %43 {strides = array<i32>} : memref<256x128xf32, #tpu.memory_space<vmem>>, vector<256x128xf32>,
    %c1_56 = arith.constant 1 : index
    %c1_57 = arith.constant 1 : index
    %c0_58 = arith.constant 0 : index
    %45 = vector.load %arg7[%c1_56, %c1_57, %c0_58] : memref<18x18x128xf32, #tpu.memory_space<vmem>>, vector<16x16x128xf32>
    %46 = vector.shape_cast %45 : vector<16x16x128xf32> to vector<256x128xf32>
    %c512 = arith.constant 512 : index
    %c0_59 = arith.constant 0 : index
    %47 = vector.load %arg4[%c512, %c0_59] : memref<1152x128xf32, #tpu.memory_space<vmem>>, vector<128x128xf32>
    %cst_60 = arith.constant dense<0.000000e+00> : vector<256x128xf32>
    %48 = tpu.matmul %46, %47, %cst_60 {dimension_numbers = #tpu.dot_dimension_numbers<[1], [0], [0], [1], [0, 0, 1, 1], [], []>} : vector<256x128xf32>, vector<128x128xf32>, vector<256x128xf32> -> vector<256x128xf32>
    %c0_61 = arith.constant 0 : index
    %c0_62 = arith.constant 0 : index
    %49 = vector.load %arg8[%c0_61, %c0_62] : memref<256x128xf32, #tpu.memory_space<vmem>>, vector<256x128xf32>
    %50 = arith.addf %49, %48 : vector<256x128xf32>
    %c0_63 = arith.constant 0 : index
    %c0_64 = arith.constant 0 : index
    %51 = vector.load %arg8[%c0_63, %c0_64] : memref<256x128xf32, #tpu.memory_space<vmem>>, vector<256x128xf32>
    tpu.vector_store %arg8[%c0_63, %c0_64], %50 {strides = array<i32>} : memref<256x128xf32, #tpu.memory_space<vmem>>, vector<256x128xf32>,
    %c1_65 = arith.constant 1 : index
    %c2_66 = arith.constant 2 : index
    %c0_67 = arith.constant 0 : index
    %52 = vector.load %arg7[%c1_65, %c2_66, %c0_67] : memref<18x18x128xf32, #tpu.memory_space<vmem>>, vector<16x16x128xf32>
    %53 = vector.shape_cast %52 : vector<16x16x128xf32> to vector<256x128xf32>
    %c640 = arith.constant 640 : index
    %c0_68 = arith.constant 0 : index
    %54 = vector.load %arg4[%c640, %c0_68] : memref<1152x128xf32, #tpu.memory_space<vmem>>, vector<128x128xf32>
    %cst_69 = arith.constant dense<0.000000e+00> : vector<256x128xf32>
    %55 = tpu.matmul %53, %54, %cst_69 {dimension_numbers = #tpu.dot_dimension_numbers<[1], [0], [0], [1], [0, 0, 1, 1], [], []>} : vector<256x128xf32>, vector<128x128xf32>, vector<256x128xf32> -> vector<256x128xf32>
    %c0_70 = arith.constant 0 : index
    %c0_71 = arith.constant 0 : index
    %56 = vector.load %arg8[%c0_70, %c0_71] : memref<256x128xf32, #tpu.memory_space<vmem>>, vector<256x128xf32>
    %57 = arith.addf %56, %55 : vector<256x128xf32>
    %c0_72 = arith.constant 0 : index
    %c0_73 = arith.constant 0 : index
    %58 = vector.load %arg8[%c0_72, %c0_73] : memref<256x128xf32, #tpu.memory_space<vmem>>, vector<256x128xf32>
    tpu.vector_store %arg8[%c0_72, %c0_73], %57 {strides = array<i32>} : memref<256x128xf32, #tpu.memory_space<vmem>>, vector<256x128xf32>,
    %c2_74 = arith.constant 2 : index
    %c0_75 = arith.constant 0 : index
    %c0_76 = arith.constant 0 : index
    %59 = vector.load %arg7[%c2_74, %c0_75, %c0_76] : memref<18x18x128xf32, #tpu.memory_space<vmem>>, vector<16x16x128xf32>
    %60 = vector.shape_cast %59 : vector<16x16x128xf32> to vector<256x128xf32>
    %c768 = arith.constant 768 : index
    %c0_77 = arith.constant 0 : index
    %61 = vector.load %arg4[%c768, %c0_77] : memref<1152x128xf32, #tpu.memory_space<vmem>>, vector<128x128xf32>
    %cst_78 = arith.constant dense<0.000000e+00> : vector<256x128xf32>
    %62 = tpu.matmul %60, %61, %cst_78 {dimension_numbers = #tpu.dot_dimension_numbers<[1], [0], [0], [1], [0, 0, 1, 1], [], []>} : vector<256x128xf32>, vector<128x128xf32>, vector<256x128xf32> -> vector<256x128xf32>
    %c0_79 = arith.constant 0 : index
    %c0_80 = arith.constant 0 : index
    %63 = vector.load %arg8[%c0_79, %c0_80] : memref<256x128xf32, #tpu.memory_space<vmem>>, vector<256x128xf32>
    %64 = arith.addf %63, %62 : vector<256x128xf32>
    %c0_81 = arith.constant 0 : index
    %c0_82 = arith.constant 0 : index
    %65 = vector.load %arg8[%c0_81, %c0_82] : memref<256x128xf32, #tpu.memory_space<vmem>>, vector<256x128xf32>
    tpu.vector_store %arg8[%c0_81, %c0_82], %64 {strides = array<i32>} : memref<256x128xf32, #tpu.memory_space<vmem>>, vector<256x128xf32>,
    %c2_83 = arith.constant 2 : index
    %c1_84 = arith.constant 1 : index
    %c0_85 = arith.constant 0 : index
    %66 = vector.load %arg7[%c2_83, %c1_84, %c0_85] : memref<18x18x128xf32, #tpu.memory_space<vmem>>, vector<16x16x128xf32>
    %67 = vector.shape_cast %66 : vector<16x16x128xf32> to vector<256x128xf32>
    %c896 = arith.constant 896 : index
    %c0_86 = arith.constant 0 : index
    %68 = vector.load %arg4[%c896, %c0_86] : memref<1152x128xf32, #tpu.memory_space<vmem>>, vector<128x128xf32>
    %cst_87 = arith.constant dense<0.000000e+00> : vector<256x128xf32>
    %69 = tpu.matmul %67, %68, %cst_87 {dimension_numbers = #tpu.dot_dimension_numbers<[1], [0], [0], [1], [0, 0, 1, 1], [], []>} : vector<256x128xf32>, vector<128x128xf32>, vector<256x128xf32> -> vector<256x128xf32>
    %c0_88 = arith.constant 0 : index
    %c0_89 = arith.constant 0 : index
    %70 = vector.load %arg8[%c0_88, %c0_89] : memref<256x128xf32, #tpu.memory_space<vmem>>, vector<256x128xf32>
    %71 = arith.addf %70, %69 : vector<256x128xf32>
    %c0_90 = arith.constant 0 : index
    %c0_91 = arith.constant 0 : index
    %72 = vector.load %arg8[%c0_90, %c0_91] : memref<256x128xf32, #tpu.memory_space<vmem>>, vector<256x128xf32>
    tpu.vector_store %arg8[%c0_90, %c0_91], %71 {strides = array<i32>} : memref<256x128xf32, #tpu.memory_space<vmem>>, vector<256x128xf32>,
    %c2_92 = arith.constant 2 : index
    %c2_93 = arith.constant 2 : index
    %c0_94 = arith.constant 0 : index
    %73 = vector.load %arg7[%c2_92, %c2_93, %c0_94] : memref<18x18x128xf32, #tpu.memory_space<vmem>>, vector<16x16x128xf32>
    %74 = vector.shape_cast %73 : vector<16x16x128xf32> to vector<256x128xf32>
    %c1024 = arith.constant 1024 : index
    %c0_95 = arith.constant 0 : index
    %75 = vector.load %arg4[%c1024, %c0_95] : memref<1152x128xf32, #tpu.memory_space<vmem>>, vector<128x128xf32>
    %cst_96 = arith.constant dense<0.000000e+00> : vector<256x128xf32>
    %76 = tpu.matmul %74, %75, %cst_96 {dimension_numbers = #tpu.dot_dimension_numbers<[1], [0], [0], [1], [0, 0, 1, 1], [], []>} : vector<256x128xf32>, vector<128x128xf32>, vector<256x128xf32> -> vector<256x128xf32>
    %c0_97 = arith.constant 0 : index
    %c0_98 = arith.constant 0 : index
    %77 = vector.load %arg8[%c0_97, %c0_98] : memref<256x128xf32, #tpu.memory_space<vmem>>, vector<256x128xf32>
    %78 = arith.addf %77, %76 : vector<256x128xf32>
    %c0_99 = arith.constant 0 : index
    %c0_100 = arith.constant 0 : index
    %79 = vector.load %arg8[%c0_99, %c0_100] : memref<256x128xf32, #tpu.memory_space<vmem>>, vector<256x128xf32>
    tpu.vector_store %arg8[%c0_99, %c0_100], %78 {strides = array<i32>} : memref<256x128xf32, #tpu.memory_space<vmem>>, vector<256x128xf32>,
    %c0_101 = arith.constant 0 : index
    %c0_102 = arith.constant 0 : index
    %80 = vector.load %arg8[%c0_101, %c0_102] : memref<256x128xf32, #tpu.memory_space<vmem>>, vector<256x128xf32>
    %cst_103 = arith.constant dense<0.000000e+00> : vector<128xf32>
    %81 = vector.multi_reduction <add>, %80, %cst_103 [0] : vector<256x128xf32> to vector<128xf32>
    %82 = vector.shape_cast %81 : vector<128xf32> to vector<1x128xf32>
    %83 = vector.shape_cast %82 : vector<1x128xf32> to vector<1x1x128xf32>
    %c0_104 = arith.constant 0 : index
    %c0_105 = arith.constant 0 : index
    %c0_106 = arith.constant 0 : index
    %84 = vector.load %arg6[%c0_104, %c0_105, %c0_106] : memref<1x2x128xf32, #tpu.memory_space<vmem>>, vector<1x1x128xf32>
    tpu.vector_store %arg6[%c0_104, %c0_105, %c0_106], %83 {strides = array<i32>} : memref<1x2x128xf32, #tpu.memory_space<vmem>>, vector<1x1x128xf32>,
    %85 = arith.mulf %80, %80 : vector<256x128xf32>
    %cst_107 = arith.constant dense<0.000000e+00> : vector<128xf32>
    %86 = vector.multi_reduction <add>, %85, %cst_107 [0] : vector<256x128xf32> to vector<128xf32>
    %87 = vector.shape_cast %86 : vector<128xf32> to vector<1x128xf32>
    %88 = vector.shape_cast %87 : vector<1x128xf32> to vector<1x1x128xf32>
    %c0_108 = arith.constant 0 : index
    %c1_109 = arith.constant 1 : index
    %c0_110 = arith.constant 0 : index
    %89 = vector.load %arg6[%c0_108, %c1_109, %c0_110] : memref<1x2x128xf32, #tpu.memory_space<vmem>>, vector<1x1x128xf32>
    tpu.vector_store %arg6[%c0_108, %c1_109, %c0_110], %88 {strides = array<i32>} : memref<1x2x128xf32, #tpu.memory_space<vmem>>, vector<1x1x128xf32>,
    %90 = vector.shape_cast %80 : vector<256x128xf32> to vector<1x16x16x128xf32>
    %c0_111 = arith.constant 0 : index
    %c0_112 = arith.constant 0 : index
    %c0_113 = arith.constant 0 : index
    %c0_114 = arith.constant 0 : index
    %91 = vector.load %arg5[%c0_111, %c0_112, %c0_113, %c0_114] : memref<1x16x16x128xf32, #tpu.memory_space<vmem>>, vector<1x16x16x128xf32>
    tpu.vector_store %arg5[%c0_111, %c0_112, %c0_113, %c0_114], %90 {strides = array<i32>} : memref<1x16x16x128xf32, #tpu.memory_space<vmem>>, vector<1x16x16x128xf32>,
    return
  }
  func.func @transform_0(%arg0: i32) -> (i32, i32, i32, i32) {
    %c0_i32 = arith.constant 0 : i32
    %c0_i32_0 = arith.constant 0 : i32
    %c0_i32_1 = arith.constant 0 : i32
    %c0_i32_2 = arith.constant 0 : i32
    return %arg0, %c0_i32, %c0_i32_0, %c0_i32_1 : i32, i32, i32, i32
  }
  func.func @transform_1(%arg0: i32) -> (i32, i32) {
    %c0_i32 = arith.constant 0 : i32
    %c0_i32_0 = arith.constant 0 : i32
    %c0_i32_1 = arith.constant 0 : i32
    return %c0_i32, %c0_i32_0 : i32, i32
  }
  func.func @transform_2(%arg0: i32) -> (i32, i32) {
    %c0_i32 = arith.constant 0 : i32
    %c0_i32_0 = arith.constant 0 : i32
    %c0_i32_1 = arith.constant 0 : i32
    return %c0_i32, %c0_i32_0 : i32, i32
  }
  func.func @transform_3(%arg0: i32) -> (i32, i32) {
    %c0_i32 = arith.constant 0 : i32
    %c0_i32_0 = arith.constant 0 : i32
    %c0_i32_1 = arith.constant 0 : i32
    return %c0_i32, %c0_i32_0 : i32, i32
  }
  func.func @transform_4(%arg0: i32) -> (i32, i32, i32, i32) {
    %c0_i32 = arith.constant 0 : i32
    %c0_i32_0 = arith.constant 0 : i32
    %c0_i32_1 = arith.constant 0 : i32
    %c0_i32_2 = arith.constant 0 : i32
    return %arg0, %c0_i32, %c0_i32_0, %c0_i32_1 : i32, i32, i32, i32
  }
  func.func @transform_5(%arg0: i32) -> (i32, i32, i32) {
    %c0_i32 = arith.constant 0 : i32
    %c0_i32_0 = arith.constant 0 : i32
    %c0_i32_1 = arith.constant 0 : i32
    return %arg0, %c0_i32, %c0_i32_0 : i32, i32, i32
  }
}

</mosaic_0001>

<bundles_post_ra>
// kernel: bottleneck_forward.6
= control target key start
LH: loop header
LB: loop body
LE: loop exit
PB: predicated region body
PF: predicated region fallthrough
CT: control target
= control target key end

     0   :  { %s1208_s18 = smov 0   ;;  %s1210_s19 = smov 0   ;;  %s1520_s0 = inlined_call_operand.vmem [shape: f32[2,16,16,128], index: 0, kind: input, shape index: {}]   ;;  %s1521_s1 = inlined_call_operand.vmem [shape: f32[1,128], index: 1, kind: input, shape index: {}]   ;;  %s1522_s2 = inlined_call_operand.vmem [shape: f32[1,128], index: 2, kind: input, shape index: {}]   ;;  %s1523_s3 = inlined_call_operand.vmem [shape: f32[128,128], index: 3, kind: input, shape index: {}]   ;;  %s1524_s4 = inlined_call_operand.vmem [shape: f32[2,16,16,128], index: 4, kind: output, shape index: {0}]   ;;  %s1525_s5 = inlined_call_operand.vmem [shape: f32[2,2,128], index: 5, kind: output, shape index: {1}]  }
   0x1   :  { %s1212_s20 = smov 0  }
   0x2 LB: > { %s28_s21 = sadd.s32 1, %s1172_s19  ;;  %p942_p0 = scmp.ge.s32.totalorder %s1176_s20, 1  ;;  %s1176_s20 = sphi %s1212_s20, %s16_s20   ;;  %s1172_s19 = sphi %s1210_s19, %s1527_s19   ;;  %s1168_s18 = sphi %s1208_s18, %s1526_s18  }
   0x3   : > { %p30_p1 = scmp.ge.s32.totalorder %s28_s21, 2  ;;  %p214_p2 = scmp.lt.s32.totalorder %s1176_s20, 3 }
   0x5   : > { %s1529_s21 = smov (%p30_p1, %s28_s21), 0  ;;  %p215_p3 = pnand %p942_p0, %p214_p2 }
   0x6   : > { %v427_v0 = vld [vmem:[%s1523_s3] sm:$0xff] (!%p215_p3)  ;;  %v428_v1 = vld [vmem:[%s1523_s3 + $0x8] sm:$0xff] (!%p215_p3)  ;;  %v429_v2 = vld [vmem:[%s1523_s3 + $0x10] sm:$0xff] (!%p215_p3)  ;;  %p258_p4 = scmp.lt.s32.totalorder (!%p215_p3), %s1168_s18, 1 }
   0x7   : > { %218 = sbr.rel (%p215_p3) target bundleno = 333 (0x14d), region = 36  ;;  %v1082_v3 = vpack.c.bf16 (!%p215_p3), %v428_v1, %v427_v0  ;;  %v430_v4 = vld [vmem:[%s1523_s3 + $0x18] sm:$0xff] (!%p215_p3)  ;;  %v431_v6 = vld [vmem:[%s1523_s3 + $0x20] sm:$0xff] (!%p215_p3)  ;;  %v432_v7 = vld [vmem:[%s1523_s3 + $0x28] sm:$0xff] (!%p215_p3) }
   0x8   : > { %v1086_v5 = vpack.c.bf16 (!%p215_p3), %v430_v4, %v429_v2  ;;  %v1090_v8 = vpack.c.bf16 (!%p215_p3), %v432_v7, %v431_v6  ;;  %v433_v9 = vld [vmem:[%s1523_s3 + $0x30] sm:$0xff] (!%p215_p3)  ;;  %v1260_v10 = vld [vmem:[%s1521_s1] ss:$0 sm:$0xff] (!%p215_p3)  ;;  %v434_v11 = vld [vmem:[%s1523_s3 + $0x38] sm:$0xff] (!%p215_p3) }
   0x9   : > { %1083 = vmatprep.subr.bf16.mxu0 (!%p215_p3), %v1082_v3  ;;  %1114 = vmatprep.subr.bf16.mxu1 (!%p215_p3), %v1082_v3  ;;  %v1269_v13 = vld [vmem:[%s1522_s2] ss:$0 sm:$0xff] (!%p215_p3)  ;;  %v1094_v15 = vpack.c.bf16 (!%p215_p3), %v434_v11, %v433_v9  ;;  %v436_v18 = vld [vmem:[%s1523_s3 + $0x48] sm:$0xff] (!%p215_p3)  ;;  %v437_v21 = vld [vmem:[%s1523_s3 + $0x50] sm:$0xff] (!%p215_p3) }
   0xa   : > { %1085 = vmatpush3.bf16.msra.mxu0 (!%p215_p3), %v1082_v3  ;;  %1122 = vmatpush3.bf16.msra.mxu1 (!%p215_p3), %v1082_v3  ;;  %v435_v17 = vld [vmem:[%s1523_s3 + $0x40] sm:$0xff] (!%p215_p3)  ;;  %v438_v22 = vld [vmem:[%s1523_s3 + $0x58] sm:$0xff] (!%p215_p3)  ;;  %v440_v26 = vld [vmem:[%s1523_s3 + $0x68] sm:$0xff] (!%p215_p3) }
   0xb   : > { %1087 = vmatprep.subr.bf16.mxu0 (!%p215_p3), %v1086_v5  ;;  %1115 = vmatprep.subr.bf16.mxu1 (!%p215_p3), %v1086_v5  ;;  %v1098_v20 = vpack.c.bf16 (!%p215_p3), %v436_v18, %v435_v17  ;;  %v1102_v24 = vpack.c.bf16 (!%p215_p3), %v438_v22, %v437_v21  ;;  %v439_v25 = vld [vmem:[%s1523_s3 + $0x60] sm:$0xff] (!%p215_p3)  ;;  %v441_v34 = vld [vmem:[%s1523_s3 + $0x70] sm:$0xff] (!%p215_p3)  ;;  %v442_v35 = vld [vmem:[%s1523_s3 + $0x78] sm:$0xff] (!%p215_p3) }
   0xc   : > { %v1106_v30 = vpack.c.bf16 (!%p215_p3), %v440_v26, %v439_v25  ;;  %v1110_v44 = vpack.c.bf16 (!%p215_p3), %v442_v35, %v441_v34 }
   0xe   : > { %s1531_s18 = smov (!%p258_p4, %s1168_s18), 1  ;;  %1089 = vmatpush3.bf16.msra.mxu0 %v1086_v5  ;;  %1123 = vmatpush3.bf16.msra.mxu1 %v1086_v5 }
   0xf   : > { %s952_s9 = sshll.u32 %s1531_s18, 8  ;;  %1091 = vmatprep.subr.bf16.mxu0 %v1090_v8  ;;  %1116 = vmatprep.subr.bf16.mxu1 %v1090_v8 }
  0x10   : > { %s1255_s14 = scalar_lea.vmem %s1520_s0, %s952_s9  ;;  %s1395_s23 = scalar_lea.vmem %s1524_s4, %s952_s9 }
  0x11   : > { %v285_v12 = vld [vmem:[%s1255_s14] sm:$0xff]  ;;  %v286_v28 = vld [vmem:[%s1255_s14 + $0x8] sm:$0xff]  ;;  %v287_v31 = vld [vmem:[%s1255_s14 + $0x10] sm:$0xff]  ;;  %s947_s9 = sshll.u32 %s1531_s18, 1 }
  0x12   : > { %v324_v14 = vmul.f32 %v1260_v10, %v285_v12  ;;  %1093 = vmatpush3.bf16.msra.mxu0 %v1090_v8  ;;  %1124 = vmatpush3.bf16.msra.mxu1 %v1090_v8  ;;  %v301_v23 = vld [vmem:[%s1255_s14 + $0x80] sm:$0xff]  ;;  %v302_v29 = vld [vmem:[%s1255_s14 + $0x88] sm:$0xff]  ;;  %v303_v33 = vld [vmem:[%s1255_s14 + $0x90] sm:$0xff]  ;;  %v325_v36 = vmul.f32 %v1260_v10, %v286_v28  ;;  %v326_v41 = vmul.f32 %v1260_v10, %v287_v31  ;;  %s283_s26 = scalar_lea.vmem %s1525_s5, %s947_s9 }
  0x13   : > { %1095 = vmatprep.subr.bf16.mxu0 %v1094_v15  ;;  %1117 = vmatprep.subr.bf16.mxu1 %v1094_v15  ;;  %v340_v27 = vmul.f32 %v1260_v10, %v301_v23  ;;  %v288_v37 = vld [vmem:[%s1255_s14 + $0x18] sm:$0xff]  ;;  %v289_v38 = vld [vmem:[%s1255_s14 + $0x20] sm:$0xff]  ;;  %v341_v40 = vmul.f32 %v1260_v10, %v302_v29  ;;  %v342_v42 = vmul.f32 %v1260_v10, %v303_v33  ;;  %v290_v49 = vld [vmem:[%s1255_s14 + $0x28] sm:$0xff] }
  0x14   : > { %v363_v16 = vadd.f32 %v1269_v13, %v324_v14  ;;  %v304_v43 = vld [vmem:[%s1255_s14 + $0x98] sm:$0xff]  ;;  %v305_v45 = vld [vmem:[%s1255_s14 + $0xa0] sm:$0xff]  ;;  %v327_v46 = vmul.f32 %v1260_v10, %v288_v37  ;;  %v328_v47 = vmul.f32 %v1260_v10, %v289_v38  ;;  %v364_v48 = vadd.f32 %v1269_v13, %v325_v36  ;;  %v291_v50 = vld [vmem:[%s1255_s14 + $0x30] sm:$0xff] }
  0x15   : > { %v379_v32 = vadd.f32 %v1269_v13, %v340_v27  ;;  %v380_v51 = vadd.f32 %v1269_v13, %v341_v40  ;;  %v343_v52 = vmul.f32 %v1260_v10, %v304_v43  ;;  %v365_v53 = vadd.f32 %v1269_v13, %v326_v41  ;;  %v306_v56 = vld [vmem:[%s1255_s14 + $0xa8] sm:$0xff]  ;;  %v307_v57 = vld [vmem:[%s1255_s14 + $0xb0] sm:$0xff]  ;;  %v292_v63 = vld [vmem:[%s1255_s14 + $0x38] sm:$0xff] }
  0x16   : > { %v395_v19 = vmax.f32 %v363_v16, 0.0  ;;  %1097 = vmatpush3.bf16.msra.mxu0 %v1094_v15  ;;  %1125 = vmatpush3.bf16.msra.mxu1 %v1094_v15  ;;  %v381_v54 = vadd.f32 %v1269_v13, %v342_v42  ;;  %v344_v55 = vmul.f32 %v1260_v10, %v305_v45  ;;  %v366_v58 = vadd.f32 %v1269_v13, %v327_v46  ;;  %v308_v7 = vld [vmem:[%s1255_s14 + $0xb8] sm:$0xff]  ;;  %v293_v8 = vld [vmem:[%s1255_s14 + $0x40] sm:$0xff]  ;;  %v294_v17 = vld [vmem:[%s1255_s14 + $0x48] sm:$0xff] }
  0x17   : > { %1099 = vmatprep.subr.bf16.mxu0 %v1098_v20  ;;  %1118 = vmatprep.subr.bf16.mxu1 %v1098_v20  ;;  %v411_v39 = vmax.f32 %v379_v32, 0.0  ;;  %v367_v59 = vadd.f32 %v1269_v13, %v328_v47  ;;  %v329_v60 = vmul.f32 %v1260_v10, %v290_v49  ;;  %v330_v61 = vmul.f32 %v1260_v10, %v291_v50  ;;  %v309_v9 = vld [vmem:[%s1255_s14 + $0xc0] sm:$0xff]  ;;  %v295_v22 = vld [vmem:[%s1255_s14 + $0x50] sm:$0xff]  ;;  %v310_v26 = vld [vmem:[%s1255_s14 + $0xc8] sm:$0xff] }
  0x18   : > { %1034 = vmatprep.mubr.f32.mxu0 %v395_v19  ;;  %v396_v62 = vmax.f32 %v364_v48, 0.0  ;;  %v412_v0 = vmax.f32 %v380_v51, 0.0  ;;  %v382_v1 = vadd.f32 %v1269_v13, %v343_v52  ;;  %v345_v2 = vmul.f32 %v1260_v10, %v306_v56  ;;  %v311_v27 = vld [vmem:[%s1255_s14 + $0xd0] sm:$0xff]  ;;  %v296_v33 = vld [vmem:[%s1255_s14 + $0x58] sm:$0xff]  ;;  %v297_v34 = vld [vmem:[%s1255_s14 + $0x60] sm:$0xff] }
  0x19   : > { %1058 = vmatprep.mubr.f32.mxu1 %v411_v39  ;;  %v397_v3 = vmax.f32 %v365_v53, 0.0  ;;  %v413_v4 = vmax.f32 %v381_v54, 0.0  ;;  %v383_v5 = vadd.f32 %v1269_v13, %v344_v55  ;;  %v346_v6 = vmul.f32 %v1260_v10, %v307_v57  ;;  %v312_v42 = vld [vmem:[%s1255_s14 + $0xd8] sm:$0xff]  ;;  %v313_v43 = vld [vmem:[%s1255_s14 + $0xe0] sm:$0xff]  ;;  %v298_v49 = vld [vmem:[%s1255_s14 + $0x68] sm:$0xff] }
  0x1a   : > { %1101 = vmatpush3.bf16.msra.mxu0 %v1098_v20  ;;  %1126 = vmatpush3.bf16.msra.mxu1 %v1098_v20  ;;  %v398_v11 = vmax.f32 %v366_v58, 0.0  ;;  %v368_v12 = vadd.f32 %v1269_v13, %v329_v60  ;;  %v369_v14 = vadd.f32 %v1269_v13, %v330_v61  ;;  %v331_v15 = vmul.f32 %v1260_v10, %v292_v63  ;;  %v299_v54 = vld [vmem:[%s1255_s14 + $0x70] sm:$0xff]  ;;  %v314_v58 = vld [vmem:[%s1255_s14 + $0xe8] sm:$0xff] }
  0x1b   : > { %1103 = vmatprep.subr.bf16.mxu0 %v1102_v24  ;;  %1119 = vmatprep.subr.bf16.mxu1 %v1102_v24  ;;  %v399_v16 = vmax.f32 %v367_v59, 0.0  ;;  %v414_v18 = vmax.f32 %v382_v1, 0.0  ;;  %v384_v19 = vadd.f32 %v1269_v13, %v345_v2  ;;  %v347_v20 = vmul.f32 %v1260_v10, %v308_v7  ;;  %v315_v59 = vld [vmem:[%s1255_s14 + $0xf0] sm:$0xff] }
  0x1c   : > { %v332_v21 = vmul.f32 %v1260_v10, %v293_v8  ;;  %v415_v23 = vmax.f32 %v383_v5, 0.0  ;;  %v348_v25 = vmul.f32 %v1260_v10, %v309_v9  ;;  %v400_v28 = vmax.f32 %v368_v12, 0.0  ;;  %v300_v5 = vld [vmem:[%s1255_s14 + $0x78] sm:$0xff] }
  0x1d   : > { %v401_v29 = vmax.f32 %v369_v14, 0.0  ;;  %v333_v31 = vmul.f32 %v1260_v10, %v294_v17  ;;  %v334_v32 = vmul.f32 %v1260_v10, %v295_v22  ;;  %v416_v35 = vmax.f32 %v384_v19, 0.0  ;;  %v316_v9 = vld [vmem:[%s1255_s14 + $0xf8] sm:$0xff] }
  0x1e   : > { %1105 = vmatpush3.bf16.msra.mxu0 %v1102_v24  ;;  %1127 = vmatpush3.bf16.msra.mxu1 %v1102_v24  ;;  %v385_v24 = vadd.f32 %v1269_v13, %v346_v6  ;;  %v386_v36 = vadd.f32 %v1269_v13, %v347_v20  ;;  %v349_v37 = vmul.f32 %v1260_v10, %v310_v26 }
  0x1f   : > { %1107 = vmatprep.subr.bf16.mxu0 %v1106_v30  ;;  %1120 = vmatprep.subr.bf16.mxu1 %v1106_v30  ;;  %v371_v38 = vadd.f32 %v1269_v13, %v332_v21  ;;  %v387_v40 = vadd.f32 %v1269_v13, %v348_v25  ;;  %v350_v41 = vmul.f32 %v1260_v10, %v311_v27 }
  0x20   : > { %v417_v39 = vmax.f32 %v385_v24, 0.0  ;;  %v372_v45 = vadd.f32 %v1269_v13, %v333_v31  ;;  %v335_v46 = vmul.f32 %v1260_v10, %v296_v33  ;;  %v336_v47 = vmul.f32 %v1260_v10, %v297_v34 }
  0x21   : > { %v373_v48 = vadd.f32 %v1269_v13, %v334_v32  ;;  %v418_v50 = vmax.f32 %v386_v36, 0.0  ;;  %v388_v51 = vadd.f32 %v1269_v13, %v349_v37  ;;  %v351_v52 = vmul.f32 %v1260_v10, %v312_v42 }
  0x22   : > { %1109 = vmatpush3.bf16.msra.mxu0 %v1106_v30  ;;  %1128 = vmatpush3.bf16.msra.mxu1 %v1106_v30  ;;  %v370_v30 = vadd.f32 %v1269_v13, %v331_v15  ;;  %v403_v53 = vmax.f32 %v371_v38, 0.0  ;;  %v419_v55 = vmax.f32 %v387_v40, 0.0  ;;  %v389_v56 = vadd.f32 %v1269_v13, %v350_v41 }
  0x23   : > { %1111 = vmatprep.subr.bf16.mxu0 %v1110_v44  ;;  %1121 = vmatprep.subr.bf16.mxu1 %v1110_v44  ;;  %v352_v57 = vmul.f32 %v1260_v10, %v313_v43  ;;  %v404_v60 = vmax.f32 %v372_v45, 0.0  ;;  %v374_v61 = vadd.f32 %v1269_v13, %v335_v46  ;;  %v337_v63 = vmul.f32 %v1260_v10, %v298_v49 }
  0x24   : > { %v420_v1 = vmax.f32 %v388_v51, 0.0  ;;  %v390_v2 = vadd.f32 %v1269_v13, %v351_v52  ;;  %v421_v6 = vmax.f32 %v389_v56, 0.0  ;;  %v354_v8 = vmul.f32 %v1260_v10, %v315_v59 }
  0x25   : > { %v391_v7 = vadd.f32 %v1269_v13, %v352_v57  ;;  %v376_v12 = vadd.f32 %v1269_v13, %v337_v63  ;;  %v339_v14 = vmul.f32 %v1260_v10, %v300_v5  ;;  %v355_v17 = vmul.f32 %v1260_v10, %v316_v9 }
  0x26   : > { %1113 = vmatpush3.bf16.msra.mxu0 %v1110_v44  ;;  %1129 = vmatpush3.bf16.msra.mxu1 %v1110_v44  ;;  %v402_v44 = vmax.f32 %v370_v30, 0.0  ;;  %v422_v15 = vmax.f32 %v390_v2, 0.0  ;;  %v393_v21 = vadd.f32 %v1269_v13, %v354_v8 }
  0x27   : > { %v423_v20 = vmax.f32 %v391_v7, 0.0  ;;  %v408_v22 = vmax.f32 %v376_v12, 0.0  ;;  %v394_v25 = vadd.f32 %v1269_v13, %v355_v17 }
  0x29   : > { %1035 = vmatmul.mubr.f32.vlgmr.msra.gmra.mrb[0].mxu0 %v396_v62  ;;  %1059 = vmatmul.mubr.f32.vlgmr.msra.gmra.mrb[0].mxu1 %v412_v0  ;;  %v375_v62 = vadd.f32 %v1269_v13, %v336_v47  ;;  %v338_v0 = vmul.f32 %v1260_v10, %v299_v54 }
  0x2a   : > { %1037 = vmatprep.mubr.f32.mxu0 %v397_v3  ;;  %1061 = vmatprep.mubr.f32.mxu1 %v413_v4  ;;  %v353_v3 = vmul.f32 %v1260_v10, %v314_v58  ;;  %v405_v4 = vmax.f32 %v373_v48, 0.0  ;;  %v425_v10 = vmax.f32 %v393_v21, 0.0 }
  0x2b   : > { %v377_v19 = vadd.f32 %v1269_v13, %v338_v0 }
  0x2d   : > { %1038 = vmatmul.mubr.f32.gmra.mrb[2].mxu0 %v398_v11  ;;  %1062 = vmatmul.mubr.f32.gmra.mrb[2].mxu1 %v414_v18  ;;  %v406_v11 = vmax.f32 %v374_v61, 0.0  ;;  %v407_v18 = vmax.f32 %v375_v62, 0.0  ;;  %v409_v26 = vmax.f32 %v377_v19, 0.0 }
  0x2e   : > { %1040 = vmatprep.mubr.f32.mxu0 %v399_v16  ;;  %1064 = vmatprep.mubr.f32.mxu1 %v415_v23  ;;  %v392_v16 = vadd.f32 %v1269_v13, %v353_v3  ;;  %v378_v23 = vadd.f32 %v1269_v13, %v339_v14 }
  0x30   : > { %v424_v24 = vmax.f32 %v392_v16, 0.0  ;;  %v410_v27 = vmax.f32 %v378_v23, 0.0 }
  0x31   : > { %1041 = vmatmul.mubr.f32.gmra.mrb[4].mxu0 %v400_v28  ;;  %1065 = vmatmul.mubr.f32.gmra.mrb[4].mxu1 %v416_v35  ;;  %v426_v28 = vmax.f32 %v394_v25, 0.0 }
  0x32   : > { %1043 = vmatprep.mubr.f32.mxu0 %v401_v29  ;;  %1067 = vmatprep.mubr.f32.mxu1 %v417_v39 }
  0x35   : > { %1044 = vmatmul.mubr.f32.gmra.mrb[6].mxu0 %v402_v44  ;;  %1068 = vmatmul.mubr.f32.gmra.mrb[6].mxu1 %v418_v50 }
  0x36   : > { %1046 = vmatprep.mubr.f32.mxu0 %v403_v53  ;;  %1070 = vmatprep.mubr.f32.mxu1 %v419_v55 }
  0x39   : > { %1047 = vmatmul.mubr.f32.gmra.mrb[8].mxu0 %v404_v60  ;;  %1071 = vmatmul.mubr.f32.gmra.mrb[8].mxu1 %v420_v1 }
  0x3a   : > { %1049 = vmatprep.mubr.f32.mxu0 %v405_v4  ;;  %1073 = vmatprep.mubr.f32.mxu1 %v421_v6 }
  0x3d   : > { %1050 = vmatmul.mubr.f32.gmra.mrb[10].mxu0 %v406_v11  ;;  %1074 = vmatmul.mubr.f32.gmra.mrb[10].mxu1 %v422_v15 }
  0x3e   : > { %1052 = vmatprep.mubr.f32.mxu0 %v407_v18  ;;  %1076 = vmatprep.mubr.f32.mxu1 %v423_v20 }
  0x41   : > { %1053 = vmatmul.mubr.f32.gmra.mrb[12].mxu0 %v408_v22  ;;  %1077 = vmatmul.mubr.f32.gmra.mrb[12].mxu1 %v424_v24 }
  0x42   : > { %1055 = vmatprep.mubr.f32.mxu0 %v409_v26  ;;  %1079 = vmatprep.mubr.f32.mxu1 %v425_v10 }
  0x45   : > { %1056 = vmatmul.mubr.f32.gmra.mrb[14].mxu0 %v410_v27  ;;  %1080 = vmatmul.mubr.f32.gmra.mrb[14].mxu1 %v426_v28 }
  0xfc   : > { %v1036_v13 = vpop.f32.mrb[0].mxu0  ;;  %v1397_v29 = vpop.f32.mrb[0].mxu1 }
  0xfd   : > { %v707_v30 = vmul.f32 %v1036_v13, %v1036_v13  ;;  %777 = vst [vmem:[%s1395_s23 + $0x8] sm:$0xff] %v1036_v13  ;;  %v509_v31 = vpop.f32.mrb[1].mxu0  ;;  %793 = vst [vmem:[%s1395_s23 + $0x88] sm:$0xff] %v1397_v29  ;;  %v1402_v32 = vpop.f32.mrb[1].mxu1 }
  0xfe   : > { %v668_v33 = vadd.f32 %v1036_v13, %v509_v31  ;;  %v706_v34 = vmul.f32 %v509_v31, %v509_v31  ;;  %776 = vst [vmem:[%s1395_s23] sm:$0xff] %v509_v31  ;;  %792 = vst [vmem:[%s1395_s23 + $0x80] sm:$0xff] %v1402_v32 }
 0x100   : > { %v738_v35 = vadd.f32 %v707_v30, %v706_v34  ;;  %v1039_v36 = vpop.f32.mrb[2].mxu0  ;;  %v1407_v37 = vpop.f32.mrb[2].mxu1 }
 0x101   : > { %779 = vst [vmem:[%s1395_s23 + $0x18] sm:$0xff] %v1039_v36  ;;  %v519_v38 = vpop.f32.mrb[3].mxu0  ;;  %795 = vst [vmem:[%s1395_s23 + $0x98] sm:$0xff] %v1407_v37  ;;  %v1412_v39 = vpop.f32.mrb[3].mxu1  ;;  %v709_v42 = vmul.f32 %v1039_v36, %v1039_v36 }
 0x102   : > { %v669_v40 = vadd.f32 %v668_v33, %v519_v38  ;;  %v708_v41 = vmul.f32 %v519_v38, %v519_v38  ;;  %778 = vst [vmem:[%s1395_s23 + $0x10] sm:$0xff] %v519_v38  ;;  %794 = vst [vmem:[%s1395_s23 + $0x90] sm:$0xff] %v1412_v39 }
 0x104   : > { %v739_v43 = vadd.f32 %v738_v35, %v708_v41  ;;  %v1042_v44 = vpop.f32.mrb[4].mxu0  ;;  %v670_v45 = vadd.f32 %v1039_v36, %v669_v40  ;;  %v1417_v46 = vpop.f32.mrb[4].mxu1 }
 0x105   : > { %781 = vst [vmem:[%s1395_s23 + $0x28] sm:$0xff] %v1042_v44  ;;  %v529_v47 = vpop.f32.mrb[5].mxu0  ;;  %797 = vst [vmem:[%s1395_s23 + $0xa8] sm:$0xff] %v1417_v46  ;;  %v1422_v48 = vpop.f32.mrb[5].mxu1  ;;  %v711_v52 = vmul.f32 %v1042_v44, %v1042_v44 }
 0x106   : > { %v671_v49 = vadd.f32 %v670_v45, %v529_v47  ;;  %v710_v50 = vmul.f32 %v529_v47, %v529_v47  ;;  %v740_v51 = vadd.f32 %v739_v43, %v709_v42  ;;  %780 = vst [vmem:[%s1395_s23 + $0x20] sm:$0xff] %v529_v47  ;;  %796 = vst [vmem:[%s1395_s23 + $0xa0] sm:$0xff] %v1422_v48 }
 0x107   : > { %v722_v45 = vmul.f32 %v1402_v32, %v1402_v32 }
 0x108   : > { %v741_v53 = vadd.f32 %v740_v51, %v710_v50  ;;  %v1045_v54 = vpop.f32.mrb[6].mxu0  ;;  %v672_v55 = vadd.f32 %v1042_v44, %v671_v49  ;;  %v1427_v56 = vpop.f32.mrb[6].mxu1  ;;  %v723_v50 = vmul.f32 %v1397_v29, %v1397_v29 }
 0x109   : > { %783 = vst [vmem:[%s1395_s23 + $0x38] sm:$0xff] %v1045_v54  ;;  %v539_v57 = vpop.f32.mrb[7].mxu0  ;;  %799 = vst [vmem:[%s1395_s23 + $0xb8] sm:$0xff] %v1427_v56  ;;  %v1432_v58 = vpop.f32.mrb[7].mxu1  ;;  %v713_v62 = vmul.f32 %v1045_v54, %v1045_v54 }
 0x10a   : > { %v673_v59 = vadd.f32 %v672_v55, %v539_v57  ;;  %v712_v60 = vmul.f32 %v539_v57, %v539_v57  ;;  %v742_v61 = vadd.f32 %v741_v53, %v711_v52  ;;  %782 = vst [vmem:[%s1395_s23 + $0x30] sm:$0xff] %v539_v57  ;;  %798 = vst [vmem:[%s1395_s23 + $0xb0] sm:$0xff] %v1432_v58 }
 0x10b   : > { %v724_v53 = vmul.f32 %v1412_v39, %v1412_v39  ;;  %v725_v57 = vmul.f32 %v1407_v37, %v1407_v37 }
 0x10c   : > { %v743_v63 = vadd.f32 %v742_v61, %v712_v60  ;;  %v1048_v0 = vpop.f32.mrb[8].mxu0  ;;  %v674_v1 = vadd.f32 %v1045_v54, %v673_v59  ;;  %v1437_v2 = vpop.f32.mrb[8].mxu1 }
 0x10d   : > { %785 = vst [vmem:[%s1395_s23 + $0x48] sm:$0xff] %v1048_v0  ;;  %v549_v3 = vpop.f32.mrb[9].mxu0  ;;  %801 = vst [vmem:[%s1395_s23 + $0xc8] sm:$0xff] %v1437_v2  ;;  %v1442_v4 = vpop.f32.mrb[9].mxu1  ;;  %v715_v8 = vmul.f32 %v1048_v0, %v1048_v0 }
 0x10e   : > { %v675_v5 = vadd.f32 %v674_v1, %v549_v3  ;;  %v714_v6 = vmul.f32 %v549_v3, %v549_v3  ;;  %v744_v7 = vadd.f32 %v743_v63, %v713_v62  ;;  %784 = vst [vmem:[%s1395_s23 + $0x40] sm:$0xff] %v549_v3  ;;  %800 = vst [vmem:[%s1395_s23 + $0xc0] sm:$0xff] %v1442_v4 }
 0x110   : > { %v745_v9 = vadd.f32 %v744_v7, %v714_v6  ;;  %v1051_v11 = vpop.f32.mrb[10].mxu0  ;;  %v676_v12 = vadd.f32 %v1048_v0, %v675_v5  ;;  %v1447_v14 = vpop.f32.mrb[10].mxu1 }
 0x111   : > { %787 = vst [vmem:[%s1395_s23 + $0x58] sm:$0xff] %v1051_v11  ;;  %v559_v15 = vpop.f32.mrb[11].mxu0  ;;  %803 = vst [vmem:[%s1395_s23 + $0xd8] sm:$0xff] %v1447_v14  ;;  %v1452_v16 = vpop.f32.mrb[11].mxu1  ;;  %v717_v20 = vmul.f32 %v1051_v11, %v1051_v11 }
 0x112   : > { %v677_v17 = vadd.f32 %v676_v12, %v559_v15  ;;  %v716_v18 = vmul.f32 %v559_v15, %v559_v15  ;;  %v746_v19 = vadd.f32 %v745_v9, %v715_v8  ;;  %786 = vst [vmem:[%s1395_s23 + $0x50] sm:$0xff] %v559_v15  ;;  %802 = vst [vmem:[%s1395_s23 + $0xd0] sm:$0xff] %v1452_v16 }
 0x114   : > { %v747_v21 = vadd.f32 %v746_v19, %v716_v18  ;;  %v1054_v22 = vpop.f32.mrb[12].mxu0  ;;  %v678_v23 = vadd.f32 %v1051_v11, %v677_v17  ;;  %v1457_v24 = vpop.f32.mrb[12].mxu1 }
 0x115   : > { %789 = vst [vmem:[%s1395_s23 + $0x68] sm:$0xff] %v1054_v22  ;;  %v569_v25 = vpop.f32.mrb[13].mxu0  ;;  %805 = vst [vmem:[%s1395_s23 + $0xe8] sm:$0xff] %v1457_v24  ;;  %v649_v26 = vpop.f32.mrb[13].mxu1  ;;  %v719_v13 = vmul.f32 %v1054_v22, %v1054_v22 }
 0x116   : > { %v679_v10 = vadd.f32 %v678_v23, %v569_v25  ;;  %v718_v27 = vmul.f32 %v569_v25, %v569_v25  ;;  %v748_v28 = vadd.f32 %v747_v21, %v717_v20  ;;  %788 = vst [vmem:[%s1395_s23 + $0x60] sm:$0xff] %v569_v25  ;;  %804 = vst [vmem:[%s1395_s23 + $0xe0] sm:$0xff] %v649_v26 }
 0x117   : > { %v735_v21 = vmul.f32 %v1457_v24, %v1457_v24 }
 0x118   : > { %v749_v30 = vadd.f32 %v748_v28, %v718_v27  ;;  %v1057_v31 = vpop.f32.mrb[14].mxu0  ;;  %v680_v33 = vadd.f32 %v1054_v22, %v679_v10  ;;  %v1081_v34 = vpop.f32.mrb[14].mxu1 }
 0x119   : > { %791 = vst [vmem:[%s1395_s23 + $0x78] sm:$0xff] %v1057_v31  ;;  %v579_v35 = vpop.f32.mrb[15].mxu0  ;;  %807 = vst [vmem:[%s1395_s23 + $0xf8] sm:$0xff] %v1081_v34  ;;  %v659_v36 = vpop.f32.mrb[15].mxu1  ;;  %v721_v42 = vmul.f32 %v1057_v31, %v1057_v31  ;;  %v737_v10 = vmul.f32 %v1081_v34, %v1081_v34 }
 0x11a   : > { %v681_v38 = vadd.f32 %v680_v33, %v579_v35  ;;  %v720_v40 = vmul.f32 %v579_v35, %v579_v35  ;;  %v750_v41 = vadd.f32 %v749_v30, %v719_v13  ;;  %790 = vst [vmem:[%s1395_s23 + $0x70] sm:$0xff] %v579_v35  ;;  %806 = vst [vmem:[%s1395_s23 + $0xf0] sm:$0xff] %v659_v36 }
 0x11b   : > { %v736_v23 = vmul.f32 %v659_v36, %v659_v36 }
 0x11c   : > { %v682_v43 = vadd.f32 %v1057_v31, %v681_v38  ;;  %v751_v44 = vadd.f32 %v750_v41, %v720_v40 }
 0x11e   : > { %v752_v47 = vadd.f32 %v751_v44, %v721_v42  ;;  %v683_v49 = vadd.f32 %v682_v43, %v1402_v32  ;;  %v726_v32 = vmul.f32 %v1422_v48, %v1422_v48 }
 0x120   : > { %v753_v51 = vadd.f32 %v752_v47, %v722_v45  ;;  %v684_v52 = vadd.f32 %v1397_v29, %v683_v49  ;;  %v727_v29 = vmul.f32 %v1417_v46, %v1417_v46 }
 0x122   : > { %v685_v54 = vadd.f32 %v684_v52, %v1412_v39  ;;  %v754_v55 = vadd.f32 %v753_v51, %v723_v50  ;;  %v728_v39 = vmul.f32 %v1432_v58, %v1432_v58 }
 0x124   : > { %v755_v59 = vadd.f32 %v754_v55, %v724_v53  ;;  %v686_v60 = vadd.f32 %v1407_v37, %v685_v54  ;;  %v729_v37 = vmul.f32 %v1427_v56, %v1427_v56 }
 0x126   : > { %v687_v61 = vadd.f32 %v686_v60, %v1422_v48  ;;  %v756_v62 = vadd.f32 %v755_v59, %v725_v57  ;;  %v730_v48 = vmul.f32 %v1442_v4, %v1442_v4 }
 0x128   : > { %v757_v63 = vadd.f32 %v756_v62, %v726_v32  ;;  %v688_v0 = vadd.f32 %v1417_v46, %v687_v61  ;;  %v731_v46 = vmul.f32 %v1437_v2, %v1437_v2 }
 0x12a   : > { %v689_v1 = vadd.f32 %v688_v0, %v1432_v58  ;;  %v758_v3 = vadd.f32 %v757_v63, %v727_v29  ;;  %v732_v58 = vmul.f32 %v1452_v16, %v1452_v16 }
 0x12c   : > { %v759_v5 = vadd.f32 %v758_v3, %v728_v39  ;;  %v690_v6 = vadd.f32 %v1427_v56, %v689_v1  ;;  %v733_v56 = vmul.f32 %v1447_v14, %v1447_v14 }
 0x12e   : > { %v691_v7 = vadd.f32 %v690_v6, %v1442_v4  ;;  %v760_v8 = vadd.f32 %v759_v5, %v729_v37  ;;  %v734_v4 = vmul.f32 %v649_v26, %v649_v26 }
 0x130   : > { %v761_v9 = vadd.f32 %v760_v8, %v730_v48  ;;  %v692_v11 = vadd.f32 %v1437_v2, %v691_v7 }
 0x132   : > { %v693_v12 = vadd.f32 %v692_v11, %v1452_v16  ;;  %v762_v15 = vadd.f32 %v761_v9, %v731_v46 }
 0x134   : > { %v763_v17 = vadd.f32 %v762_v15, %v732_v58  ;;  %v694_v18 = vadd.f32 %v1447_v14, %v693_v12 }
 0x136   : > { %v695_v19 = vadd.f32 %v694_v18, %v649_v26  ;;  %v764_v20 = vadd.f32 %v763_v17, %v733_v56 }
 0x138   : > { %v765_v2 = vadd.f32 %v764_v20, %v734_v4  ;;  %v696_v22 = vadd.f32 %v1457_v24, %v695_v19 }
 0x13a   : > { %v697_v25 = vadd.f32 %v696_v22, %v659_v36  ;;  %v766_v16 = vadd.f32 %v765_v2, %v735_v21 }
 0x13c   : > { %v698_v27 = vadd.f32 %v1081_v34, %v697_v25  ;;  %v767_v28 = vadd.f32 %v766_v16, %v736_v23 }
 0x13e   : > { %v699_v13 = vrot.slane %v698_v27, 4  ;;  %v768_v30 = vadd.f32 %v767_v28, %v737_v10 }
 0x140   : > { %v700_v31 = vadd.f32 %v699_v13, %v698_v27  ;;  %v769_v14 = vrot.slane %v768_v30, 4 }
 0x142   : > { %v701_v33 = vrot.slane %v700_v31, 2  ;;  %v770_v26 = vadd.f32 %v769_v14, %v768_v30 }
 0x144   : > { %v702_v35 = vadd.f32 %v701_v33, %v700_v31  ;;  %v771_v38 = vrot.slane %v770_v26, 2 }
 0x146   : > { %v703_v40 = vrot.slane %v702_v35, 1  ;;  %v772_v41 = vadd.f32 %v771_v38, %v770_v26 }
 0x148   : > { %v704_v24 = vadd.f32 %v703_v40, %v702_v35  ;;  %v773_v36 = vrot.slane %v772_v41, 1 }
 0x14a   : > { %705 = vst [vmem:[%s283_s26] sm:$0x1] %v704_v24  ;;  %v774_v34 = vadd.f32 %v773_v36, %v772_v41 }
 0x14c   : > { %775 = vst [vmem:[%s283_s26 + $0x1] sm:$0x1] %v774_v34 }
 0x14d PF: > { %s16_s20 = sadd.s32 1, %s1176_s20   ;;  %s1526_s18 = smov %s1172_s19 }
 0x14e   : > { %p13_p5 = scmp.ge.s32.totalorder %s16_s20, 4   ;;  %s1527_s19 = smov %s1529_s21 }
 0x150   :  { %15 = sbr.rel (!%p13_p5) target bundleno = 2 (0x2), region = 78 }

// kernel: bottleneck_forward.7
= control target key start
LH: loop header
LB: loop body
LE: loop exit
PB: predicated region body
PF: predicated region fallthrough
CT: control target
= control target key end

     0   :  { %s727_s15 = smov 0   ;;  %s729_s16 = smov 0   ;;  %s944_s0 = inlined_call_operand.vmem [shape: f32[2,16,16,128], index: 0, kind: input, shape index: {}]   ;;  %s945_s1 = inlined_call_operand.vmem [shape: f32[2,16,16,128], index: 1, kind: input, shape index: {}]   ;;  %s946_s2 = inlined_call_operand.vmem [shape: f32[1,128], index: 2, kind: input, shape index: {}]   ;;  %s947_s3 = inlined_call_operand.vmem [shape: f32[1,128], index: 3, kind: input, shape index: {}]   ;;  %s948_s4 = inlined_call_operand.vmem [shape: f32[2,16,16,128], index: 4, kind: output, shape index: {}]  }
   0x1   :  { %s731_s17 = smov 0  }
   0x2 LB: > { %s26_s18 = sadd.s32 1, %s696_s16  ;;  %p640_p0 = scmp.ge.s32.totalorder %s700_s17, 1  ;;  %s700_s17 = sphi %s731_s17, %s14_s17   ;;  %s696_s16 = sphi %s729_s16, %s950_s16   ;;  %s692_s15 = sphi %s727_s15, %s949_s15  }
   0x3   : > { %p28_p1 = scmp.ge.s32.totalorder %s26_s18, 2  ;;  %p202_p2 = scmp.lt.s32.totalorder %s700_s17, 3 }
   0x5   : > { %s952_s18 = smov (%p28_p1, %s26_s18), 0  ;;  %p203_p3 = pnand %p640_p0, %p202_p2 }
   0x6   : > { %p249_p4 = scmp.lt.s32.totalorder (!%p203_p3), %s692_s15, 1  ;;  %v750_v0 = vld [vmem:[%s946_s2] ss:$0 sm:$0xff] (!%p203_p3) }
   0x7   : > { %206 = sbr.rel (%p203_p3) target bundleno = 56 (0x38), region = 36  ;;  %v768_v2 = vld [vmem:[%s947_s3] ss:$0 sm:$0xff] (!%p203_p3) }
   0xe   : > { %s954_s15 = smov (!%p249_p4, %s692_s15), 1 }
   0xf   : > { %s745_s19 = sshll.u32 %s954_s15, 8 }
  0x10   : > { %s756_s24 = scalar_lea.vmem %s944_s0, %s745_s19  ;;  %s762_s27 = scalar_lea.vmem %s945_s1, %s745_s19 }
  0x11   : > { %v281_v1 = vld [vmem:[%s756_s24] sm:$0xff]  ;;  %v282_v3 = vld [vmem:[%s756_s24 + $0x8] sm:$0xff]  ;;  %v283_v7 = vld [vmem:[%s756_s24 + $0x10] sm:$0xff]  ;;  %s798_s6 = scalar_lea.vmem %s948_s4, %s745_s19 }
  0x12   : > { %v320_v4 = vmul.f32 %v750_v0, %v281_v1  ;;  %v391_v5 = vld [vmem:[%s762_s27] sm:$0xff]  ;;  %v321_v6 = vmul.f32 %v750_v0, %v282_v3  ;;  %v392_v8 = vld [vmem:[%s762_s27 + $0x8] sm:$0xff]  ;;  %v322_v9 = vmul.f32 %v750_v0, %v283_v7  ;;  %v284_v10 = vld [vmem:[%s756_s24 + $0x18] sm:$0xff] }
  0x13   : > { %v285_v11 = vld [vmem:[%s756_s24 + $0x20] sm:$0xff]  ;;  %v393_v14 = vld [vmem:[%s762_s27 + $0x10] sm:$0xff]  ;;  %v323_v15 = vmul.f32 %v750_v0, %v284_v10  ;;  %v394_v16 = vld [vmem:[%s762_s27 + $0x18] sm:$0xff] }
  0x14   : > { %v359_v12 = vadd.f32 %v768_v2, %v320_v4  ;;  %v360_v13 = vadd.f32 %v768_v2, %v321_v6  ;;  %v324_v17 = vmul.f32 %v750_v0, %v285_v11  ;;  %v286_v18 = vld [vmem:[%s756_s24 + $0x28] sm:$0xff]  ;;  %v361_v19 = vadd.f32 %v768_v2, %v322_v9  ;;  %v395_v20 = vld [vmem:[%s762_s27 + $0x20] sm:$0xff]  ;;  %v287_v22 = vld [vmem:[%s756_s24 + $0x30] sm:$0xff] }
  0x15   : > { %v325_v21 = vmul.f32 %v750_v0, %v286_v18  ;;  %v288_v23 = vld [vmem:[%s756_s24 + $0x38] sm:$0xff]  ;;  %v362_v26 = vadd.f32 %v768_v2, %v323_v15  ;;  %v396_v28 = vld [vmem:[%s762_s27 + $0x28] sm:$0xff]  ;;  %v326_v31 = vmul.f32 %v750_v0, %v287_v22  ;;  %v289_v33 = vld [vmem:[%s756_s24 + $0x40] sm:$0xff] }
  0x16   : > { %v423_v24 = vadd.f32 %v391_v5, %v359_v12  ;;  %v424_v25 = vadd.f32 %v392_v8, %v360_v13  ;;  %v363_v27 = vadd.f32 %v768_v2, %v324_v17  ;;  %v425_v29 = vadd.f32 %v393_v14, %v361_v19  ;;  %v290_v34 = vld [vmem:[%s756_s24 + $0x48] sm:$0xff]  ;;  %v397_v39 = vld [vmem:[%s762_s27 + $0x30] sm:$0xff]  ;;  %v398_v40 = vld [vmem:[%s762_s27 + $0x38] sm:$0xff] }
  0x17   : > { %v364_v30 = vadd.f32 %v768_v2, %v325_v21  ;;  %v327_v32 = vmul.f32 %v750_v0, %v288_v23  ;;  %v426_v37 = vadd.f32 %v394_v16, %v362_v26  ;;  %v291_v41 = vld [vmem:[%s756_s24 + $0x50] sm:$0xff]  ;;  %v365_v44 = vadd.f32 %v768_v2, %v326_v31  ;;  %v292_v46 = vld [vmem:[%s756_s24 + $0x58] sm:$0xff]  ;;  %v293_v47 = vld [vmem:[%s756_s24 + $0x60] sm:$0xff] }
  0x18   : > { %v455_v35 = vmax.f32 %v423_v24, 0.0  ;;  %v456_v36 = vmax.f32 %v424_v25, 0.0  ;;  %v427_v38 = vadd.f32 %v395_v20, %v363_v27  ;;  %v457_v42 = vmax.f32 %v425_v29, 0.0  ;;  %v294_v52 = vld [vmem:[%s756_s24 + $0x68] sm:$0xff]  ;;  %v399_v56 = vld [vmem:[%s762_s27 + $0x40] sm:$0xff]  ;;  %v401_v61 = vld [vmem:[%s762_s27 + $0x50] sm:$0xff] }
  0x19   : > { %v428_v43 = vadd.f32 %v396_v28, %v364_v30  ;;  %v366_v45 = vadd.f32 %v768_v2, %v327_v32  ;;  %v458_v48 = vmax.f32 %v426_v37, 0.0  ;;  %v328_v50 = vmul.f32 %v750_v0, %v289_v33  ;;  %v400_v57 = vld [vmem:[%s762_s27 + $0x48] sm:$0xff]  ;;  %v295_v1 = vld [vmem:[%s756_s24 + $0x70] sm:$0xff]  ;;  %v296_v3 = vld [vmem:[%s756_s24 + $0x78] sm:$0xff] }
  0x1a   : > { %487 = vst [vmem:[%s798_s6] sm:$0xff] %v455_v35  ;;  %488 = vst [vmem:[%s798_s6 + $0x8] sm:$0xff] %v456_v36  ;;  %v459_v49 = vmax.f32 %v427_v38, 0.0  ;;  %v329_v51 = vmul.f32 %v750_v0, %v290_v34  ;;  %v429_v54 = vadd.f32 %v397_v39, %v365_v44  ;;  %v330_v58 = vmul.f32 %v750_v0, %v291_v41  ;;  %v402_v7 = vld [vmem:[%s762_s27 + $0x58] sm:$0xff]  ;;  %v403_v8 = vld [vmem:[%s762_s27 + $0x60] sm:$0xff] }
  0x1b   : > { %489 = vst [vmem:[%s798_s6 + $0x10] sm:$0xff] %v457_v42  ;;  %v460_v53 = vmax.f32 %v428_v43, 0.0  ;;  %v430_v55 = vadd.f32 %v398_v40, %v366_v45  ;;  %490 = vst [vmem:[%s798_s6 + $0x18] sm:$0xff] %v458_v48  ;;  %v367_v59 = vadd.f32 %v768_v2, %v328_v50  ;;  %v331_v62 = vmul.f32 %v750_v0, %v292_v46  ;;  %v404_v14 = vld [vmem:[%s762_s27 + $0x68] sm:$0xff]  ;;  %v297_v19 = vld [vmem:[%s756_s24 + $0x80] sm:$0xff] }
  0x1c   : > { %491 = vst [vmem:[%s798_s6 + $0x20] sm:$0xff] %v459_v49  ;;  %v368_v60 = vadd.f32 %v768_v2, %v329_v51  ;;  %v332_v63 = vmul.f32 %v750_v0, %v293_v47  ;;  %v461_v4 = vmax.f32 %v429_v54, 0.0  ;;  %v369_v6 = vadd.f32 %v768_v2, %v330_v58  ;;  %v298_v20 = vld [vmem:[%s756_s24 + $0x88] sm:$0xff]  ;;  %v405_v25 = vld [vmem:[%s762_s27 + $0x70] sm:$0xff]  ;;  %v406_v26 = vld [vmem:[%s762_s27 + $0x78] sm:$0xff] }
  0x1d   : > { %492 = vst [vmem:[%s798_s6 + $0x28] sm:$0xff] %v460_v53  ;;  %v462_v5 = vmax.f32 %v430_v55, 0.0  ;;  %v333_v9 = vmul.f32 %v750_v0, %v294_v52  ;;  %v431_v10 = vadd.f32 %v399_v56, %v367_v59  ;;  %v370_v12 = vadd.f32 %v768_v2, %v331_v62  ;;  %v299_v27 = vld [vmem:[%s756_s24 + $0x90] sm:$0xff]  ;;  %v300_v32 = vld [vmem:[%s756_s24 + $0x98] sm:$0xff]  ;;  %v301_v33 = vld [vmem:[%s756_s24 + $0xa0] sm:$0xff] }
  0x1e   : > { %v432_v11 = vadd.f32 %v400_v57, %v368_v60  ;;  %v371_v13 = vadd.f32 %v768_v2, %v332_v63  ;;  %493 = vst [vmem:[%s798_s6 + $0x30] sm:$0xff] %v461_v4  ;;  %v433_v15 = vadd.f32 %v401_v61, %v369_v6  ;;  %v334_v17 = vmul.f32 %v750_v0, %v295_v1  ;;  %v302_v38 = vld [vmem:[%s756_s24 + $0xa8] sm:$0xff]  ;;  %v407_v42 = vld [vmem:[%s762_s27 + $0x80] sm:$0xff]  ;;  %v409_v47 = vld [vmem:[%s762_s27 + $0x90] sm:$0xff] }
  0x1f   : > { %494 = vst [vmem:[%s798_s6 + $0x38] sm:$0xff] %v462_v5  ;;  %v372_v16 = vadd.f32 %v768_v2, %v333_v9  ;;  %v335_v18 = vmul.f32 %v750_v0, %v296_v3  ;;  %v463_v21 = vmax.f32 %v431_v10, 0.0  ;;  %v434_v23 = vadd.f32 %v402_v7, %v370_v12  ;;  %v408_v43 = vld [vmem:[%s762_s27 + $0x88] sm:$0xff]  ;;  %v303_v50 = vld [vmem:[%s756_s24 + $0xb0] sm:$0xff]  ;;  %v304_v51 = vld [vmem:[%s756_s24 + $0xb8] sm:$0xff] }
  0x20   : > { %v464_v22 = vmax.f32 %v432_v11, 0.0  ;;  %v435_v24 = vadd.f32 %v403_v8, %v371_v13  ;;  %v465_v28 = vmax.f32 %v433_v15, 0.0  ;;  %v373_v30 = vadd.f32 %v768_v2, %v334_v17  ;;  %v410_v55 = vld [vmem:[%s762_s27 + $0x98] sm:$0xff]  ;;  %v411_v56 = vld [vmem:[%s762_s27 + $0xa0] sm:$0xff]  ;;  %v412_v62 = vld [vmem:[%s762_s27 + $0xa8] sm:$0xff] }
  0x21   : > { %v436_v29 = vadd.f32 %v404_v14, %v372_v16  ;;  %v374_v31 = vadd.f32 %v768_v2, %v335_v18  ;;  %495 = vst [vmem:[%s798_s6 + $0x40] sm:$0xff] %v463_v21  ;;  %v466_v34 = vmax.f32 %v434_v23, 0.0  ;;  %v336_v36 = vmul.f32 %v750_v0, %v297_v19  ;;  %v305_v5 = vld [vmem:[%s756_s24 + $0xc0] sm:$0xff]  ;;  %v306_v6 = vld [vmem:[%s756_s24 + $0xc8] sm:$0xff]  ;;  %v413_v11 = vld [vmem:[%s762_s27 + $0xb0] sm:$0xff] }
  0x22   : > { %496 = vst [vmem:[%s798_s6 + $0x48] sm:$0xff] %v464_v22  ;;  %v467_v35 = vmax.f32 %v435_v24, 0.0  ;;  %v337_v37 = vmul.f32 %v750_v0, %v298_v20  ;;  %497 = vst [vmem:[%s798_s6 + $0x50] sm:$0xff] %v465_v28  ;;  %v437_v40 = vadd.f32 %v405_v25, %v373_v30  ;;  %v338_v44 = vmul.f32 %v750_v0, %v299_v27  ;;  %v414_v12 = vld [vmem:[%s762_s27 + $0xb8] sm:$0xff]  ;;  %v307_v13 = vld [vmem:[%s756_s24 + $0xd0] sm:$0xff] }
  0x23   : > { %v468_v39 = vmax.f32 %v436_v29, 0.0  ;;  %v438_v41 = vadd.f32 %v406_v26, %v374_v31  ;;  %498 = vst [vmem:[%s798_s6 + $0x58] sm:$0xff] %v466_v34  ;;  %v375_v45 = vadd.f32 %v768_v2, %v336_v36  ;;  %v339_v48 = vmul.f32 %v750_v0, %v300_v32  ;;  %v308_v18 = vld [vmem:[%s756_s24 + $0xd8] sm:$0xff]  ;;  %v309_v19 = vld [vmem:[%s756_s24 + $0xe0] sm:$0xff]  ;;  %v310_v24 = vld [vmem:[%s756_s24 + $0xe8] sm:$0xff] }
  0x24   : > { %499 = vst [vmem:[%s798_s6 + $0x60] sm:$0xff] %v467_v35  ;;  %v376_v46 = vadd.f32 %v768_v2, %v337_v37  ;;  %v340_v49 = vmul.f32 %v750_v0, %v301_v33  ;;  %v469_v52 = vmax.f32 %v437_v40, 0.0  ;;  %v377_v54 = vadd.f32 %v768_v2, %v338_v44  ;;  %v415_v28 = vld [vmem:[%s762_s27 + $0xc0] sm:$0xff]  ;;  %v416_v29 = vld [vmem:[%s762_s27 + $0xc8] sm:$0xff]  ;;  %v417_v33 = vld [vmem:[%s762_s27 + $0xd0] sm:$0xff] }
  0x25   : > { %500 = vst [vmem:[%s798_s6 + $0x68] sm:$0xff] %v468_v39  ;;  %v470_v53 = vmax.f32 %v438_v41, 0.0  ;;  %v341_v57 = vmul.f32 %v750_v0, %v302_v38  ;;  %v439_v58 = vadd.f32 %v407_v42, %v375_v45  ;;  %v378_v60 = vadd.f32 %v768_v2, %v339_v48  ;;  %v311_v36 = vld [vmem:[%s756_s24 + $0xf0] sm:$0xff]  ;;  %v312_v37 = vld [vmem:[%s756_s24 + $0xf8] sm:$0xff]  ;;  %v419_v42 = vld [vmem:[%s762_s27 + $0xe0] sm:$0xff] }
  0x26   : > { %v440_v59 = vadd.f32 %v408_v43, %v376_v46  ;;  %v379_v61 = vadd.f32 %v768_v2, %v340_v49  ;;  %501 = vst [vmem:[%s798_s6 + $0x70] sm:$0xff] %v469_v52  ;;  %v441_v63 = vadd.f32 %v409_v47, %v377_v54  ;;  %v342_v3 = vmul.f32 %v750_v0, %v303_v50  ;;  %v418_v41 = vld [vmem:[%s762_s27 + $0xd8] sm:$0xff]  ;;  %v420_v48 = vld [vmem:[%s762_s27 + $0xe8] sm:$0xff] }
  0x27   : > { %502 = vst [vmem:[%s798_s6 + $0x78] sm:$0xff] %v470_v53  ;;  %v380_v1 = vadd.f32 %v768_v2, %v341_v57  ;;  %v343_v4 = vmul.f32 %v750_v0, %v304_v51  ;;  %v471_v7 = vmax.f32 %v439_v58, 0.0  ;;  %v442_v9 = vadd.f32 %v410_v55, %v378_v60  ;;  %v421_v57 = vld [vmem:[%s762_s27 + $0xf0] sm:$0xff]  ;;  %v422_v58 = vld [vmem:[%s762_s27 + $0xf8] sm:$0xff] }
  0x28   : > { %v472_v8 = vmax.f32 %v440_v59, 0.0  ;;  %v443_v10 = vadd.f32 %v411_v56, %v379_v61  ;;  %v473_v14 = vmax.f32 %v441_v63, 0.0  ;;  %v381_v16 = vadd.f32 %v768_v2, %v342_v3 }
  0x29   : > { %v444_v15 = vadd.f32 %v412_v62, %v380_v1  ;;  %v382_v17 = vadd.f32 %v768_v2, %v343_v4  ;;  %503 = vst [vmem:[%s798_s6 + $0x80] sm:$0xff] %v471_v7  ;;  %v474_v20 = vmax.f32 %v442_v9, 0.0  ;;  %v344_v22 = vmul.f32 %v750_v0, %v305_v5 }
  0x2a   : > { %504 = vst [vmem:[%s798_s6 + $0x88] sm:$0xff] %v472_v8  ;;  %v475_v21 = vmax.f32 %v443_v10, 0.0  ;;  %v345_v23 = vmul.f32 %v750_v0, %v306_v6  ;;  %505 = vst [vmem:[%s798_s6 + $0x90] sm:$0xff] %v473_v14  ;;  %v445_v26 = vadd.f32 %v413_v11, %v381_v16  ;;  %v346_v30 = vmul.f32 %v750_v0, %v307_v13 }
  0x2b   : > { %v476_v25 = vmax.f32 %v444_v15, 0.0  ;;  %v446_v27 = vadd.f32 %v414_v12, %v382_v17  ;;  %506 = vst [vmem:[%s798_s6 + $0x98] sm:$0xff] %v474_v20  ;;  %v383_v31 = vadd.f32 %v768_v2, %v344_v22  ;;  %v347_v34 = vmul.f32 %v750_v0, %v308_v18 }
  0x2c   : > { %507 = vst [vmem:[%s798_s6 + $0xa0] sm:$0xff] %v475_v21  ;;  %v384_v32 = vadd.f32 %v768_v2, %v345_v23  ;;  %v348_v35 = vmul.f32 %v750_v0, %v309_v19  ;;  %v477_v38 = vmax.f32 %v445_v26, 0.0  ;;  %v385_v40 = vadd.f32 %v768_v2, %v346_v30 }
  0x2d   : > { %508 = vst [vmem:[%s798_s6 + $0xa8] sm:$0xff] %v476_v25  ;;  %v478_v39 = vmax.f32 %v446_v27, 0.0  ;;  %v349_v43 = vmul.f32 %v750_v0, %v310_v24  ;;  %v447_v44 = vadd.f32 %v415_v28, %v383_v31  ;;  %v386_v46 = vadd.f32 %v768_v2, %v347_v34 }
  0x2e   : > { %v448_v45 = vadd.f32 %v416_v29, %v384_v32  ;;  %v387_v47 = vadd.f32 %v768_v2, %v348_v35  ;;  %509 = vst [vmem:[%s798_s6 + $0xb0] sm:$0xff] %v477_v38  ;;  %v449_v49 = vadd.f32 %v417_v33, %v385_v40  ;;  %v350_v51 = vmul.f32 %v750_v0, %v311_v36 }
  0x2f   : > { %510 = vst [vmem:[%s798_s6 + $0xb8] sm:$0xff] %v478_v39  ;;  %v388_v50 = vadd.f32 %v768_v2, %v349_v43  ;;  %v351_v52 = vmul.f32 %v750_v0, %v312_v37  ;;  %v479_v53 = vmax.f32 %v447_v44, 0.0  ;;  %v450_v55 = vadd.f32 %v418_v41, %v386_v46 }
  0x30   : > { %v480_v54 = vmax.f32 %v448_v45, 0.0  ;;  %v451_v56 = vadd.f32 %v419_v42, %v387_v47  ;;  %v481_v59 = vmax.f32 %v449_v49, 0.0  ;;  %v389_v61 = vadd.f32 %v768_v2, %v350_v51 }
  0x31   : > { %v452_v60 = vadd.f32 %v420_v48, %v388_v50  ;;  %v390_v62 = vadd.f32 %v768_v2, %v351_v52  ;;  %511 = vst [vmem:[%s798_s6 + $0xc0] sm:$0xff] %v479_v53  ;;  %v482_v0 = vmax.f32 %v450_v55, 0.0 }
  0x32   : > { %512 = vst [vmem:[%s798_s6 + $0xc8] sm:$0xff] %v480_v54  ;;  %v483_v63 = vmax.f32 %v451_v56, 0.0  ;;  %513 = vst [vmem:[%s798_s6 + $0xd0] sm:$0xff] %v481_v59  ;;  %v453_v3 = vadd.f32 %v421_v57, %v389_v61 }
  0x33   : > { %v484_v1 = vmax.f32 %v452_v60, 0.0  ;;  %v454_v4 = vadd.f32 %v422_v58, %v390_v62  ;;  %514 = vst [vmem:[%s798_s6 + $0xd8] sm:$0xff] %v482_v0 }
  0x34   : > { %515 = vst [vmem:[%s798_s6 + $0xe0] sm:$0xff] %v483_v63  ;;  %v485_v5 = vmax.f32 %v453_v3, 0.0 }
  0x35   : > { %516 = vst [vmem:[%s798_s6 + $0xe8] sm:$0xff] %v484_v1  ;;  %v486_v6 = vmax.f32 %v454_v4, 0.0 }
  0x36   : > { %517 = vst [vmem:[%s798_s6 + $0xf0] sm:$0xff] %v485_v5 }
  0x37   : > { %518 = vst [vmem:[%s798_s6 + $0xf8] sm:$0xff] %v486_v6 }
  0x38 PF: > { %s14_s17 = sadd.s32 1, %s700_s17   ;;  %s949_s15 = smov %s696_s16 }
  0x39   : > { %p11_p5 = scmp.ge.s32.totalorder %s14_s17, 4   ;;  %s950_s16 = smov %s952_s18 }
  0x3b   :  { %13 = sbr.rel (!%p11_p5) target bundleno = 2 (0x2), region = 69 }

// kernel: bottleneck_forward.4
= control target key start
LH: loop header
LB: loop body
LE: loop exit
PB: predicated region body
PF: predicated region fallthrough
CT: control target
= control target key end

     0   :  { %s1032_s12 = smov 0   ;;  %s1034_s13 = smov 0   ;;  %s1270_s0 = inlined_call_operand.vmem [shape: f32[2,16,16,128], index: 0, kind: input, shape index: {}]   ;;  %s1271_s1 = inlined_call_operand.vmem [shape: f32[128,128], index: 1, kind: input, shape index: {}]   ;;  %s1272_s2 = inlined_call_operand.vmem [shape: f32[2,16,16,128], index: 2, kind: output, shape index: {0}]   ;;  %s1273_s3 = inlined_call_operand.vmem [shape: f32[2,2,128], index: 3, kind: output, shape index: {1}]  }
   0x1   :  { %s1036_s14 = smov 0  }
   0x2 LB: > { %s26_s15 = sadd.s32 1, %s1006_s13  ;;  %p778_p0 = scmp.ge.s32.totalorder %s1010_s14, 1  ;;  %s1010_s14 = sphi %s1036_s14, %s14_s14   ;;  %s1006_s13 = sphi %s1034_s13, %s1275_s13   ;;  %s1002_s12 = sphi %s1032_s12, %s1274_s12  }
   0x3   : > { %p28_p1 = scmp.ge.s32.totalorder %s26_s15, 2  ;;  %p164_p2 = scmp.lt.s32.totalorder %s1010_s14, 3 }
   0x5   : > { %s1277_s15 = smov (%p28_p1, %s26_s15), 0  ;;  %p165_p3 = pnand %p778_p0, %p164_p2 }
   0x6   : > { %v263_v0 = vld [vmem:[%s1271_s1] sm:$0xff] (!%p165_p3)  ;;  %v264_v1 = vld [vmem:[%s1271_s1 + $0x8] sm:$0xff] (!%p165_p3)  ;;  %v265_v2 = vld [vmem:[%s1271_s1 + $0x10] sm:$0xff] (!%p165_p3)  ;;  %p204_p4 = scmp.lt.s32.totalorder (!%p165_p3), %s1002_s12, 1 }
   0x7   : > { %168 = sbr.rel (%p165_p3) target bundleno = 333 (0x14d), region = 28  ;;  %v916_v3 = vpack.c.bf16 (!%p165_p3), %v264_v1, %v263_v0  ;;  %v266_v4 = vld [vmem:[%s1271_s1 + $0x18] sm:$0xff] (!%p165_p3)  ;;  %v267_v6 = vld [vmem:[%s1271_s1 + $0x20] sm:$0xff] (!%p165_p3)  ;;  %v268_v7 = vld [vmem:[%s1271_s1 + $0x28] sm:$0xff] (!%p165_p3) }
   0x8   : > { %v920_v5 = vpack.c.bf16 (!%p165_p3), %v266_v4, %v265_v2  ;;  %v924_v8 = vpack.c.bf16 (!%p165_p3), %v268_v7, %v267_v6  ;;  %v269_v9 = vld [vmem:[%s1271_s1 + $0x30] sm:$0xff] (!%p165_p3)  ;;  %v270_v10 = vld [vmem:[%s1271_s1 + $0x38] sm:$0xff] (!%p165_p3)  ;;  %v271_v13 = vld [vmem:[%s1271_s1 + $0x40] sm:$0xff] (!%p165_p3) }
   0x9   : > { %917 = vmatprep.subr.bf16.mxu0 (!%p165_p3), %v916_v3  ;;  %948 = vmatprep.subr.bf16.mxu1 (!%p165_p3), %v916_v3  ;;  %v928_v12 = vpack.c.bf16 (!%p165_p3), %v270_v10, %v269_v9  ;;  %v272_v14 = vld [vmem:[%s1271_s1 + $0x48] sm:$0xff] (!%p165_p3)  ;;  %v273_v17 = vld [vmem:[%s1271_s1 + $0x50] sm:$0xff] (!%p165_p3)  ;;  %v274_v18 = vld [vmem:[%s1271_s1 + $0x58] sm:$0xff] (!%p165_p3) }
   0xa   : > { %919 = vmatpush3.bf16.msra.mxu0 (!%p165_p3), %v916_v3  ;;  %956 = vmatpush3.bf16.msra.mxu1 (!%p165_p3), %v916_v3  ;;  %v932_v16 = vpack.c.bf16 (!%p165_p3), %v272_v14, %v271_v13  ;;  %v936_v19 = vpack.c.bf16 (!%p165_p3), %v274_v18, %v273_v17  ;;  %v275_v20 = vld [vmem:[%s1271_s1 + $0x60] sm:$0xff] (!%p165_p3)  ;;  %v276_v21 = vld [vmem:[%s1271_s1 + $0x68] sm:$0xff] (!%p165_p3)  ;;  %v277_v23 = vld [vmem:[%s1271_s1 + $0x70] sm:$0xff] (!%p165_p3) }
   0xb   : > { %921 = vmatprep.subr.bf16.mxu0 (!%p165_p3), %v920_v5  ;;  %949 = vmatprep.subr.bf16.mxu1 (!%p165_p3), %v920_v5  ;;  %v940_v22 = vpack.c.bf16 (!%p165_p3), %v276_v21, %v275_v20  ;;  %v278_v24 = vld [vmem:[%s1271_s1 + $0x78] sm:$0xff] (!%p165_p3) }
   0xc   : > { %v944_v25 = vpack.c.bf16 (!%p165_p3), %v278_v24, %v277_v23 }
   0xe   : > { %s1279_s12 = smov (!%p204_p4, %s1002_s12), 1  ;;  %923 = vmatpush3.bf16.msra.mxu0 %v920_v5  ;;  %957 = vmatpush3.bf16.msra.mxu1 %v920_v5 }
   0xf   : > { %s786_s28 = sshll.u32 %s1279_s12, 8  ;;  %925 = vmatprep.subr.bf16.mxu0 %v924_v8  ;;  %950 = vmatprep.subr.bf16.mxu1 %v924_v8 }
  0x10   : > { %s1076_s4 = scalar_lea.vmem %s1270_s0, %s786_s28  ;;  %s1145_s6 = scalar_lea.vmem %s1272_s2, %s786_s28 }
  0x11   : > { %v231_v11 = vld [vmem:[%s1076_s4] sm:$0xff]  ;;  %v232_v26 = vld [vmem:[%s1076_s4 + $0x8] sm:$0xff]  ;;  %v233_v28 = vld [vmem:[%s1076_s4 + $0x10] sm:$0xff]  ;;  %s783_s28 = sshll.u32 %s1279_s12, 1 }
  0x12   : > { %868 = vmatprep.mubr.f32.mxu0 %v231_v11  ;;  %v247_v15 = vld [vmem:[%s1076_s4 + $0x80] sm:$0xff]  ;;  %927 = vmatpush3.bf16.msra.mxu0 %v924_v8  ;;  %v248_v27 = vld [vmem:[%s1076_s4 + $0x88] sm:$0xff]  ;;  %v249_v29 = vld [vmem:[%s1076_s4 + $0x90] sm:$0xff]  ;;  %s229_s8 = scalar_lea.vmem %s1273_s3, %s783_s28 }
  0x13   : > { %958 = vmatpush3.bf16.msra.mxu1 %v924_v8  ;;  %929 = vmatprep.subr.bf16.mxu0 %v928_v12  ;;  %v234_v30 = vld [vmem:[%s1076_s4 + $0x18] sm:$0xff]  ;;  %v235_v32 = vld [vmem:[%s1076_s4 + $0x20] sm:$0xff]  ;;  %v236_v34 = vld [vmem:[%s1076_s4 + $0x28] sm:$0xff] }
  0x14   : > { %951 = vmatprep.subr.bf16.mxu1 %v928_v12  ;;  %892 = vmatprep.mubr.f32.mxu1 %v247_v15  ;;  %v250_v31 = vld [vmem:[%s1076_s4 + $0x98] sm:$0xff]  ;;  %v251_v33 = vld [vmem:[%s1076_s4 + $0xa0] sm:$0xff]  ;;  %v252_v35 = vld [vmem:[%s1076_s4 + $0xa8] sm:$0xff] }
  0x15   : > { %v237_v36 = vld [vmem:[%s1076_s4 + $0x30] sm:$0xff]  ;;  %v238_v38 = vld [vmem:[%s1076_s4 + $0x38] sm:$0xff]  ;;  %v239_v40 = vld [vmem:[%s1076_s4 + $0x40] sm:$0xff] }
  0x16   : > { %931 = vmatpush3.bf16.msra.mxu0 %v928_v12  ;;  %v253_v37 = vld [vmem:[%s1076_s4 + $0xb0] sm:$0xff]  ;;  %v254_v39 = vld [vmem:[%s1076_s4 + $0xb8] sm:$0xff]  ;;  %v255_v41 = vld [vmem:[%s1076_s4 + $0xc0] sm:$0xff] }
  0x17   : > { %959 = vmatpush3.bf16.msra.mxu1 %v928_v12  ;;  %933 = vmatprep.subr.bf16.mxu0 %v932_v16  ;;  %v240_v42 = vld [vmem:[%s1076_s4 + $0x48] sm:$0xff]  ;;  %v241_v44 = vld [vmem:[%s1076_s4 + $0x50] sm:$0xff]  ;;  %v242_v46 = vld [vmem:[%s1076_s4 + $0x58] sm:$0xff] }
  0x18   : > { %952 = vmatprep.subr.bf16.mxu1 %v932_v16  ;;  %v256_v43 = vld [vmem:[%s1076_s4 + $0xc8] sm:$0xff]  ;;  %v257_v45 = vld [vmem:[%s1076_s4 + $0xd0] sm:$0xff]  ;;  %v258_v47 = vld [vmem:[%s1076_s4 + $0xd8] sm:$0xff] }
  0x19   : > { %v243_v48 = vld [vmem:[%s1076_s4 + $0x60] sm:$0xff]  ;;  %v244_v50 = vld [vmem:[%s1076_s4 + $0x68] sm:$0xff]  ;;  %v245_v52 = vld [vmem:[%s1076_s4 + $0x70] sm:$0xff] }
  0x1a   : > { %935 = vmatpush3.bf16.msra.mxu0 %v932_v16  ;;  %v259_v49 = vld [vmem:[%s1076_s4 + $0xe0] sm:$0xff]  ;;  %v260_v51 = vld [vmem:[%s1076_s4 + $0xe8] sm:$0xff]  ;;  %v261_v53 = vld [vmem:[%s1076_s4 + $0xf0] sm:$0xff] }
  0x1b   : > { %960 = vmatpush3.bf16.msra.mxu1 %v932_v16  ;;  %937 = vmatprep.subr.bf16.mxu0 %v936_v19  ;;  %v246_v54 = vld [vmem:[%s1076_s4 + $0x78] sm:$0xff] }
  0x1c   : > { %953 = vmatprep.subr.bf16.mxu1 %v936_v19  ;;  %v262_v55 = vld [vmem:[%s1076_s4 + $0xf8] sm:$0xff] }
  0x1e   : > { %939 = vmatpush3.bf16.msra.mxu0 %v936_v19 }
  0x1f   : > { %961 = vmatpush3.bf16.msra.mxu1 %v936_v19  ;;  %941 = vmatprep.subr.bf16.mxu0 %v940_v22 }
  0x20   : > { %954 = vmatprep.subr.bf16.mxu1 %v940_v22 }
  0x22   : > { %943 = vmatpush3.bf16.msra.mxu0 %v940_v22 }
  0x23   : > { %962 = vmatpush3.bf16.msra.mxu1 %v940_v22  ;;  %945 = vmatprep.subr.bf16.mxu0 %v944_v25 }
  0x24   : > { %955 = vmatprep.subr.bf16.mxu1 %v944_v25 }
  0x26   : > { %947 = vmatpush3.bf16.msra.mxu0 %v944_v25 }
  0x27   : > { %963 = vmatpush3.bf16.msra.mxu1 %v944_v25 }
  0x29   : > { %869 = vmatmul.mubr.f32.vlgmr.msra.gmra.mrb[0].mxu0 %v232_v26 }
  0x2a   : > { %893 = vmatmul.mubr.f32.vlgmr.msra.gmra.mrb[0].mxu1 %v248_v27  ;;  %871 = vmatprep.mubr.f32.mxu0 %v233_v28 }
  0x2b   : > { %895 = vmatprep.mubr.f32.mxu1 %v249_v29 }
  0x2d   : > { %872 = vmatmul.mubr.f32.gmra.mrb[2].mxu0 %v234_v30 }
  0x2e   : > { %896 = vmatmul.mubr.f32.gmra.mrb[2].mxu1 %v250_v31  ;;  %874 = vmatprep.mubr.f32.mxu0 %v235_v32 }
  0x2f   : > { %898 = vmatprep.mubr.f32.mxu1 %v251_v33 }
  0x31   : > { %875 = vmatmul.mubr.f32.gmra.mrb[4].mxu0 %v236_v34 }
  0x32   : > { %899 = vmatmul.mubr.f32.gmra.mrb[4].mxu1 %v252_v35  ;;  %877 = vmatprep.mubr.f32.mxu0 %v237_v36 }
  0x33   : > { %901 = vmatprep.mubr.f32.mxu1 %v253_v37 }
  0x35   : > { %878 = vmatmul.mubr.f32.gmra.mrb[6].mxu0 %v238_v38 }
  0x36   : > { %902 = vmatmul.mubr.f32.gmra.mrb[6].mxu1 %v254_v39  ;;  %880 = vmatprep.mubr.f32.mxu0 %v239_v40 }
  0x37   : > { %904 = vmatprep.mubr.f32.mxu1 %v255_v41 }
  0x39   : > { %881 = vmatmul.mubr.f32.gmra.mrb[8].mxu0 %v240_v42 }
  0x3a   : > { %905 = vmatmul.mubr.f32.gmra.mrb[8].mxu1 %v256_v43  ;;  %883 = vmatprep.mubr.f32.mxu0 %v241_v44 }
  0x3b   : > { %907 = vmatprep.mubr.f32.mxu1 %v257_v45 }
  0x3d   : > { %884 = vmatmul.mubr.f32.gmra.mrb[10].mxu0 %v242_v46 }
  0x3e   : > { %908 = vmatmul.mubr.f32.gmra.mrb[10].mxu1 %v258_v47  ;;  %886 = vmatprep.mubr.f32.mxu0 %v243_v48 }
  0x3f   : > { %910 = vmatprep.mubr.f32.mxu1 %v259_v49 }
  0x41   : > { %887 = vmatmul.mubr.f32.gmra.mrb[12].mxu0 %v244_v50 }
  0x42   : > { %911 = vmatmul.mubr.f32.gmra.mrb[12].mxu1 %v260_v51  ;;  %889 = vmatprep.mubr.f32.mxu0 %v245_v52 }
  0x43   : > { %913 = vmatprep.mubr.f32.mxu1 %v261_v53 }
  0x45   : > { %890 = vmatmul.mubr.f32.gmra.mrb[14].mxu0 %v246_v54 }
  0x46   : > { %914 = vmatmul.mubr.f32.gmra.mrb[14].mxu1 %v262_v55 }
  0xfc   : > { %v870_v56 = vpop.f32.mrb[0].mxu0 }
  0xfd   : > { %v1147_v57 = vpop.f32.mrb[0].mxu1  ;;  %v543_v58 = vmul.f32 %v870_v56, %v870_v56  ;;  %613 = vst [vmem:[%s1145_s6 + $0x8] sm:$0xff] %v870_v56  ;;  %v345_v59 = vpop.f32.mrb[1].mxu0 }
  0xfe   : > { %629 = vst [vmem:[%s1145_s6 + $0x88] sm:$0xff] %v1147_v57  ;;  %v1152_v60 = vpop.f32.mrb[1].mxu1  ;;  %v504_v61 = vadd.f32 %v870_v56, %v345_v59  ;;  %v542_v62 = vmul.f32 %v345_v59, %v345_v59  ;;  %612 = vst [vmem:[%s1145_s6] sm:$0xff] %v345_v59 }
  0xff   : > { %628 = vst [vmem:[%s1145_s6 + $0x80] sm:$0xff] %v1152_v60 }
 0x100   : > { %v574_v63 = vadd.f32 %v543_v58, %v542_v62  ;;  %v873_v0 = vpop.f32.mrb[2].mxu0 }
 0x101   : > { %v1157_v1 = vpop.f32.mrb[2].mxu1  ;;  %615 = vst [vmem:[%s1145_s6 + $0x18] sm:$0xff] %v873_v0  ;;  %v355_v2 = vpop.f32.mrb[3].mxu0  ;;  %v545_v6 = vmul.f32 %v873_v0, %v873_v0 }
 0x102   : > { %631 = vst [vmem:[%s1145_s6 + $0x98] sm:$0xff] %v1157_v1  ;;  %v1162_v3 = vpop.f32.mrb[3].mxu1  ;;  %v505_v4 = vadd.f32 %v504_v61, %v355_v2  ;;  %v544_v5 = vmul.f32 %v355_v2, %v355_v2  ;;  %614 = vst [vmem:[%s1145_s6 + $0x10] sm:$0xff] %v355_v2 }
 0x103   : > { %630 = vst [vmem:[%s1145_s6 + $0x90] sm:$0xff] %v1162_v3 }
 0x104   : > { %v575_v7 = vadd.f32 %v574_v63, %v544_v5  ;;  %v876_v8 = vpop.f32.mrb[4].mxu0  ;;  %v506_v9 = vadd.f32 %v873_v0, %v505_v4 }
 0x105   : > { %v1167_v10 = vpop.f32.mrb[4].mxu1  ;;  %617 = vst [vmem:[%s1145_s6 + $0x28] sm:$0xff] %v876_v8  ;;  %v365_v11 = vpop.f32.mrb[5].mxu0  ;;  %v547_v16 = vmul.f32 %v876_v8, %v876_v8 }
 0x106   : > { %633 = vst [vmem:[%s1145_s6 + $0xa8] sm:$0xff] %v1167_v10  ;;  %v1172_v12 = vpop.f32.mrb[5].mxu1  ;;  %v507_v13 = vadd.f32 %v506_v9, %v365_v11  ;;  %v546_v14 = vmul.f32 %v365_v11, %v365_v11  ;;  %v576_v15 = vadd.f32 %v575_v7, %v545_v6  ;;  %616 = vst [vmem:[%s1145_s6 + $0x20] sm:$0xff] %v365_v11 }
 0x107   : > { %632 = vst [vmem:[%s1145_s6 + $0xa0] sm:$0xff] %v1172_v12  ;;  %v558_v9 = vmul.f32 %v1152_v60, %v1152_v60 }
 0x108   : > { %v577_v17 = vadd.f32 %v576_v15, %v546_v14  ;;  %v879_v18 = vpop.f32.mrb[6].mxu0  ;;  %v508_v19 = vadd.f32 %v876_v8, %v507_v13  ;;  %v559_v14 = vmul.f32 %v1147_v57, %v1147_v57 }
 0x109   : > { %v1177_v20 = vpop.f32.mrb[6].mxu1  ;;  %619 = vst [vmem:[%s1145_s6 + $0x38] sm:$0xff] %v879_v18  ;;  %v375_v21 = vpop.f32.mrb[7].mxu0  ;;  %v549_v26 = vmul.f32 %v879_v18, %v879_v18 }
 0x10a   : > { %635 = vst [vmem:[%s1145_s6 + $0xb8] sm:$0xff] %v1177_v20  ;;  %v1182_v22 = vpop.f32.mrb[7].mxu1  ;;  %v509_v23 = vadd.f32 %v508_v19, %v375_v21  ;;  %v548_v24 = vmul.f32 %v375_v21, %v375_v21  ;;  %v578_v25 = vadd.f32 %v577_v17, %v547_v16  ;;  %618 = vst [vmem:[%s1145_s6 + $0x30] sm:$0xff] %v375_v21 }
 0x10b   : > { %634 = vst [vmem:[%s1145_s6 + $0xb0] sm:$0xff] %v1182_v22  ;;  %v560_v17 = vmul.f32 %v1162_v3, %v1162_v3  ;;  %v561_v21 = vmul.f32 %v1157_v1, %v1157_v1 }
 0x10c   : > { %v579_v27 = vadd.f32 %v578_v25, %v548_v24  ;;  %v882_v28 = vpop.f32.mrb[8].mxu0  ;;  %v510_v29 = vadd.f32 %v879_v18, %v509_v23 }
 0x10d   : > { %v1187_v30 = vpop.f32.mrb[8].mxu1  ;;  %621 = vst [vmem:[%s1145_s6 + $0x48] sm:$0xff] %v882_v28  ;;  %v385_v31 = vpop.f32.mrb[9].mxu0  ;;  %v551_v36 = vmul.f32 %v882_v28, %v882_v28 }
 0x10e   : > { %637 = vst [vmem:[%s1145_s6 + $0xc8] sm:$0xff] %v1187_v30  ;;  %v1192_v32 = vpop.f32.mrb[9].mxu1  ;;  %v511_v33 = vadd.f32 %v510_v29, %v385_v31  ;;  %v550_v34 = vmul.f32 %v385_v31, %v385_v31  ;;  %v580_v35 = vadd.f32 %v579_v27, %v549_v26  ;;  %620 = vst [vmem:[%s1145_s6 + $0x40] sm:$0xff] %v385_v31 }
 0x10f   : > { %636 = vst [vmem:[%s1145_s6 + $0xc0] sm:$0xff] %v1192_v32 }
 0x110   : > { %v581_v37 = vadd.f32 %v580_v35, %v550_v34  ;;  %v885_v38 = vpop.f32.mrb[10].mxu0  ;;  %v512_v39 = vadd.f32 %v882_v28, %v511_v33 }
 0x111   : > { %v1197_v40 = vpop.f32.mrb[10].mxu1  ;;  %623 = vst [vmem:[%s1145_s6 + $0x58] sm:$0xff] %v885_v38  ;;  %v395_v41 = vpop.f32.mrb[11].mxu0  ;;  %v553_v46 = vmul.f32 %v885_v38, %v885_v38 }
 0x112   : > { %639 = vst [vmem:[%s1145_s6 + $0xd8] sm:$0xff] %v1197_v40  ;;  %v1202_v42 = vpop.f32.mrb[11].mxu1  ;;  %v513_v43 = vadd.f32 %v512_v39, %v395_v41  ;;  %v552_v44 = vmul.f32 %v395_v41, %v395_v41  ;;  %v582_v45 = vadd.f32 %v581_v37, %v551_v36  ;;  %622 = vst [vmem:[%s1145_s6 + $0x50] sm:$0xff] %v395_v41 }
 0x113   : > { %638 = vst [vmem:[%s1145_s6 + $0xd0] sm:$0xff] %v1202_v42 }
 0x114   : > { %v583_v47 = vadd.f32 %v582_v45, %v552_v44  ;;  %v888_v48 = vpop.f32.mrb[12].mxu0  ;;  %v514_v49 = vadd.f32 %v885_v38, %v513_v43 }
 0x115   : > { %v1207_v50 = vpop.f32.mrb[12].mxu1  ;;  %625 = vst [vmem:[%s1145_s6 + $0x68] sm:$0xff] %v888_v48  ;;  %v405_v51 = vpop.f32.mrb[13].mxu0  ;;  %v555_v56 = vmul.f32 %v888_v48, %v888_v48 }
 0x116   : > { %641 = vst [vmem:[%s1145_s6 + $0xe8] sm:$0xff] %v1207_v50  ;;  %v485_v52 = vpop.f32.mrb[13].mxu1  ;;  %v515_v53 = vadd.f32 %v514_v49, %v405_v51  ;;  %v554_v54 = vmul.f32 %v405_v51, %v405_v51  ;;  %v584_v55 = vadd.f32 %v583_v47, %v553_v46  ;;  %624 = vst [vmem:[%s1145_s6 + $0x60] sm:$0xff] %v405_v51 }
 0x117   : > { %640 = vst [vmem:[%s1145_s6 + $0xe0] sm:$0xff] %v485_v52  ;;  %v571_v47 = vmul.f32 %v1207_v50, %v1207_v50 }
 0x118   : > { %v585_v58 = vadd.f32 %v584_v55, %v554_v54  ;;  %v891_v59 = vpop.f32.mrb[14].mxu0  ;;  %v516_v61 = vadd.f32 %v888_v48, %v515_v53 }
 0x119   : > { %v915_v62 = vpop.f32.mrb[14].mxu1  ;;  %627 = vst [vmem:[%s1145_s6 + $0x78] sm:$0xff] %v891_v59  ;;  %v415_v63 = vpop.f32.mrb[15].mxu0  ;;  %v557_v6 = vmul.f32 %v891_v59, %v891_v59 }
 0x11a   : > { %643 = vst [vmem:[%s1145_s6 + $0xf8] sm:$0xff] %v915_v62  ;;  %v495_v0 = vpop.f32.mrb[15].mxu1  ;;  %v517_v2 = vadd.f32 %v516_v61, %v415_v63  ;;  %v556_v4 = vmul.f32 %v415_v63, %v415_v63  ;;  %v586_v5 = vadd.f32 %v585_v58, %v555_v56  ;;  %626 = vst [vmem:[%s1145_s6 + $0x70] sm:$0xff] %v415_v63 }
 0x11b   : > { %642 = vst [vmem:[%s1145_s6 + $0xf0] sm:$0xff] %v495_v0  ;;  %v572_v49 = vmul.f32 %v495_v0, %v495_v0  ;;  %v573_v53 = vmul.f32 %v915_v62, %v915_v62 }
 0x11c   : > { %v518_v7 = vadd.f32 %v891_v59, %v517_v2  ;;  %v587_v8 = vadd.f32 %v586_v5, %v556_v4 }
 0x11e   : > { %v588_v11 = vadd.f32 %v587_v8, %v557_v6  ;;  %v519_v13 = vadd.f32 %v518_v7, %v1152_v60  ;;  %v562_v60 = vmul.f32 %v1172_v12, %v1172_v12 }
 0x120   : > { %v589_v15 = vadd.f32 %v588_v11, %v558_v9  ;;  %v520_v16 = vadd.f32 %v1147_v57, %v519_v13  ;;  %v563_v57 = vmul.f32 %v1167_v10, %v1167_v10 }
 0x122   : > { %v521_v18 = vadd.f32 %v520_v16, %v1162_v3  ;;  %v590_v19 = vadd.f32 %v589_v15, %v559_v14  ;;  %v564_v3 = vmul.f32 %v1182_v22, %v1182_v22 }
 0x124   : > { %v591_v23 = vadd.f32 %v590_v19, %v560_v17  ;;  %v522_v24 = vadd.f32 %v1157_v1, %v521_v18  ;;  %v565_v1 = vmul.f32 %v1177_v20, %v1177_v20 }
 0x126   : > { %v523_v25 = vadd.f32 %v522_v24, %v1172_v12  ;;  %v592_v26 = vadd.f32 %v591_v23, %v561_v21  ;;  %v566_v12 = vmul.f32 %v1192_v32, %v1192_v32 }
 0x128   : > { %v593_v27 = vadd.f32 %v592_v26, %v562_v60  ;;  %v524_v28 = vadd.f32 %v1167_v10, %v523_v25  ;;  %v567_v10 = vmul.f32 %v1187_v30, %v1187_v30 }
 0x12a   : > { %v525_v29 = vadd.f32 %v524_v28, %v1182_v22  ;;  %v594_v31 = vadd.f32 %v593_v27, %v563_v57  ;;  %v568_v22 = vmul.f32 %v1202_v42, %v1202_v42 }
 0x12c   : > { %v595_v33 = vadd.f32 %v594_v31, %v564_v3  ;;  %v526_v34 = vadd.f32 %v1177_v20, %v525_v29  ;;  %v569_v20 = vmul.f32 %v1197_v40, %v1197_v40 }
 0x12e   : > { %v527_v35 = vadd.f32 %v526_v34, %v1192_v32  ;;  %v596_v36 = vadd.f32 %v595_v33, %v565_v1  ;;  %v570_v32 = vmul.f32 %v485_v52, %v485_v52 }
 0x130   : > { %v597_v37 = vadd.f32 %v596_v36, %v566_v12  ;;  %v528_v38 = vadd.f32 %v1187_v30, %v527_v35 }
 0x132   : > { %v529_v39 = vadd.f32 %v528_v38, %v1202_v42  ;;  %v598_v41 = vadd.f32 %v597_v37, %v567_v10 }
 0x134   : > { %v599_v43 = vadd.f32 %v598_v41, %v568_v22  ;;  %v530_v44 = vadd.f32 %v1197_v40, %v529_v39 }
 0x136   : > { %v531_v45 = vadd.f32 %v530_v44, %v485_v52  ;;  %v600_v46 = vadd.f32 %v599_v43, %v569_v20 }
 0x138   : > { %v601_v30 = vadd.f32 %v600_v46, %v570_v32  ;;  %v532_v48 = vadd.f32 %v1207_v50, %v531_v45 }
 0x13a   : > { %v533_v51 = vadd.f32 %v532_v48, %v495_v0  ;;  %v602_v42 = vadd.f32 %v601_v30, %v571_v47 }
 0x13c   : > { %v534_v54 = vadd.f32 %v915_v62, %v533_v51  ;;  %v603_v55 = vadd.f32 %v602_v42, %v572_v49 }
 0x13e   : > { %v535_v56 = vrot.slane %v534_v54, 4  ;;  %v604_v58 = vadd.f32 %v603_v55, %v573_v53 }
 0x140   : > { %v536_v59 = vadd.f32 %v535_v56, %v534_v54  ;;  %v605_v40 = vrot.slane %v604_v58, 4 }
 0x142   : > { %v537_v61 = vrot.slane %v536_v59, 2  ;;  %v606_v52 = vadd.f32 %v605_v40, %v604_v58 }
 0x144   : > { %v538_v63 = vadd.f32 %v537_v61, %v536_v59  ;;  %v607_v2 = vrot.slane %v606_v52, 2 }
 0x146   : > { %v539_v4 = vrot.slane %v538_v63, 1  ;;  %v608_v5 = vadd.f32 %v607_v2, %v606_v52 }
 0x148   : > { %v540_v50 = vadd.f32 %v539_v4, %v538_v63  ;;  %v609_v0 = vrot.slane %v608_v5, 1 }
 0x14a   : > { %541 = vst [vmem:[%s229_s8] sm:$0x1] %v540_v50  ;;  %v610_v62 = vadd.f32 %v609_v0, %v608_v5 }
 0x14c   : > { %611 = vst [vmem:[%s229_s8 + $0x1] sm:$0x1] %v610_v62 }
 0x14d PF: > { %s14_s14 = sadd.s32 1, %s1010_s14   ;;  %s1274_s12 = smov %s1006_s13 }
 0x14e   : > { %p11_p5 = scmp.ge.s32.totalorder %s14_s14, 4   ;;  %s1275_s13 = smov %s1277_s15 }
 0x150   :  { %13 = sbr.rel (!%p11_p5) target bundleno = 2 (0x2), region = 70 }

// kernel: bottleneck_forward.5
= control target key start
LH: loop header
LB: loop body
LE: loop exit
PB: predicated region body
PF: predicated region fallthrough
CT: control target
= control target key end

     0   :  { %s5746_s18 = smov 0   ;;  %s6953_s0 = inlined_call_operand.vmem [shape: f32[2,16,16,128], index: 0, kind: input, shape index: {}]   ;;  %s6954_s1 = inlined_call_operand.vmem [shape: f32[1,128], index: 1, kind: input, shape index: {}]   ;;  %s6955_s2 = inlined_call_operand.vmem [shape: f32[1,128], index: 2, kind: input, shape index: {}]   ;;  %s6956_s3 = inlined_call_operand.vmem [shape: f32[1152,128], index: 3, kind: input, shape index: {}]   ;;  %s6957_s4 = inlined_call_operand.vmem [shape: f32[2,16,16,128], index: 4, kind: output, shape index: {0}]   ;;  %s6958_s5 = inlined_call_operand.vmem [shape: f32[2,2,128], index: 5, kind: output, shape index: {1}]  }
   0x1 LB: > { %s3966_s19 = sadd.s32 4294967295, %s5713_s18   ;;  %p3970_p0 = scmp.ge.s32.totalorder %s5713_s18, 1  ;;  %s5713_s18 = sphi %s5746_s18, %s16_s18  }
   0x2   : > { %p190_p1 = scmp.lt.s32.totalorder %s5713_s18, 3 }
   0x4   : > { %p191_p2 = pnand %p3970_p0, %p190_p1 }
   0x6   : > { %194 = sbr.rel (%p191_p2) target bundleno = 567 (0x237), region = 36 }
   0xd   : > { %v482_v0 = vld [vmem:[%s6956_s3] sm:$0xff]  ;;  %v483_v1 = vld [vmem:[%s6956_s3 + $0x8] sm:$0xff]  ;;  %p5765_p3 = scmp.lt.s32.totalorder %s3966_s19, 1  ;;  %v484_v5 = vld [vmem:[%s6956_s3 + $0x10] sm:$0xff]  ;;  %v5715_v7 = vmov 0.0  }
   0xe   : > { %v1894_v2 = vld [vmem:[%s6956_s3 + $0x200] sm:$0xff]  ;;  %v5134_v3 = vpack.c.bf16 %v483_v1, %v482_v0  ;;  %v1895_v4 = vld [vmem:[%s6956_s3 + $0x208] sm:$0xff]  ;;  %v485_v6 = vld [vmem:[%s6956_s3 + $0x18] sm:$0xff]  ;;  %378 = vst [vmem:[#allocation2] sm:$0xff] %v5715_v7  ;;  %4446 = vmatprep.mubr.f32.mxu1 %v5715_v7 }
   0xf   : > { %379 = vst [vmem:[#allocation2 + $0x8] sm:$0xff] %v5715_v7  ;;  %380 = vst [vmem:[#allocation2 + $0x10] sm:$0x3] %v5715_v7  ;;  %v5817_v8 = vpack.c.bf16 %v1895_v4, %v1894_v2  ;;  %v5138_v9 = vpack.c.bf16 %v485_v6, %v484_v5  ;;  %v1896_v10 = vld [vmem:[%s6956_s3 + $0x210] sm:$0xff]  ;;  %v1897_v11 = vld [vmem:[%s6956_s3 + $0x218] sm:$0xff]  ;;  %s7100_s19 = smov (!%p5765_p3, %s3966_s19), 1 }
  0x10   : > { %382 = vst [vmem:[#allocation2 + $0x198] sm:$0xff] %v5715_v7  ;;  %383 = vst [vmem:[#allocation2 + $0x1a0] sm:$0xff] %v5715_v7  ;;  %v486_v12 = vld [vmem:[%s6956_s3 + $0x20] sm:$0xff]  ;;  %5135 = vmatprep.subr.bf16.mxu1 %v5134_v3  ;;  %v5834_v13 = vpack.c.bf16 %v1897_v11, %v1896_v10  ;;  %v487_v14 = vld [vmem:[%s6956_s3 + $0x28] sm:$0xff]  ;;  %s3980_s22 = sshll.u32 %s7100_s19, 8 }
  0x11   : > { %384 = vst [vmem:[#allocation2 + $0x1a8] sm:$0x3] %v5715_v7  ;;  %386 = vst [vmem:[#allocation2 + $0x18] sm:$0x1] %v5715_v7  ;;  %v1898_v15 = vld [vmem:[%s6956_s3 + $0x220] sm:$0xff]  ;;  %v1899_v16 = vld [vmem:[%s6956_s3 + $0x228] sm:$0xff]  ;;  %5263 = vmatprep.subr.bf16.mxu0 %v5817_v8  ;;  %5137 = vmatpush3.bf16.msra.mxu1 %v5134_v3  ;;  %v5142_v17 = vpack.c.bf16 %v487_v14, %v486_v12  ;;  %s5868_s8 = scalar_lea.vmem %s6953_s0, %s3980_s22  ;;  %s6907_s12 = scalar_lea.vmem %s6957_s4, %s3980_s22 }
  0x12   : > { %387 = vst [vmem:[#allocation2 + $0x30] sm:$0x1] %v5715_v7  ;;  %388 = vst [vmem:[#allocation2 + $0x48] sm:$0x1] %v5715_v7  ;;  %5265 = vmatpush3.bf16.msra.mxu0 %v5817_v8  ;;  %5139 = vmatprep.subr.bf16.mxu1 %v5138_v9  ;;  %v5849_v18 = vpack.c.bf16 %v1899_v16, %v1898_v15  ;;  %v488_v19 = vld [vmem:[%s6956_s3 + $0x30] sm:$0xff]  ;;  %v489_v20 = vld [vmem:[%s6956_s3 + $0x38] sm:$0xff] }
  0x13   : > { %389 = vst [vmem:[#allocation2 + $0x60] sm:$0x1] %v5715_v7  ;;  %390 = vst [vmem:[#allocation2 + $0x78] sm:$0x1] %v5715_v7  ;;  %5267 = vmatprep.subr.bf16.mxu0 %v5834_v13  ;;  %v1900_v21 = vld [vmem:[%s6956_s3 + $0x230] sm:$0xff]  ;;  %v1901_v22 = vld [vmem:[%s6956_s3 + $0x238] sm:$0xff]  ;;  %v5146_v23 = vpack.c.bf16 %v489_v20, %v488_v19 }
  0x14   : > { %391 = vst [vmem:[#allocation2 + $0x90] sm:$0x1] %v5715_v7  ;;  %392 = vst [vmem:[#allocation2 + $0xa8] sm:$0x1] %v5715_v7  ;;  %v490_v24 = vld [vmem:[%s6956_s3 + $0x40] sm:$0xff]  ;;  %v5875_v25 = vpack.c.bf16 %v1901_v22, %v1900_v21  ;;  %v491_v26 = vld [vmem:[%s6956_s3 + $0x48] sm:$0xff] }
  0x15   : > { %393 = vst [vmem:[#allocation2 + $0xc0] sm:$0x1] %v5715_v7  ;;  %394 = vst [vmem:[#allocation2 + $0xd8] sm:$0x1] %v5715_v7  ;;  %5141 = vmatpush3.bf16.msra.mxu1 %v5138_v9  ;;  %v1902_v27 = vld [vmem:[%s6956_s3 + $0x240] sm:$0xff]  ;;  %v1903_v29 = vld [vmem:[%s6956_s3 + $0x248] sm:$0xff]  ;;  %v5150_v35 = vpack.c.bf16 %v491_v26, %v490_v24 }
  0x16   : > { %395 = vst [vmem:[#allocation2 + $0xf0] sm:$0x1] %v5715_v7  ;;  %396 = vst [vmem:[#allocation2 + $0x108] sm:$0x1] %v5715_v7  ;;  %5269 = vmatpush3.bf16.msra.mxu0 %v5834_v13  ;;  %5143 = vmatprep.subr.bf16.mxu1 %v5142_v17  ;;  %v236_v28 = vld [vmem:[%s5868_s8] sm:$0xff]  ;;  %v492_v32 = vld [vmem:[%s6956_s3 + $0x50] sm:$0xff]  ;;  %v5910_v40 = vpack.c.bf16 %v1903_v29, %v1902_v27 }
  0x17   : > { %397 = vst [vmem:[#allocation2 + $0x120] sm:$0x1] %v5715_v7  ;;  %398 = vst [vmem:[#allocation2 + $0x138] sm:$0x1] %v5715_v7  ;;  %5271 = vmatprep.subr.bf16.mxu0 %v5849_v18  ;;  %v5890_v30 = vld [vmem:[%s6954_s1] ss:$0 sm:$0xff] }
  0x18   : > { %399 = vst [vmem:[#allocation2 + $0x150] sm:$0x1] %v5715_v7  ;;  %400 = vst [vmem:[#allocation2 + $0x168] sm:$0x1] %v5715_v7  ;;  %v5895_v31 = vld [vmem:[%s6955_s2] ss:$0 sm:$0xff]  ;;  %v275_v33 = vmul.f32 %v5890_v30, %v236_v28 }
  0x19   : > { %401 = vst [vmem:[#allocation2 + $0x180] sm:$0x1] %v5715_v7  ;;  %402 = vst [vmem:[#allocation2 + $0x29] sm:$0x1] %v5715_v7  ;;  %5145 = vmatpush3.bf16.msra.mxu1 %v5142_v17  ;;  %v237_v34 = vld [vmem:[%s5868_s8 + $0x8] sm:$0xff]  ;;  %v493_v36 = vld [vmem:[%s6956_s3 + $0x58] sm:$0xff] }
  0x1a   : > { %403 = vst [vmem:[#allocation2 + $0x41] sm:$0x1] %v5715_v7  ;;  %404 = vst [vmem:[#allocation2 + $0x59] sm:$0x1] %v5715_v7  ;;  %5273 = vmatpush3.bf16.msra.mxu0 %v5849_v18  ;;  %5147 = vmatprep.subr.bf16.mxu1 %v5146_v23  ;;  %v276_v37 = vmul.f32 %v5890_v30, %v237_v34  ;;  %v238_v38 = vld [vmem:[%s5868_s8 + $0x10] sm:$0xff]  ;;  %v239_v39 = vld [vmem:[%s5868_s8 + $0x18] sm:$0xff]  ;;  %v314_v43 = vadd.f32 %v5895_v31, %v275_v33 }
  0x1b   : > { %405 = vst [vmem:[#allocation2 + $0x71] sm:$0x1] %v5715_v7  ;;  %406 = vst [vmem:[#allocation2 + $0x89] sm:$0x1] %v5715_v7  ;;  %5275 = vmatprep.subr.bf16.mxu0 %v5875_v25  ;;  %v1904_v41 = vld [vmem:[%s6956_s3 + $0x250] sm:$0xff]  ;;  %v1905_v42 = vld [vmem:[%s6956_s3 + $0x258] sm:$0xff]  ;;  %v277_v44 = vmul.f32 %v5890_v30, %v238_v38  ;;  %v278_v45 = vmul.f32 %v5890_v30, %v239_v39  ;;  %v5154_v50 = vpack.c.bf16 %v493_v36, %v492_v32 }
  0x1c   : > { %407 = vst [vmem:[#allocation2 + $0xa1] sm:$0x1] %v5715_v7  ;;  %408 = vst [vmem:[#allocation2 + $0xb9] sm:$0x1] %v5715_v7  ;;  %v240_v46 = vld [vmem:[%s5868_s8 + $0x20] sm:$0xff]  ;;  %v315_v47 = vadd.f32 %v5895_v31, %v276_v37  ;;  %v241_v49 = vld [vmem:[%s5868_s8 + $0x28] sm:$0xff]  ;;  %v5931_v55 = vpack.c.bf16 %v1905_v42, %v1904_v41 }
  0x1d   : > { %409 = vst [vmem:[#allocation2 + $0xd1] sm:$0x1] %v5715_v7  ;;  %410 = vst [vmem:[#allocation2 + $0xe9] sm:$0x1] %v5715_v7  ;;  %v279_v48 = vmul.f32 %v5890_v30, %v240_v46  ;;  %5149 = vmatpush3.bf16.msra.mxu1 %v5146_v23  ;;  %v5925_v51 = vmax.f32 %v314_v43, 0.0  ;;  %v316_v52 = vadd.f32 %v5895_v31, %v277_v44  ;;  %v242_v54 = vld [vmem:[%s5868_s8 + $0x30] sm:$0xff] }
  0x1e   : > { %411 = vst [vmem:[#allocation2 + $0x101] sm:$0x1] %v5715_v7  ;;  %412 = vst [vmem:[#allocation2 + $0x119] sm:$0x1] %v5715_v7  ;;  %v317_v53 = vadd.f32 %v5895_v31, %v278_v45  ;;  %5277 = vmatpush3.bf16.msra.mxu0 %v5875_v25  ;;  %5151 = vmatprep.subr.bf16.mxu1 %v5150_v35  ;;  %v494_v56 = vld [vmem:[%s6956_s3 + $0x60] sm:$0xff]  ;;  %v495_v57 = vld [vmem:[%s6956_s3 + $0x68] sm:$0xff]  ;;  %v280_v60 = vmul.f32 %v5890_v30, %v241_v49 }
  0x1f   : > { %413 = vst [vmem:[#allocation2 + $0x131] sm:$0x1] %v5715_v7  ;;  %414 = vst [vmem:[#allocation2 + $0x149] sm:$0x1] %v5715_v7  ;;  %v5939_v58 = vmax.f32 %v315_v47, 0.0  ;;  %v318_v59 = vadd.f32 %v5895_v31, %v279_v48  ;;  %v243_v61 = vld [vmem:[%s5868_s8 + $0x38] sm:$0xff]  ;;  %5279 = vmatprep.subr.bf16.mxu0 %v5910_v40  ;;  %4766 = vmatprep.mubr.f32.mxu0 %v5925_v51  ;;  %v281_v2 = vmul.f32 %v5890_v30, %v242_v54 }
  0x20   : > { %415 = vst [vmem:[#allocation2 + $0x161] sm:$0x1] %v5715_v7  ;;  %416 = vst [vmem:[#allocation2 + $0x179] sm:$0x1] %v5715_v7  ;;  %v1906_v62 = vld [vmem:[%s6956_s3 + $0x260] sm:$0xff]  ;;  %v1907_v63 = vld [vmem:[%s6956_s3 + $0x268] sm:$0xff]  ;;  %v282_v3 = vmul.f32 %v5890_v30, %v243_v61  ;;  %v319_v6 = vadd.f32 %v5895_v31, %v280_v60  ;;  %v5158_v11 = vpack.c.bf16 %v495_v57, %v494_v56 }
  0x21   : > { %417 = vst [vmem:[#allocation2 + $0x191] sm:$0x1] %v5715_v7  ;;  %7017 = vst [vmem:[#allocation4_spill] sm:$0xff] %v5817_v8  ;;  %v5953_v0 = vmax.f32 %v316_v52, 0.0  ;;  %v5955_v1 = vmax.f32 %v317_v53, 0.0  ;;  %v244_v4 = vld [vmem:[%s5868_s8 + $0x40] sm:$0xff]  ;;  %5153 = vmatpush3.bf16.msra.mxu1 %v5150_v35  ;;  %v320_v12 = vadd.f32 %v5895_v31, %v281_v2  ;;  %v5974_v19 = vpack.c.bf16 %v1907_v63, %v1906_v62 }
  0x22   : > { %7018 = vst [vmem:[#allocation5_spill] sm:$0xff] %v5834_v13  ;;  %7019 = vst [vmem:[#allocation6_spill] sm:$0xff] %v5849_v18  ;;  %v5961_v5 = vmax.f32 %v318_v59, 0.0  ;;  %v283_v9 = vmul.f32 %v5890_v30, %v244_v4  ;;  %v245_v10 = vld [vmem:[%s5868_s8 + $0x48] sm:$0xff]  ;;  %v321_v14 = vadd.f32 %v5895_v31, %v282_v3  ;;  %v246_v16 = vld [vmem:[%s5868_s8 + $0x50] sm:$0xff]  ;;  %5281 = vmatpush3.bf16.msra.mxu0 %v5910_v40  ;;  %5155 = vmatprep.subr.bf16.mxu1 %v5154_v50  ;;  %s3975_s22 = sshll.u32 %s7100_s19, 1 }
  0x23   : > { %7020 = vst [vmem:[#allocation7_spill] sm:$0xff] %v5875_v25  ;;  %7021 = vst [vmem:[#allocation8_spill] sm:$0xff] %v5910_v40  ;;  %v284_v15 = vmul.f32 %v5890_v30, %v245_v10  ;;  %v247_v17 = vld [vmem:[%s5868_s8 + $0x58] sm:$0xff]  ;;  %v496_v20 = vld [vmem:[%s6956_s3 + $0x70] sm:$0xff]  ;;  %v5980_v21 = vmax.f32 %v319_v6, 0.0  ;;  %v285_v23 = vmul.f32 %v5890_v30, %v246_v16  ;;  %5283 = vmatprep.subr.bf16.mxu0 %v5931_v55  ;;  %v5992_v28 = vmax.f32 %v320_v12, 0.0  ;;  %s235_s15 = scalar_lea.vmem %s6958_s5, %s3975_s22 }
  0x24   : > { %7022 = vst [vmem:[#allocation9_spill] sm:$0xff] %v5931_v55  ;;  %418 = vst [vmem:[#allocation2 + $0x19] sm:$0xff] %v5925_v51  ;;  %v322_v22 = vadd.f32 %v5895_v31, %v283_v9  ;;  %v248_v24 = vld [vmem:[%s5868_s8 + $0x60] sm:$0xff]  ;;  %v497_v26 = vld [vmem:[%s6956_s3 + $0x78] sm:$0xff]  ;;  %v5994_v29 = vmax.f32 %v321_v14, 0.0  ;;  %v286_v33 = vmul.f32 %v5890_v30, %v247_v17 }
  0x25   : > { %419 = vst [vmem:[#allocation2 + $0x21] sm:$0xff] %v5939_v58  ;;  %420 = vst [vmem:[#allocation2 + $0x31] sm:$0xff] %v5953_v0  ;;  %v1908_v27 = vld [vmem:[%s6956_s3 + $0x270] sm:$0xff]  ;;  %v323_v32 = vadd.f32 %v5895_v31, %v284_v15  ;;  %v249_v34 = vld [vmem:[%s5868_s8 + $0x68] sm:$0xff]  ;;  %v324_v37 = vadd.f32 %v5895_v31, %v285_v23  ;;  %v287_v38 = vmul.f32 %v5890_v30, %v248_v24  ;;  %5157 = vmatpush3.bf16.msra.mxu1 %v5154_v50 }
  0x26   : > { %421 = vst [vmem:[#allocation2 + $0x39] sm:$0xff] %v5955_v1  ;;  %7023 = vst [vmem:[#allocation10_spill] sm:$0xff] %v5974_v19  ;;  %v1909_v35 = vld [vmem:[%s6956_s3 + $0x278] sm:$0xff]  ;;  %v6003_v36 = vmax.f32 %v322_v22, 0.0  ;;  %v250_v39 = vld [vmem:[%s5868_s8 + $0x70] sm:$0xff]  ;;  %v325_v43 = vadd.f32 %v5895_v31, %v286_v33  ;;  %v288_v44 = vmul.f32 %v5890_v30, %v249_v34  ;;  %5285 = vmatpush3.bf16.msra.mxu0 %v5931_v55  ;;  %5159 = vmatprep.subr.bf16.mxu1 %v5158_v11 }
  0x27   : > { %422 = vst [vmem:[#allocation2 + $0x49] sm:$0xff] %v5961_v5  ;;  %423 = vst [vmem:[#allocation2 + $0x51] sm:$0xff] %v5980_v21  ;;  %v251_v41 = vld [vmem:[%s5868_s8 + $0x78] sm:$0xff]  ;;  %v6011_v42 = vmax.f32 %v323_v32, 0.0  ;;  %v5162_v45 = vpack.c.bf16 %v497_v26, %v496_v20  ;;  %v6017_v46 = vmax.f32 %v324_v37, 0.0  ;;  %v326_v47 = vadd.f32 %v5895_v31, %v287_v38  ;;  %5287 = vmatprep.subr.bf16.mxu0 %v5974_v19  ;;  %v787_v50 = vld [vmem:[%s6956_s3 + $0x80] sm:$0xff] }
  0x28   : > { %424 = vst [vmem:[#allocation2 + $0x61] sm:$0xff] %v5992_v28  ;;  %425 = vst [vmem:[#allocation2 + $0x69] sm:$0xff] %v5994_v29  ;;  %v289_v48 = vmul.f32 %v5890_v30, %v250_v39  ;;  %v6022_v49 = vpack.c.bf16 %v1909_v35, %v1908_v27  ;;  %v788_v52 = vld [vmem:[%s6956_s3 + $0x88] sm:$0xff]  ;;  %v6031_v53 = vmax.f32 %v325_v43, 0.0  ;;  %v327_v54 = vadd.f32 %v5895_v31, %v288_v44  ;;  %v2263_v57 = vld [vmem:[%s6956_s3 + $0x280] sm:$0xff] }
  0x29   : > { %426 = vst [vmem:[#allocation2 + $0x79] sm:$0xff] %v6003_v36  ;;  %427 = vst [vmem:[#allocation2 + $0x81] sm:$0xff] %v6011_v42  ;;  %v290_v56 = vmul.f32 %v5890_v30, %v251_v41  ;;  %v2264_v59 = vld [vmem:[%s6956_s3 + $0x288] sm:$0xff]  ;;  %v6042_v60 = vmax.f32 %v326_v47, 0.0  ;;  %5161 = vmatpush3.bf16.msra.mxu1 %v5158_v11  ;;  %v252_v2 = vld [vmem:[%s5868_s8 + $0x80] sm:$0xff]  ;;  %v5166_v3 = vpack.c.bf16 %v788_v52, %v787_v50 }
  0x2a   : > { %7024 = vst [vmem:[#allocation11_spill] sm:$0xff] %v6022_v49  ;;  %428 = vst [vmem:[#allocation2 + $0x91] sm:$0xff] %v6017_v46  ;;  %v328_v61 = vadd.f32 %v5895_v31, %v289_v48  ;;  %v6046_v62 = vmax.f32 %v327_v54, 0.0  ;;  %5289 = vmatpush3.bf16.msra.mxu0 %v5974_v19  ;;  %5163 = vmatprep.subr.bf16.mxu1 %v5162_v45  ;;  %v291_v6 = vmul.f32 %v5890_v30, %v252_v2  ;;  %v253_v9 = vld [vmem:[%s5868_s8 + $0x88] sm:$0xff]  ;;  %v254_v10 = vld [vmem:[%s5868_s8 + $0x90] sm:$0xff] }
  0x2b   : > { %429 = vst [vmem:[#allocation2 + $0x99] sm:$0xff] %v6031_v53  ;;  %v329_v63 = vadd.f32 %v5895_v31, %v290_v56  ;;  %430 = vst [vmem:[#allocation2 + $0xa9] sm:$0xff] %v6042_v60  ;;  %5291 = vmatprep.subr.bf16.mxu0 %v6022_v49  ;;  %v5294_v11 = vpack.c.bf16 %v2264_v59, %v2263_v57  ;;  %v292_v14 = vmul.f32 %v5890_v30, %v253_v9  ;;  %v255_v16 = vld [vmem:[%s5868_s8 + $0x98] sm:$0xff]  ;;  %v2265_v17 = vld [vmem:[%s6956_s3 + $0x290] sm:$0xff] }
  0x2c   : > { %v6052_v4 = vmax.f32 %v328_v61, 0.0  ;;  %431 = vst [vmem:[#allocation2 + $0xb1] sm:$0xff] %v6046_v62  ;;  %v293_v15 = vmul.f32 %v5890_v30, %v254_v10  ;;  %v2266_v20 = vld [vmem:[%s6956_s3 + $0x298] sm:$0xff]  ;;  %v6072_v22 = vadd.f32 %v5895_v31, %v291_v6  ;;  %v294_v23 = vmul.f32 %v5890_v30, %v255_v16  ;;  %v789_v24 = vld [vmem:[%s6956_s3 + $0x90] sm:$0xff]  ;;  %v2267_v38 = vld [vmem:[%s6956_s3 + $0x2a0] sm:$0xff] }
  0x2d   : > { %v6059_v12 = vmax.f32 %v329_v63, 0.0  ;;  %5165 = vmatpush3.bf16.msra.mxu1 %v5162_v45  ;;  %v790_v26 = vld [vmem:[%s6956_s3 + $0x98] sm:$0xff]  ;;  %v6083_v27 = vadd.f32 %v5895_v31, %v292_v14  ;;  %v5298_v37 = vpack.c.bf16 %v2266_v20, %v2265_v17  ;;  %v256_v43 = vld [vmem:[%s5868_s8 + $0xa0] sm:$0xff]  ;;  %v2268_v45 = vld [vmem:[%s6956_s3 + $0x2a8] sm:$0xff] }
  0x2e   : > { %432 = vst [vmem:[#allocation2 + $0xc1] sm:$0xff] %v6052_v4  ;;  %v6086_v32 = vadd.f32 %v5895_v31, %v293_v15  ;;  %5293 = vmatpush3.bf16.msra.mxu0 %v6022_v49  ;;  %5167 = vmatprep.subr.bf16.mxu1 %v5166_v3  ;;  %v6972_v33 = vmax.f32 %v6072_v22, 0.0  ;;  %v6091_v34 = vadd.f32 %v5895_v31, %v294_v23  ;;  %v452_v35 = vld [vmem:[#allocation2 + $0x18] sm:$0xff]  ;;  %v791_v47 = vld [vmem:[%s6956_s3 + $0xa0] sm:$0xff]  ;;  %v257_v52 = vld [vmem:[%s5868_s8 + $0xa8] sm:$0xff] }
  0x2f   : > { %433 = vst [vmem:[#allocation2 + $0xc9] sm:$0xff] %v6059_v12  ;;  %5295 = vmatprep.subr.bf16.mxu0 %v5294_v11  ;;  %v6971_v39 = vmax.f32 %v6083_v27, 0.0  ;;  %v5170_v44 = vpack.c.bf16 %v790_v26, %v789_v24  ;;  %v295_v50 = vmul.f32 %v5890_v30, %v256_v43  ;;  %v792_v54 = vld [vmem:[%s6956_s3 + $0xa8] sm:$0xff]  ;;  %v296_v56 = vmul.f32 %v5890_v30, %v257_v52  ;;  %v258_v57 = vld [vmem:[%s5868_s8 + $0xb0] sm:$0xff]  ;;  %v259_v2 = vld [vmem:[%s5868_s8 + $0xb8] sm:$0xff] }
  0x30   : > { %v6970_v41 = vmax.f32 %v6086_v32, 0.0  ;;  %4447 = vmatmul.mubr.f32.vlgmr.msra.gmra.mrb[0].mxu1 %v5715_v7  ;;  %434 = vst [vmem:[#allocation2 + $0xd9] sm:$0xff] %v6972_v33  ;;  %v6965_v48 = vmax.f32 %v6091_v34, 0.0  ;;  %v453_v7 = vld [vmem:[#allocation2 + $0x20] sm:$0xff]  ;;  %v6121_v59 = vld [vmem:[#allocation2 + $0x30] sm:$0xff]  ;;  %v297_v63 = vmul.f32 %v5890_v30, %v258_v57  ;;  %v298_v10 = vmul.f32 %v5890_v30, %v259_v2  ;;  %v794_v16 = vld [vmem:[%s6956_s3 + $0xb8] sm:$0xff] }
  0x31   : > { %4767 = vmatmul.mubr.f32.vlgmr.msra.gmra.mrb[0].mxu0 %v5939_v58  ;;  %5169 = vmatpush3.bf16.msra.mxu1 %v5166_v3  ;;  %435 = vst [vmem:[#allocation2 + $0xe1] sm:$0xff] %v6971_v39  ;;  %v6126_v61 = vadd.f32 %v5895_v31, %v295_v50  ;;  %v5302_v3 = vpack.c.bf16 %v2268_v45, %v2267_v38  ;;  %v2269_v6 = vld [vmem:[%s6956_s3 + $0x2b0] sm:$0xff]  ;;  %v6153_v23 = vld [vmem:[#allocation2 + $0x38] sm:$0xff]  ;;  %v261_v38 = vld [vmem:[%s5868_s8 + $0xc8] sm:$0xff] }
  0x32   : > { %436 = vst [vmem:[#allocation2 + $0xf1] sm:$0xff] %v6970_v41  ;;  %5297 = vmatpush3.bf16.msra.mxu0 %v5294_v11  ;;  %4449 = vmatprep.mubr.f32.mxu1 %v452_v35  ;;  %437 = vst [vmem:[#allocation2 + $0xf9] sm:$0xff] %v6965_v48  ;;  %v6135_v9 = vadd.f32 %v5895_v31, %v296_v56  ;;  %v2270_v11 = vld [vmem:[%s6956_s3 + $0x2b8] sm:$0xff]  ;;  %v5174_v14 = vpack.c.bf16 %v792_v54, %v791_v47  ;;  %v793_v15 = vld [vmem:[%s6956_s3 + $0xb0] sm:$0xff] }
  0x33   : > { %4769 = vmatprep.mubr.f32.mxu0 %v5953_v0  ;;  %5299 = vmatprep.subr.bf16.mxu0 %v5298_v37  ;;  %v6962_v17 = vmax.f32 %v6126_v61, 0.0  ;;  %v6149_v20 = vadd.f32 %v5895_v31, %v297_v63  ;;  %v6157_v26 = vadd.f32 %v5895_v31, %v298_v10  ;;  %v260_v35 = vld [vmem:[%s5868_s8 + $0xc0] sm:$0xff]  ;;  %v6162_v43 = vld [vmem:[#allocation2 + $0x48] sm:$0xff]  ;;  %v300_v50 = vmul.f32 %v5890_v30, %v261_v38  ;;  %v262_v52 = vld [vmem:[%s5868_s8 + $0xd0] sm:$0xff] }
  0x34   : > { %4450 = vmatmul.mubr.f32.gmra.mrb[2].mxu1 %v453_v7  ;;  %5171 = vmatprep.subr.bf16.mxu1 %v5170_v44  ;;  %v6961_v24 = vmax.f32 %v6135_v9, 0.0  ;;  %v299_v47 = vmul.f32 %v5890_v30, %v260_v35  ;;  %v5306_v7 = vpack.c.bf16 %v2270_v11, %v2269_v6  ;;  %v5178_v54 = vpack.c.bf16 %v794_v16, %v793_v15  ;;  %v263_v57 = vld [vmem:[%s5868_s8 + $0xd8] sm:$0xff]  ;;  %v2271_v63 = vld [vmem:[%s6956_s3 + $0x2c0] sm:$0xff]  ;;  %v6193_v11 = vld [vmem:[#allocation2 + $0x50] sm:$0xff] }
  0x35   : > { %4770 = vmatmul.mubr.f32.gmra.mrb[2].mxu0 %v5955_v1  ;;  %4452 = vmatprep.mubr.f32.mxu1 %v6121_v59  ;;  %438 = vst [vmem:[#allocation2 + $0x109] sm:$0xff] %v6962_v17  ;;  %v6959_v45 = vmax.f32 %v6149_v20, 0.0  ;;  %v301_v56 = vmul.f32 %v5890_v30, %v262_v52  ;;  %v6188_v6 = vadd.f32 %v5895_v31, %v300_v50  ;;  %v795_v15 = vld [vmem:[%s6956_s3 + $0xc0] sm:$0xff]  ;;  %v796_v16 = vld [vmem:[%s6956_s3 + $0xc8] sm:$0xff]  ;;  %v266_v39 = vld [vmem:[%s5868_s8 + $0xf0] sm:$0xff] }
  0x36   : > { %5301 = vmatpush3.bf16.msra.mxu0 %v5298_v37  ;;  %4772 = vmatprep.mubr.f32.mxu0 %v5961_v5  ;;  %439 = vst [vmem:[#allocation2 + $0x111] sm:$0xff] %v6961_v24  ;;  %v6960_v37 = vmax.f32 %v6157_v26, 0.0  ;;  %v6185_v2 = vadd.f32 %v5895_v31, %v299_v47  ;;  %v302_v10 = vmul.f32 %v5890_v30, %v263_v57  ;;  %v6207_v38 = vld [vmem:[#allocation2 + $0x60] sm:$0xff]  ;;  %v2273_v24 = vld [vmem:[%s6956_s3 + $0x2d0] sm:$0xff]  ;;  %v2634_v41 = vld [vmem:[%s6956_s3 + $0x308] sm:$0xff] }
  0x37   : > { %5303 = vmatprep.subr.bf16.mxu0 %v5302_v3  ;;  %5173 = vmatpush3.bf16.msra.mxu1 %v5170_v44  ;;  %v2272_v44 = vld [vmem:[%s6956_s3 + $0x2c8] sm:$0xff]  ;;  %440 = vst [vmem:[#allocation2 + $0x121] sm:$0xff] %v6959_v45  ;;  %v6204_v35 = vadd.f32 %v5895_v31, %v301_v56  ;;  %v6963_v50 = vmax.f32 %v6188_v6, 0.0  ;;  %v264_v57 = vld [vmem:[%s5868_s8 + $0xe0] sm:$0xff]  ;;  %v5182_v17 = vpack.c.bf16 %v796_v16, %v795_v15  ;;  %v797_v15 = vld [vmem:[%s6956_s3 + $0xd0] sm:$0xff] }
  0x38   : > { %4453 = vmatmul.mubr.f32.gmra.mrb[4].mxu1 %v6153_v23  ;;  %5175 = vmatprep.subr.bf16.mxu1 %v5174_v14  ;;  %441 = vst [vmem:[#allocation2 + $0x129] sm:$0xff] %v6960_v37  ;;  %v6964_v47 = vmax.f32 %v6185_v2, 0.0  ;;  %v6212_v52 = vadd.f32 %v5895_v31, %v302_v10  ;;  %v5310_v45 = vpack.c.bf16 %v2272_v44, %v2271_v63  ;;  %v2274_v10 = vld [vmem:[%s6956_s3 + $0x2d8] sm:$0xff]  ;;  %v6233_v44 = vld [vmem:[#allocation2 + $0x68] sm:$0xff]  ;;  %v2641_v13 = vld [vmem:[%s6956_s3 + $0x340] sm:$0xff] }
  0x39   : > { %4773 = vmatmul.mubr.f32.gmra.mrb[4].mxu0 %v5980_v21  ;;  %4455 = vmatprep.mubr.f32.mxu1 %v6162_v43  ;;  %v6967_v37 = vmax.f32 %v6204_v35, 0.0  ;;  %v303_v56 = vmul.f32 %v5890_v30, %v264_v57  ;;  %443 = vst [vmem:[#allocation2 + $0x141] sm:$0xff] %v6963_v50  ;;  %v798_v16 = vld [vmem:[%s6956_s3 + $0xd8] sm:$0xff]  ;;  %v305_v33 = vmul.f32 %v5890_v30, %v266_v39  ;;  %v2635_v39 = vld [vmem:[%s6956_s3 + $0x310] sm:$0xff]  ;;  %v2642_v8 = vld [vmem:[%s6956_s3 + $0x348] sm:$0xff] }
  0x3a   : > { %5305 = vmatpush3.bf16.msra.mxu0 %v5302_v3  ;;  %4775 = vmatprep.mubr.f32.mxu0 %v5992_v28  ;;  %v265_v3 = vld [vmem:[%s5868_s8 + $0xe8] sm:$0xff]  ;;  %442 = vst [vmem:[#allocation2 + $0x139] sm:$0xff] %v6964_v47  ;;  %v5314_v47 = vpack.c.bf16 %v2274_v10, %v2273_v24  ;;  %v6265_v24 = vld [vmem:[#allocation2 + $0x80] sm:$0xff] }
  0x3b   : > { %5307 = vmatprep.subr.bf16.mxu0 %v5306_v7  ;;  %5177 = vmatpush3.bf16.msra.mxu1 %v5174_v14  ;;  %v6966_v14 = vmax.f32 %v6212_v52, 0.0  ;;  %v304_v63 = vmul.f32 %v5890_v30, %v265_v3  ;;  %444 = vst [vmem:[#allocation2 + $0x151] sm:$0xff] %v6967_v37  ;;  %v6244_v57 = vadd.f32 %v5895_v31, %v303_v56  ;;  %v6247_v3 = vld [vmem:[#allocation2 + $0x78] sm:$0xff]  ;;  %v2276_v56 = vld [vmem:[%s6956_s3 + $0x2e8] sm:$0xff]  ;;  %v2277_v37 = vld [vmem:[%s6956_s3 + $0x2f0] sm:$0xff] }
  0x3c   : > { %4456 = vmatmul.mubr.f32.gmra.mrb[6].mxu1 %v6193_v11  ;;  %5179 = vmatprep.subr.bf16.mxu1 %v5178_v54  ;;  %v800_v10 = vld [vmem:[%s6956_s3 + $0xe8] sm:$0xff]  ;;  %v6323_v49 = vld [vmem:[#allocation2 + $0x1a] sm:$0xff]  ;;  %v6327_v40 = vadd.f32 %v5895_v31, %v305_v33 }
  0x3d   : > { %4776 = vmatmul.mubr.f32.gmra.mrb[6].mxu0 %v5994_v29  ;;  %4458 = vmatprep.mubr.f32.mxu1 %v6207_v38  ;;  %445 = vst [vmem:[#allocation2 + $0x159] sm:$0xff] %v6966_v14  ;;  %v6252_v50 = vadd.f32 %v5895_v31, %v304_v63  ;;  %v6968_v48 = vmax.f32 %v6244_v57, 0.0  ;;  %v5186_v14 = vpack.c.bf16 %v798_v16, %v797_v15  ;;  %v6276_v15 = vld [vmem:[#allocation2 + $0x90] sm:$0xff] }
  0x3e   : > { %5309 = vmatpush3.bf16.msra.mxu0 %v5306_v7  ;;  %4778 = vmatprep.mubr.f32.mxu0 %v6003_v36  ;;  %v2275_v7 = vld [vmem:[%s6956_s3 + $0x2e0] sm:$0xff]  ;;  %7025 = vst [vmem:[#allocation12_spill] sm:$0xff] %v6327_v40 }
  0x3f   : > { %5311 = vmatprep.subr.bf16.mxu0 %v5310_v45  ;;  %5181 = vmatpush3.bf16.msra.mxu1 %v5178_v54  ;;  %v6969_v63 = vmax.f32 %v6252_v50, 0.0  ;;  %v799_v54 = vld [vmem:[%s6956_s3 + $0xe0] sm:$0xff]  ;;  %446 = vst [vmem:[#allocation2 + $0x169] sm:$0xff] %v6968_v48  ;;  %v5318_v16 = vpack.c.bf16 %v2276_v56, %v2275_v7  ;;  %v802_v7 = vld [vmem:[%s6956_s3 + $0xf8] sm:$0xff]  ;;  %v6298_v56 = vld [vmem:[#allocation2 + $0xa8] sm:$0xff] }
  0x40   : > { %4459 = vmatmul.mubr.f32.gmra.mrb[8].mxu1 %v6233_v44  ;;  %5183 = vmatprep.subr.bf16.mxu1 %v5182_v17  ;;  %v5190_v48 = vpack.c.bf16 %v800_v10, %v799_v54  ;;  %v2633_v10 = vld [vmem:[%s6956_s3 + $0x300] sm:$0xff] }
  0x41   : > { %4779 = vmatmul.mubr.f32.gmra.mrb[8].mxu0 %v6011_v42  ;;  %4461 = vmatprep.mubr.f32.mxu1 %v6247_v3  ;;  %447 = vst [vmem:[#allocation2 + $0x171] sm:$0xff] %v6969_v63  ;;  %v6289_v63 = vld [vmem:[#allocation2 + $0x98] sm:$0xff]  ;;  %v5326_v19 = vpack.c.bf16 %v2634_v41, %v2633_v10  ;;  %v6983_v41 = vmax.f32 %v6327_v40, 0.0  ;;  %v2639_v40 = vld [vmem:[%s6956_s3 + $0x330] sm:$0xff] }
  0x42   : > { %5313 = vmatpush3.bf16.msra.mxu0 %v5310_v45  ;;  %4781 = vmatprep.mubr.f32.mxu0 %v6017_v46  ;;  %v2278_v45 = vld [vmem:[%s6956_s3 + $0x2f8] sm:$0xff] }
  0x43   : > { %5315 = vmatprep.subr.bf16.mxu0 %v5314_v47  ;;  %5185 = vmatpush3.bf16.msra.mxu1 %v5182_v17  ;;  %v801_v17 = vld [vmem:[%s6956_s3 + $0xf0] sm:$0xff]  ;;  %v5322_v54 = vpack.c.bf16 %v2278_v45, %v2277_v37  ;;  %v1157_v45 = vld [vmem:[%s6956_s3 + $0x108] sm:$0xff]  ;;  %v6349_v10 = vld [vmem:[#allocation2 + $0xd8] sm:$0xff]  ;;  %448 = vst [vmem:[#allocation2 + $0x181] sm:$0xff] %v6983_v41 }
  0x44   : > { %4462 = vmatmul.mubr.f32.gmra.mrb[10].mxu1 %v6265_v24  ;;  %5187 = vmatprep.subr.bf16.mxu1 %v5186_v14  ;;  %v6310_v37 = vld [vmem:[#allocation2 + $0xb0] sm:$0xff] }
  0x45   : > { %4782 = vmatmul.mubr.f32.gmra.mrb[10].mxu0 %v6031_v53  ;;  %4464 = vmatprep.mubr.f32.mxu1 %v6276_v15 }
  0x46   : > { %5317 = vmatpush3.bf16.msra.mxu0 %v5314_v47  ;;  %4784 = vmatprep.mubr.f32.mxu0 %v6042_v60  ;;  %v5194_v47 = vpack.c.bf16 %v802_v7, %v801_v17  ;;  %v6320_v17 = vld [vmem:[#allocation2 + $0xc0] sm:$0xff]  ;;  %v267_v7 = vld [vmem:[%s5868_s8 + $0xf8] sm:$0xff] }
  0x47   : > { %5319 = vmatprep.subr.bf16.mxu0 %v5318_v16  ;;  %5189 = vmatpush3.bf16.msra.mxu1 %v5186_v14  ;;  %v1156_v14 = vld [vmem:[%s6956_s3 + $0x100] sm:$0xff]  ;;  %v306_v55 = vmul.f32 %v5890_v30, %v267_v7  ;;  %v6340_v30 = vld [vmem:[#allocation2 + $0xc8] sm:$0xff] }
  0x48   : > { %4465 = vmatmul.mubr.f32.gmra.mrb[12].mxu1 %v6289_v63  ;;  %5191 = vmatprep.subr.bf16.mxu1 %v5190_v48  ;;  %v6336_v25 = vpack.c.bf16 %v1157_v45, %v1156_v14  ;;  %v6351_v14 = vld [vmem:[#allocation2 + $0x32] sm:$0xff] }
  0x49   : > { %4785 = vmatmul.mubr.f32.gmra.mrb[12].mxu0 %v6046_v62  ;;  %4467 = vmatprep.mubr.f32.mxu1 %v6298_v56  ;;  %v6343_v33 = vadd.f32 %v5895_v31, %v306_v55  ;;  %7027 = vst [vmem:[#allocation14_spill] sm:$0xff] %v6351_v14  ;;  %v2637_v31 = vld [vmem:[%s6956_s3 + $0x320] sm:$0xff]  ;;  %v2638_v55 = vld [vmem:[%s6956_s3 + $0x328] sm:$0xff] }
  0x4a   : > { %5321 = vmatpush3.bf16.msra.mxu0 %v5318_v16  ;;  %4787 = vmatprep.mubr.f32.mxu0 %v6052_v4  ;;  %v2636_v16 = vld [vmem:[%s6956_s3 + $0x318] sm:$0xff]  ;;  %v5334_v41 = vpack.c.bf16 %v2638_v55, %v2637_v31  ;;  %v6391_v31 = vld [vmem:[#allocation2 + $0x108] sm:$0xff] }
  0x4b   : > { %5323 = vmatprep.subr.bf16.mxu0 %v5322_v54  ;;  %5193 = vmatpush3.bf16.msra.mxu1 %v5190_v48  ;;  %7026 = vst [vmem:[#allocation13_spill] sm:$0xff] %v6343_v33  ;;  %v6347_v48 = vld [vmem:[#allocation2 + $0x22] sm:$0xff]  ;;  %v5330_v45 = vpack.c.bf16 %v2636_v16, %v2635_v39  ;;  %v6985_v7 = vmax.f32 %v6343_v33, 0.0  ;;  %v6373_v39 = vld [vmem:[#allocation2 + $0xf0] sm:$0xff] }
  0x4c   : > { %4468 = vmatmul.mubr.f32.gmra.mrb[14].mxu1 %v6310_v37  ;;  %5195 = vmatprep.subr.bf16.mxu1 %v5194_v47  ;;  %v6375_v16 = vld [vmem:[#allocation2 + $0x4a] sm:$0xff]  ;;  %v6389_v33 = vld [vmem:[#allocation2 + $0x52] sm:$0xff]  ;;  %v6393_v55 = vld [vmem:[#allocation2 + $0x62] sm:$0xff] }
  0x4d   : > { %4788 = vmatmul.mubr.f32.gmra.mrb[14].mxu0 %v6059_v12  ;;  %4470 = vmatprep.mubr.f32.mxu1 %v6320_v17  ;;  %449 = vst [vmem:[#allocation2 + $0x189] sm:$0xff] %v6985_v7  ;;  %7029 = vst [vmem:[#allocation16_spill] sm:$0xff] %v6375_v16  ;;  %v6386_v7 = vld [vmem:[#allocation2 + $0xf8] sm:$0xff] }
  0x4e   : > { %5325 = vmatpush3.bf16.msra.mxu0 %v5322_v54  ;;  %4846 = vmatprep.mubr.f32.mxu0 %v6323_v49  ;;  %v6366_v54 = vld [vmem:[#allocation2 + $0xe0] sm:$0xff]  ;;  %7030 = vst [vmem:[#allocation17_spill] sm:$0xff] %v6389_v33  ;;  %7031 = vst [vmem:[#allocation18_spill] sm:$0xff] %v6393_v55 }
  0x4f   : > { %5327 = vmatprep.subr.bf16.mxu0 %v5326_v19  ;;  %5197 = vmatpush3.bf16.msra.mxu1 %v5194_v47  ;;  %v6371_v47 = vld [vmem:[#allocation2 + $0x3a] sm:$0xff] }
  0x50   : > { %4471 = vmatmul.mubr.f32.gmra.mrb[16].mxu1 %v6340_v30  ;;  %5199 = vmatprep.subr.bf16.mxu1 %v6336_v25  ;;  %7028 = vst [vmem:[#allocation15_spill] sm:$0xff] %v6371_v47 }
  0x51   : > { %4847 = vmatmul.mubr.f32.vlgmr.msra.gmra.mrb[0].mxu0 %v6347_v48  ;;  %4473 = vmatprep.mubr.f32.mxu1 %v6349_v10 }
  0x52   : > { %5329 = vmatpush3.bf16.msra.mxu0 %v5326_v19  ;;  %4849 = vmatprep.mubr.f32.mxu0 %v6351_v14  ;;  %v2640_v19 = vld [vmem:[%s6956_s3 + $0x338] sm:$0xff] }
  0x53   : > { %5331 = vmatprep.subr.bf16.mxu0 %v5330_v45  ;;  %v5338_v18 = vpack.c.bf16 %v2640_v19, %v2639_v40  ;;  %v6409_v40 = vld [vmem:[#allocation2 + $0x120] sm:$0xff]  ;;  %v2644_v14 = vld [vmem:[%s6956_s3 + $0x358] sm:$0xff] }
  0x54   : > { %4474 = vmatmul.mubr.f32.gmra.mrb[18].mxu1 %v6366_v54  ;;  %7034 = vst [vmem:[#allocation21_spill] sm:$0xff] %v6409_v40  ;;  %v6411_v19 = vld [vmem:[#allocation2 + $0x7a] sm:$0xff] }
  0x55   : > { %4850 = vmatmul.mubr.f32.gmra.mrb[2].mxu0 %v6371_v47  ;;  %4476 = vmatprep.mubr.f32.mxu1 %v6373_v39  ;;  %7035 = vst [vmem:[#allocation22_spill] sm:$0xff] %v6411_v19  ;;  %v5342_v47 = vpack.c.bf16 %v2642_v8, %v2641_v13  ;;  %v6427_v8 = vld [vmem:[#allocation2 + $0x138] sm:$0xff] }
  0x56   : > { %4852 = vmatprep.mubr.f32.mxu0 %v6375_v16  ;;  %5333 = vmatpush3.bf16.msra.mxu0 %v5330_v45  ;;  %v6404_v45 = vld [vmem:[#allocation2 + $0x110] sm:$0xff]  ;;  %7038 = vst [vmem:[#allocation25_spill] sm:$0xff] %v6427_v8 }
  0x57   : > { %5335 = vmatprep.subr.bf16.mxu0 %v5334_v41  ;;  %7032 = vst [vmem:[#allocation19_spill] sm:$0xff] %v6404_v45  ;;  %v6407_v16 = vld [vmem:[#allocation2 + $0x6a] sm:$0xff]  ;;  %v6429_v13 = vld [vmem:[#allocation2 + $0x92] sm:$0xff] }
  0x58   : > { %4477 = vmatmul.mubr.f32.gmra.mrb[20].mxu1 %v6386_v7  ;;  %7033 = vst [vmem:[#allocation20_spill] sm:$0xff] %v6407_v16  ;;  %7039 = vst [vmem:[#allocation26_spill] sm:$0xff] %v6429_v13 }
  0x59   : > { %4853 = vmatmul.mubr.f32.gmra.mrb[4].mxu0 %v6389_v33  ;;  %4479 = vmatprep.mubr.f32.mxu1 %v6391_v31  ;;  %v2643_v33 = vld [vmem:[%s6956_s3 + $0x350] sm:$0xff] }
  0x5a   : > { %4855 = vmatprep.mubr.f32.mxu0 %v6393_v55  ;;  %5337 = vmatpush3.bf16.msra.mxu0 %v5334_v41  ;;  %v6422_v55 = vld [vmem:[#allocation2 + $0x128] sm:$0xff] }
  0x5b   : > { %5339 = vmatprep.subr.bf16.mxu0 %v5338_v18  ;;  %7036 = vst [vmem:[#allocation23_spill] sm:$0xff] %v6422_v55  ;;  %v6425_v41 = vld [vmem:[#allocation2 + $0x82] sm:$0xff] }
  0x5c   : > { %4480 = vmatmul.mubr.f32.gmra.mrb[22].mxu1 %v6404_v45  ;;  %7037 = vst [vmem:[#allocation24_spill] sm:$0xff] %v6425_v41  ;;  %v5346_v45 = vpack.c.bf16 %v2644_v14, %v2643_v33  ;;  %v6445_v33 = vld [vmem:[#allocation2 + $0x150] sm:$0xff] }
  0x5d   : > { %4856 = vmatmul.mubr.f32.gmra.mrb[6].mxu0 %v6407_v16  ;;  %4482 = vmatprep.mubr.f32.mxu1 %v6409_v40  ;;  %v2645_v16 = vld [vmem:[%s6956_s3 + $0x360] sm:$0xff]  ;;  %v2646_v40 = vld [vmem:[%s6956_s3 + $0x368] sm:$0xff]  ;;  %7042 = vst [vmem:[#allocation29_spill] sm:$0xff] %v6445_v33 }
  0x5e   : > { %4858 = vmatprep.mubr.f32.mxu0 %v6411_v19  ;;  %5341 = vmatpush3.bf16.msra.mxu0 %v5338_v18  ;;  %v6440_v19 = vld [vmem:[#allocation2 + $0x140] sm:$0xff]  ;;  %v6447_v14 = vld [vmem:[#allocation2 + $0xaa] sm:$0xff] }
  0x5f   : > { %5343 = vmatprep.subr.bf16.mxu0 %v5342_v47  ;;  %7040 = vst [vmem:[#allocation27_spill] sm:$0xff] %v6440_v19  ;;  %v6443_v18 = vld [vmem:[#allocation2 + $0x9a] sm:$0xff]  ;;  %7043 = vst [vmem:[#allocation30_spill] sm:$0xff] %v6447_v14 }
  0x60   : > { %4483 = vmatmul.mubr.f32.gmra.mrb[24].mxu1 %v6422_v55  ;;  %7041 = vst [vmem:[#allocation28_spill] sm:$0xff] %v6443_v18  ;;  %v5350_v55 = vpack.c.bf16 %v2646_v40, %v2645_v16  ;;  %v6463_v16 = vld [vmem:[#allocation2 + $0x168] sm:$0xff] }
  0x61   : > { %4859 = vmatmul.mubr.f32.gmra.mrb[8].mxu0 %v6425_v41  ;;  %4485 = vmatprep.mubr.f32.mxu1 %v6427_v8  ;;  %v2647_v41 = vld [vmem:[%s6956_s3 + $0x370] sm:$0xff]  ;;  %v2648_v8 = vld [vmem:[%s6956_s3 + $0x378] sm:$0xff]  ;;  %7046 = vst [vmem:[#allocation33_spill] sm:$0xff] %v6463_v16  ;;  %v6465_v40 = vld [vmem:[#allocation2 + $0xc2] sm:$0xff] }
  0x62   : > { %4861 = vmatprep.mubr.f32.mxu0 %v6429_v13  ;;  %5345 = vmatpush3.bf16.msra.mxu0 %v5342_v47  ;;  %v6458_v13 = vld [vmem:[#allocation2 + $0x158] sm:$0xff]  ;;  %7047 = vst [vmem:[#allocation34_spill] sm:$0xff] %v6465_v40 }
  0x63   : > { %5347 = vmatprep.subr.bf16.mxu0 %v5346_v45  ;;  %7044 = vst [vmem:[#allocation31_spill] sm:$0xff] %v6458_v13  ;;  %v6461_v47 = vld [vmem:[#allocation2 + $0xb2] sm:$0xff] }
  0x64   : > { %4486 = vmatmul.mubr.f32.gmra.mrb[26].mxu1 %v6440_v19  ;;  %7045 = vst [vmem:[#allocation32_spill] sm:$0xff] %v6461_v47  ;;  %v5354_v19 = vpack.c.bf16 %v2648_v8, %v2647_v41  ;;  %v755_v41 = vld [vmem:[#allocation2 + $0x1] sm:$0xff] }
  0x65   : > { %4862 = vmatmul.mubr.f32.gmra.mrb[10].mxu0 %v6443_v18  ;;  %4488 = vmatprep.mubr.f32.mxu1 %v6445_v33  ;;  %v3002_v18 = vld [vmem:[%s6956_s3 + $0x380] sm:$0xff]  ;;  %v3003_v33 = vld [vmem:[%s6956_s3 + $0x388] sm:$0xff] }
  0x66   : > { %4864 = vmatprep.mubr.f32.mxu0 %v6447_v14  ;;  %5349 = vmatpush3.bf16.msra.mxu0 %v5346_v45  ;;  %v6476_v14 = vld [vmem:[#allocation2 + $0x170] sm:$0xff]  ;;  %v6481_v8 = vld [vmem:[#allocation2 + $0xda] sm:$0xff] }
  0x67   : > { %5351 = vmatprep.subr.bf16.mxu0 %v5350_v55  ;;  %7048 = vst [vmem:[#allocation35_spill] sm:$0xff] %v6476_v14  ;;  %v6479_v45 = vld [vmem:[#allocation2 + $0xca] sm:$0xff] }
  0x68   : > { %4489 = vmatmul.mubr.f32.gmra.mrb[28].mxu1 %v6458_v13  ;;  %v6483_v13 = vpack.c.bf16 %v3003_v33, %v3002_v18  ;;  %v6496_v18 = vld [vmem:[#allocation2 + $0xf2] sm:$0xff] }
  0x69   : > { %4865 = vmatmul.mubr.f32.gmra.mrb[12].mxu0 %v6461_v47  ;;  %4491 = vmatprep.mubr.f32.mxu1 %v6463_v16  ;;  %v1158_v47 = vld [vmem:[%s6956_s3 + $0x110] sm:$0xff]  ;;  %v1159_v16 = vld [vmem:[%s6956_s3 + $0x118] sm:$0xff] }
  0x6a   : > { %4867 = vmatprep.mubr.f32.mxu0 %v6465_v40  ;;  %5353 = vmatpush3.bf16.msra.mxu0 %v5350_v55  ;;  %v756_v40 = vld [vmem:[#allocation2 + $0x9] sm:$0xff]  ;;  %v5202_v33 = vpack.c.bf16 %v1159_v16, %v1158_v47 }
  0x6b   : > { %5355 = vmatprep.subr.bf16.mxu0 %v5354_v19  ;;  %v6494_v55 = vld [vmem:[#allocation2 + $0xe2] sm:$0xff]  ;;  %v6511_v47 = vld [vmem:[#allocation2 + $0x10a] sm:$0xff] }
  0x6c   : > { %4492 = vmatmul.mubr.f32.gmra.mrb[30].mxu1 %v6476_v14  ;;  %v1160_v14 = vld [vmem:[%s6956_s3 + $0x120] sm:$0xff] }
  0x6d   : > { %4868 = vmatmul.mubr.f32.gmra.mrb[14].mxu0 %v6479_v45  ;;  %4526 = vmatprep.mubr.f32.mxu1 %v755_v41  ;;  %v1161_v41 = vld [vmem:[%s6956_s3 + $0x128] sm:$0xff] }
  0x6e   : > { %4870 = vmatprep.mubr.f32.mxu0 %v6481_v8  ;;  %5357 = vmatpush3.bf16.msra.mxu0 %v5354_v19  ;;  %v6509_v19 = vld [vmem:[#allocation2 + $0xfa] sm:$0xff]  ;;  %v5206_v16 = vpack.c.bf16 %v1161_v41, %v1160_v14  ;;  %v6525_v14 = vld [vmem:[#allocation2 + $0x122] sm:$0xff] }
  0x6f   : > { %5359 = vmatprep.subr.bf16.mxu0 %v6483_v13  ;;  %7049 = vst [vmem:[#allocation36_spill] sm:$0xff] %v6509_v19  ;;  %v1164_v41 = vld [vmem:[%s6956_s3 + $0x140] sm:$0xff] }
  0x70   : > { %4527 = vmatmul.mubr.f32.vlgmr.msra.gmra.mrb[0].mxu1 %v756_v40  ;;  %v1162_v40 = vld [vmem:[%s6956_s3 + $0x130] sm:$0xff] }
  0x71   : > { %4871 = vmatmul.mubr.f32.gmra.mrb[16].mxu0 %v6494_v55  ;;  %5201 = vmatpush3.bf16.msra.mxu1 %v6336_v25  ;;  %v1163_v25 = vld [vmem:[%s6956_s3 + $0x138] sm:$0xff] }
  0x72   : > { %4529 = vmatprep.mubr.f32.mxu1 %v5925_v51  ;;  %4873 = vmatprep.mubr.f32.mxu0 %v6496_v18  ;;  %v6523_v51 = vld [vmem:[#allocation2 + $0x112] sm:$0xff] }
  0x73   : > { %5203 = vmatprep.subr.bf16.mxu1 %v5202_v33 }
  0x74   : > { %4530 = vmatmul.mubr.f32.gmra.mrb[2].mxu1 %v5939_v58  ;;  %v5210_v58 = vpack.c.bf16 %v1163_v25, %v1162_v40  ;;  %v1166_v40 = vld [vmem:[%s6956_s3 + $0x150] sm:$0xff]  ;;  %v1167_v25 = vld [vmem:[%s6956_s3 + $0x158] sm:$0xff] }
  0x75   : > { %4874 = vmatmul.mubr.f32.gmra.mrb[18].mxu0 %v6509_v19  ;;  %4532 = vmatprep.mubr.f32.mxu1 %v5953_v0  ;;  %v1165_v19 = vld [vmem:[%s6956_s3 + $0x148] sm:$0xff] }
  0x76   : > { %4876 = vmatprep.mubr.f32.mxu0 %v6511_v47  ;;  %5205 = vmatpush3.bf16.msra.mxu1 %v5202_v33  ;;  %v6537_v0 = vld [vmem:[#allocation2 + $0x12a] sm:$0xff]  ;;  %v6539_v33 = vld [vmem:[#allocation2 + $0x13a] sm:$0xff] }
  0x77   : > { %5207 = vmatprep.subr.bf16.mxu1 %v5206_v16 }
  0x78   : > { %4533 = vmatmul.mubr.f32.gmra.mrb[4].mxu1 %v5955_v1  ;;  %v5214_v1 = vpack.c.bf16 %v1165_v19, %v1164_v41  ;;  %v6553_v19 = vld [vmem:[#allocation2 + $0x152] sm:$0xff]  ;;  %v1169_v41 = vld [vmem:[%s6956_s3 + $0x168] sm:$0xff] }
  0x79   : > { %4877 = vmatmul.mubr.f32.gmra.mrb[20].mxu0 %v6523_v51  ;;  %4535 = vmatprep.mubr.f32.mxu1 %v5961_v5  ;;  %v6551_v5 = vld [vmem:[#allocation2 + $0x142] sm:$0xff] }
  0x7a   : > { %4879 = vmatprep.mubr.f32.mxu0 %v6525_v14  ;;  %5209 = vmatpush3.bf16.msra.mxu1 %v5206_v16  ;;  %v1168_v16 = vld [vmem:[%s6956_s3 + $0x160] sm:$0xff] }
  0x7b   : > { %5211 = vmatprep.subr.bf16.mxu1 %v5210_v58 }
  0x7c   : > { %4536 = vmatmul.mubr.f32.gmra.mrb[6].mxu1 %v5980_v21  ;;  %v5218_v21 = vpack.c.bf16 %v1167_v25, %v1166_v40  ;;  %v1170_v40 = vld [vmem:[%s6956_s3 + $0x170] sm:$0xff]  ;;  %v1171_v25 = vld [vmem:[%s6956_s3 + $0x178] sm:$0xff] }
  0x7d   : > { %4880 = vmatmul.mubr.f32.gmra.mrb[22].mxu0 %v6537_v0  ;;  %4538 = vmatprep.mubr.f32.mxu1 %v5992_v28  ;;  %v6565_v28 = vld [vmem:[#allocation2 + $0x15a] sm:$0xff] }
  0x7e   : > { %4882 = vmatprep.mubr.f32.mxu0 %v6539_v33  ;;  %5213 = vmatpush3.bf16.msra.mxu1 %v5210_v58  ;;  %v6567_v58 = vld [vmem:[#allocation2 + $0x16a] sm:$0xff] }
  0x7f   : > { %5215 = vmatprep.subr.bf16.mxu1 %v5214_v1 }
  0x80   : > { %4539 = vmatmul.mubr.f32.gmra.mrb[8].mxu1 %v5994_v29  ;;  %v5222_v29 = vpack.c.bf16 %v1169_v41, %v1168_v16  ;;  %v1525_v16 = vld [vmem:[%s6956_s3 + $0x180] sm:$0xff]  ;;  %v1526_v41 = vld [vmem:[%s6956_s3 + $0x188] sm:$0xff] }
  0x81   : > { %4883 = vmatmul.mubr.f32.gmra.mrb[24].mxu0 %v6551_v5  ;;  %4541 = vmatprep.mubr.f32.mxu1 %v6003_v36  ;;  %v6579_v36 = vld [vmem:[#allocation2 + $0x172] sm:$0xff] }
  0x82   : > { %4885 = vmatprep.mubr.f32.mxu0 %v6553_v19  ;;  %5217 = vmatpush3.bf16.msra.mxu1 %v5214_v1  ;;  %v2261_v1 = vld [vmem:[#allocation2 + $0x182] sm:$0xff] }
  0x83   : > { %5219 = vmatprep.subr.bf16.mxu1 %v5218_v21 }
  0x84   : > { %4542 = vmatmul.mubr.f32.gmra.mrb[10].mxu1 %v6011_v42  ;;  %v5226_v42 = vpack.c.bf16 %v1171_v25, %v1170_v40  ;;  %v3005_v40 = vld [vmem:[%s6956_s3 + $0x398] sm:$0xff]  ;;  %v3008_v25 = vld [vmem:[%s6956_s3 + $0x3b0] sm:$0xff] }
  0x85   : > { %4886 = vmatmul.mubr.f32.gmra.mrb[26].mxu0 %v6565_v28  ;;  %4544 = vmatprep.mubr.f32.mxu1 %v6017_v46  ;;  %v2262_v46 = vld [vmem:[#allocation2 + $0x18a] sm:$0xff] }
  0x86   : > { %4888 = vmatprep.mubr.f32.mxu0 %v6567_v58  ;;  %5221 = vmatpush3.bf16.msra.mxu1 %v5218_v21  ;;  %v6590_v21 = vpack.c.bf16 %v1526_v41, %v1525_v16  ;;  %v3015_v16 = vld [vmem:[%s6956_s3 + $0x3e8] sm:$0xff]  ;;  %v3017_v41 = vld [vmem:[%s6956_s3 + $0x3f8] sm:$0xff] }
  0x87   : > { %5223 = vmatprep.subr.bf16.mxu1 %v5222_v29 }
  0x88   : > { %4545 = vmatmul.mubr.f32.gmra.mrb[12].mxu1 %v6031_v53  ;;  %v3004_v53 = vld [vmem:[%s6956_s3 + $0x390] sm:$0xff] }
  0x89   : > { %4889 = vmatmul.mubr.f32.gmra.mrb[28].mxu0 %v6579_v36  ;;  %4547 = vmatprep.mubr.f32.mxu1 %v6042_v60  ;;  %v5362_v60 = vpack.c.bf16 %v3005_v40, %v3004_v53  ;;  %v1527_v53 = vld [vmem:[%s6956_s3 + $0x190] sm:$0xff]  ;;  %v1530_v40 = vld [vmem:[%s6956_s3 + $0x1a8] sm:$0xff] }
  0x8a   : > { %4891 = vmatprep.mubr.f32.mxu0 %v2261_v1  ;;  %5225 = vmatpush3.bf16.msra.mxu1 %v5222_v29  ;;  %v3007_v29 = vld [vmem:[%s6956_s3 + $0x3a8] sm:$0xff] }
  0x8b   : > { %5227 = vmatprep.subr.bf16.mxu1 %v5226_v42  ;;  %v3011_v1 = vld [vmem:[%s6956_s3 + $0x3c8] sm:$0xff] }
  0x8c   : > { %4548 = vmatmul.mubr.f32.gmra.mrb[14].mxu1 %v6046_v62  ;;  %v3006_v62 = vld [vmem:[%s6956_s3 + $0x3a0] sm:$0xff] }
  0x8d   : > { %4892 = vmatmul.mubr.f32.gmra.mrb[30].mxu0 %v2262_v46  ;;  %4550 = vmatprep.mubr.f32.mxu1 %v6052_v4  ;;  %v7050_v4 = vmax.f32 %v6072_v22, 0.0  ;;  %v7052_v22 = vmax.f32 %v6086_v32, 0.0  ;;  %v7054_v32 = vmax.f32 %v6126_v61, 0.0  ;;  %v7056_v61 = vmax.f32 %v6149_v20, 0.0  ;;  %v3372_v46 = vld [vmem:[%s6956_s3 + $0x408] sm:$0xff] }
  0x8e   : > { %4926 = vmatprep.mubr.f32.mxu0 %v6121_v59  ;;  %5229 = vmatpush3.bf16.msra.mxu1 %v5226_v42  ;;  %v5366_v59 = vpack.c.bf16 %v3007_v29, %v3006_v62  ;;  %v3013_v42 = vld [vmem:[%s6956_s3 + $0x3d8] sm:$0xff]  ;;  %v7058_v20 = vmax.f32 %v6185_v2, 0.0  ;;  %v7060_v2 = vmax.f32 %v6204_v35, 0.0  ;;  %v7062_v35 = vmax.f32 %v6244_v57, 0.0  ;;  %v1125_v57 = vld [vmem:[#allocation2 + $0xa] sm:$0xff] }
  0x8f   : > { %5231 = vmatprep.subr.bf16.mxu1 %v6590_v21  ;;  %v7064_v62 = vld [vmem:[#allocation19_spill] sm:$0xff] }
  0x90   : > { %4551 = vmatmul.mubr.f32.gmra.mrb[16].mxu1 %v6059_v12  ;;  %v7051_v12 = vmax.f32 %v6083_v27, 0.0  ;;  %v7053_v27 = vmax.f32 %v6091_v34, 0.0  ;;  %v7055_v34 = vmax.f32 %v6135_v9, 0.0  ;;  %v7057_v9 = vmax.f32 %v6157_v26, 0.0  ;;  %v1534_v29 = vld [vmem:[%s6956_s3 + $0x1c8] sm:$0xff] }
  0x91   : > { %4927 = vmatmul.mubr.f32.vlgmr.msra.gmra.mrb[0].mxu0 %v6153_v23  ;;  %4553 = vmatprep.mubr.f32.mxu1 %v7050_v4  ;;  %v3009_v23 = vld [vmem:[%s6956_s3 + $0x3b8] sm:$0xff]  ;;  %v7059_v26 = vmax.f32 %v6188_v6, 0.0  ;;  %v7061_v6 = vmax.f32 %v6212_v52, 0.0  ;;  %v7068_v4 = vld [vmem:[#allocation23_spill] sm:$0xff] }
  0x92   : > { %5361 = vmatpush3.bf16.msra.mxu0 %v6483_v13  ;;  %4929 = vmatprep.mubr.f32.mxu0 %v6162_v43  ;;  %v5370_v43 = vpack.c.bf16 %v3009_v23, %v3008_v25  ;;  %v3010_v13 = vld [vmem:[%s6956_s3 + $0x3c0] sm:$0xff]  ;;  %v7071_v23 = vld [vmem:[#allocation17_spill] sm:$0xff] }
  0x93   : > { %5363 = vmatprep.subr.bf16.mxu0 %v5362_v60 }
  0x94   : > { %4554 = vmatmul.mubr.f32.gmra.mrb[18].mxu1 %v7051_v12  ;;  %v7070_v12 = vld [vmem:[#allocation25_spill] sm:$0xff] }
  0x95   : > { %4930 = vmatmul.mubr.f32.gmra.mrb[2].mxu0 %v6193_v11  ;;  %4556 = vmatprep.mubr.f32.mxu1 %v7052_v22  ;;  %v5374_v11 = vpack.c.bf16 %v3011_v1, %v3010_v13  ;;  %v1535_v22 = vld [vmem:[%s6956_s3 + $0x1d0] sm:$0xff]  ;;  %v7073_v13 = vld [vmem:[#allocation18_spill] sm:$0xff]  ;;  %v7074_v1 = vld [vmem:[#allocation29_spill] sm:$0xff] }
  0x96   : > { %4932 = vmatprep.mubr.f32.mxu0 %v6207_v38  ;;  %5365 = vmatpush3.bf16.msra.mxu0 %v5362_v60  ;;  %v3012_v38 = vld [vmem:[%s6956_s3 + $0x3d0] sm:$0xff]  ;;  %v1532_v60 = vld [vmem:[%s6956_s3 + $0x1b8] sm:$0xff] }
  0x97   : > { %5367 = vmatprep.subr.bf16.mxu0 %v5366_v59 }
  0x98   : > { %4557 = vmatmul.mubr.f32.gmra.mrb[20].mxu1 %v7053_v27  ;;  %v7072_v27 = vld [vmem:[#allocation27_spill] sm:$0xff] }
  0x99   : > { %4933 = vmatmul.mubr.f32.gmra.mrb[4].mxu0 %v6233_v44  ;;  %4559 = vmatprep.mubr.f32.mxu1 %v7054_v32  ;;  %v5378_v44 = vpack.c.bf16 %v3013_v42, %v3012_v38  ;;  %v1538_v38 = vld [vmem:[%s6956_s3 + $0x1e8] sm:$0xff] }
  0x9a   : > { %4935 = vmatprep.mubr.f32.mxu0 %v6247_v3  ;;  %5369 = vmatpush3.bf16.msra.mxu0 %v5366_v59  ;;  %v3014_v3 = vld [vmem:[%s6956_s3 + $0x3e0] sm:$0xff]  ;;  %v7069_v59 = vld [vmem:[#allocation16_spill] sm:$0xff]  ;;  %v7076_v42 = vld [vmem:[#allocation31_spill] sm:$0xff] }
  0x9b   : > { %5371 = vmatprep.subr.bf16.mxu0 %v5370_v43 }
  0x9c   : > { %4560 = vmatmul.mubr.f32.gmra.mrb[22].mxu1 %v7055_v34  ;;  %v1537_v34 = vld [vmem:[%s6956_s3 + $0x1e0] sm:$0xff] }
  0x9d   : > { %4936 = vmatmul.mubr.f32.gmra.mrb[6].mxu0 %v6265_v24  ;;  %4562 = vmatprep.mubr.f32.mxu1 %v7056_v61  ;;  %v5382_v24 = vpack.c.bf16 %v3015_v16, %v3014_v3  ;;  %v7077_v61 = vld [vmem:[#allocation22_spill] sm:$0xff]  ;;  %v5254_v3 = vpack.c.bf16 %v1538_v38, %v1537_v34  ;;  %v7079_v16 = vld [vmem:[#allocation24_spill] sm:$0xff]  ;;  %v1496_v38 = vld [vmem:[#allocation2 + $0x38] sm:$0xff] }
  0x9e   : > { %4938 = vmatprep.mubr.f32.mxu0 %v6276_v15  ;;  %5373 = vmatpush3.bf16.msra.mxu0 %v5370_v43  ;;  %v3016_v15 = vld [vmem:[%s6956_s3 + $0x3f0] sm:$0xff]  ;;  %v1536_v43 = vld [vmem:[%s6956_s3 + $0x1d8] sm:$0xff] }
  0x9f   : > { %5375 = vmatprep.subr.bf16.mxu0 %v5374_v11  ;;  %v5250_v32 = vpack.c.bf16 %v1536_v43, %v1535_v22  ;;  %v2982_v22 = vld [vmem:[#allocation2 + $0xc1] sm:$0xff]  ;;  %v6838_v34 = vld [vmem:[#allocation2 + $0x109] sm:$0xff] }
  0xa0   : > { %4563 = vmatmul.mubr.f32.gmra.mrb[24].mxu1 %v7057_v9  ;;  %v6749_v9 = vld [vmem:[#allocation2 + $0x180] sm:$0xff] }
  0xa1   : > { %4939 = vmatmul.mubr.f32.gmra.mrb[8].mxu0 %v6289_v63  ;;  %4565 = vmatprep.mubr.f32.mxu1 %v7058_v20  ;;  %v5386_v63 = vpack.c.bf16 %v3017_v41, %v3016_v15  ;;  %v1539_v20 = vld [vmem:[%s6956_s3 + $0x1f0] sm:$0xff]  ;;  %v7081_v15 = vld [vmem:[#allocation26_spill] sm:$0xff]  ;;  %v6761_v41 = vld [vmem:[#allocation2 + $0x188] sm:$0xff] }
  0xa2   : > { %4941 = vmatprep.mubr.f32.mxu0 %v6298_v56  ;;  %5377 = vmatpush3.bf16.msra.mxu0 %v5374_v11  ;;  %v3371_v56 = vld [vmem:[%s6956_s3 + $0x400] sm:$0xff]  ;;  %v7075_v11 = vld [vmem:[#allocation20_spill] sm:$0xff] }
  0xa3   : > { %5379 = vmatprep.subr.bf16.mxu0 %v5378_v44  ;;  %v6686_v52 = vpack.c.bf16 %v3372_v46, %v3371_v56  ;;  %v5703_v56 = vld [vmem:[#allocation2] sm:$0xff]  ;;  %v2970_v46 = vld [vmem:[#allocation2 + $0x31] sm:$0xff] }
  0xa4   : > { %4566 = vmatmul.mubr.f32.gmra.mrb[26].mxu1 %v7059_v26  ;;  %v7080_v26 = vld [vmem:[#allocation35_spill] sm:$0xff] }
  0xa5   : > { %4942 = vmatmul.mubr.f32.gmra.mrb[10].mxu0 %v6310_v37  ;;  %4568 = vmatprep.mubr.f32.mxu1 %v7060_v2  ;;  %v1124_v37 = vld [vmem:[#allocation2 + $0x2] sm:$0xff] }
  0xa6   : > { %4944 = vmatprep.mubr.f32.mxu0 %v6320_v17  ;;  %5381 = vmatpush3.bf16.msra.mxu0 %v5378_v44  ;;  %v7063_v17 = vmax.f32 %v6252_v50, 0.0  ;;  %v1529_v50 = vld [vmem:[%s6956_s3 + $0x1a0] sm:$0xff]  ;;  %v7078_v44 = vld [vmem:[#allocation33_spill] sm:$0xff] }
  0xa7   : > { %5383 = vmatprep.subr.bf16.mxu0 %v5382_v24 }
  0xa8   : > { %4569 = vmatmul.mubr.f32.gmra.mrb[28].mxu1 %v7061_v6  ;;  %v7083_v6 = vld [vmem:[#allocation30_spill] sm:$0xff] }
  0xa9   : > { %4945 = vmatmul.mubr.f32.gmra.mrb[12].mxu0 %v6340_v30  ;;  %4571 = vmatprep.mubr.f32.mxu1 %v7062_v35  ;;  %v1528_v30 = vld [vmem:[%s6956_s3 + $0x198] sm:$0xff]  ;;  %v7084_v35 = vld [vmem:[#allocation32_spill] sm:$0xff] }
  0xaa   : > { %4947 = vmatprep.mubr.f32.mxu0 %v6349_v10  ;;  %5385 = vmatpush3.bf16.msra.mxu0 %v5382_v24  ;;  %v5234_v10 = vpack.c.bf16 %v1528_v30, %v1527_v53  ;;  %v1540_v24 = vld [vmem:[%s6956_s3 + $0x1f8] sm:$0xff]  ;;  %v7085_v53 = vld [vmem:[#allocation34_spill] sm:$0xff] }
  0xab   : > { %5387 = vmatprep.subr.bf16.mxu0 %v5386_v63  ;;  %v5258_v2 = vpack.c.bf16 %v1540_v24, %v1539_v20  ;;  %v2971_v30 = vld [vmem:[#allocation2 + $0x39] sm:$0xff] }
  0xac   : > { %4572 = vmatmul.mubr.f32.gmra.mrb[30].mxu1 %v7063_v17  ;;  %v3374_v17 = vld [vmem:[%s6956_s3 + $0x418] sm:$0xff]  ;;  %v1499_v20 = vld [vmem:[#allocation2 + $0x60] sm:$0xff] }
  0xad   : > { %4948 = vmatmul.mubr.f32.gmra.mrb[14].mxu0 %v6366_v54  ;;  %4606 = vmatprep.mubr.f32.mxu1 %v1124_v37  ;;  %v5238_v54 = vpack.c.bf16 %v1530_v40, %v1529_v50  ;;  %v3373_v37 = vld [vmem:[%s6956_s3 + $0x410] sm:$0xff]  ;;  %v3375_v40 = vld [vmem:[%s6956_s3 + $0x420] sm:$0xff] }
  0xae   : > { %4950 = vmatprep.mubr.f32.mxu0 %v6373_v39  ;;  %5389 = vmatpush3.bf16.msra.mxu0 %v5386_v63  ;;  %v1531_v39 = vld [vmem:[%s6956_s3 + $0x1b0] sm:$0xff]  ;;  %v6853_v24 = vld [vmem:[#allocation2 + $0x139] sm:$0xff] }
  0xaf   : > { %5391 = vmatprep.subr.bf16.mxu0 %v6686_v52  ;;  %v7082_v63 = vld [vmem:[#allocation28_spill] sm:$0xff] }
  0xb0   : > { %4607 = vmatmul.mubr.f32.vlgmr.msra.gmra.mrb[0].mxu1 %v1125_v57  ;;  %v2972_v57 = vld [vmem:[#allocation2 + $0x49] sm:$0xff] }
  0xb1   : > { %4951 = vmatmul.mubr.f32.gmra.mrb[16].mxu0 %v6386_v7  ;;  %5233 = vmatpush3.bf16.msra.mxu1 %v6590_v21  ;;  %v7065_v7 = vld [vmem:[#allocation14_spill] sm:$0xff]  ;;  %v7066_v21 = vld [vmem:[#allocation21_spill] sm:$0xff]  ;;  %v7086_v50 = vld [vmem:[#allocation4_spill] sm:$0xff] }
  0xb2   : > { %4609 = vmatprep.mubr.f32.mxu1 %v6323_v49  ;;  %4953 = vmatprep.mubr.f32.mxu0 %v6391_v31  ;;  %v5242_v49 = vpack.c.bf16 %v1532_v60, %v1531_v39  ;;  %v7067_v31 = vld [vmem:[#allocation15_spill] sm:$0xff]  ;;  %v2973_v39 = vld [vmem:[#allocation2 + $0x51] sm:$0xff] }
  0xb3   : > { %5235 = vmatprep.subr.bf16.mxu1 %v5234_v10  ;;  %v2974_v60 = vld [vmem:[#allocation2 + $0x61] sm:$0xff] }
  0xb4   : > { %4610 = vmatmul.mubr.f32.gmra.mrb[2].mxu1 %v6347_v48  ;;  %v1533_v48 = vld [vmem:[%s6956_s3 + $0x1c0] sm:$0xff] }
  0xb5   : > { %4954 = vmatmul.mubr.f32.gmra.mrb[18].mxu0 %v7064_v62  ;;  %4612 = vmatprep.mubr.f32.mxu1 %v7065_v7  ;;  %v5246_v25 = vpack.c.bf16 %v1534_v29, %v1533_v48  ;;  %v3378_v7 = vld [vmem:[%s6956_s3 + $0x438] sm:$0xff] }
  0xb6   : > { %4956 = vmatprep.mubr.f32.mxu0 %v7066_v21  ;;  %5237 = vmatpush3.bf16.msra.mxu1 %v5234_v10  ;;  %v5394_v10 = vpack.c.bf16 %v3374_v17, %v3373_v37  ;;  %v2978_v48 = vld [vmem:[#allocation2 + $0x91] sm:$0xff]  ;;  %v5704_v17 = vld [vmem:[#allocation2 + $0x159] sm:$0xff] }
  0xb7   : > { %5239 = vmatprep.subr.bf16.mxu1 %v5238_v54  ;;  %v7091_v37 = vld [vmem:[#allocation8_spill] sm:$0xff] }
  0xb8   : > { %4613 = vmatmul.mubr.f32.gmra.mrb[4].mxu1 %v7067_v31  ;;  %v3380_v31 = vld [vmem:[%s6956_s3 + $0x448] sm:$0xff] }
  0xb9   : > { %4957 = vmatmul.mubr.f32.gmra.mrb[20].mxu0 %v7068_v4  ;;  %4615 = vmatprep.mubr.f32.mxu1 %v7069_v59  ;;  %v3381_v4 = vld [vmem:[%s6956_s3 + $0x450] sm:$0xff]  ;;  %v3382_v59 = vld [vmem:[%s6956_s3 + $0x458] sm:$0xff] }
  0xba   : > { %4959 = vmatprep.mubr.f32.mxu0 %v7070_v12  ;;  %5241 = vmatpush3.bf16.msra.mxu1 %v5238_v54  ;;  %v3376_v54 = vld [vmem:[%s6956_s3 + $0x428] sm:$0xff] }
  0xbb   : > { %5243 = vmatprep.subr.bf16.mxu1 %v5242_v49  ;;  %v5398_v62 = vpack.c.bf16 %v3376_v54, %v3375_v40  ;;  %v2980_v12 = vld [vmem:[#allocation2 + $0xa9] sm:$0xff] }
  0xbc   : > { %4616 = vmatmul.mubr.f32.gmra.mrb[6].mxu1 %v7071_v23  ;;  %v3384_v23 = vld [vmem:[%s6956_s3 + $0x468] sm:$0xff]  ;;  %v1506_v40 = vld [vmem:[#allocation2 + $0xb0] sm:$0xff] }
  0xbd   : > { %4960 = vmatmul.mubr.f32.gmra.mrb[22].mxu0 %v7072_v27  ;;  %4618 = vmatprep.mubr.f32.mxu1 %v7073_v13  ;;  %v3386_v27 = vld [vmem:[%s6956_s3 + $0x478] sm:$0xff]  ;;  %v7093_v54 = vld [vmem:[#allocation12_spill] sm:$0xff] }
  0xbe   : > { %4962 = vmatprep.mubr.f32.mxu0 %v7074_v1  ;;  %5245 = vmatpush3.bf16.msra.mxu1 %v5242_v49  ;;  %v7087_v49 = vld [vmem:[#allocation36_spill] sm:$0xff]  ;;  %v6824_v13 = vld [vmem:[#allocation2 + $0xd9] sm:$0xff] }
  0xbf   : > { %5247 = vmatprep.subr.bf16.mxu1 %v5246_v25 }
  0xc0   : > { %4619 = vmatmul.mubr.f32.gmra.mrb[8].mxu1 %v7075_v11  ;;  %v6831_v11 = vld [vmem:[#allocation2 + $0xf1] sm:$0xff] }
  0xc1   : > { %4963 = vmatmul.mubr.f32.gmra.mrb[24].mxu0 %v7076_v42  ;;  %4621 = vmatprep.mubr.f32.mxu1 %v7077_v61  ;;  %v1497_v42 = vld [vmem:[#allocation2 + $0x48] sm:$0xff] }
  0xc2   : > { %4965 = vmatprep.mubr.f32.mxu0 %v7078_v44  ;;  %5249 = vmatpush3.bf16.msra.mxu1 %v5246_v25  ;;  %v5410_v25 = vpack.c.bf16 %v3382_v59, %v3381_v4  ;;  %v6845_v61 = vld [vmem:[#allocation2 + $0x121] sm:$0xff]  ;;  %v7088_v44 = vld [vmem:[#allocation5_spill] sm:$0xff]  ;;  %v3341_v4 = vld [vmem:[#allocation2 + $0x4a] sm:$0xff] }
  0xc3   : > { %5251 = vmatprep.subr.bf16.mxu1 %v5250_v32  ;;  %v1512_v59 = vld [vmem:[#allocation2 + $0xf8] sm:$0xff] }
  0xc4   : > { %4622 = vmatmul.mubr.f32.gmra.mrb[10].mxu1 %v7079_v16  ;;  %v6850_v16 = vld [vmem:[#allocation2 + $0x129] sm:$0xff] }
  0xc5   : > { %4966 = vmatmul.mubr.f32.gmra.mrb[26].mxu0 %v7080_v26  ;;  %4624 = vmatprep.mubr.f32.mxu1 %v7081_v15  ;;  %v7089_v26 = vld [vmem:[#allocation6_spill] sm:$0xff]  ;;  %v1500_v15 = vld [vmem:[#allocation2 + $0x68] sm:$0xff] }
  0xc6   : > { %4968 = vmatprep.mubr.f32.mxu0 %v6749_v9  ;;  %5253 = vmatpush3.bf16.msra.mxu1 %v5250_v32  ;;  %v1493_v32 = vld [vmem:[#allocation2 + $0x18] sm:$0xff] }
  0xc7   : > { %5255 = vmatprep.subr.bf16.mxu1 %v5254_v3 }
  0xc8   : > { %4625 = vmatmul.mubr.f32.gmra.mrb[12].mxu1 %v7082_v63  ;;  %v1501_v63 = vld [vmem:[#allocation2 + $0x78] sm:$0xff] }
  0xc9   : > { %4969 = vmatmul.mubr.f32.gmra.mrb[28].mxu0 %v6761_v41  ;;  %4627 = vmatprep.mubr.f32.mxu1 %v7083_v6  ;;  %v6861_v6 = vld [vmem:[#allocation2 + $0x151] sm:$0xff] }
  0xca   : > { %4971 = vmatprep.mubr.f32.mxu0 %v5703_v56  ;;  %5257 = vmatpush3.bf16.msra.mxu1 %v5254_v3  ;;  %v1498_v3 = vld [vmem:[#allocation2 + $0x50] sm:$0xff] }
  0xcb   : > { %5259 = vmatprep.subr.bf16.mxu1 %v5258_v2 }
  0xcc   : > { %4628 = vmatmul.mubr.f32.gmra.mrb[14].mxu1 %v7084_v35  ;;  %v1503_v35 = vld [vmem:[#allocation2 + $0x90] sm:$0xff] }
  0xcd   : > { %4972 = vmatmul.mubr.f32.gmra.mrb[30].mxu0 %v5703_v56  ;;  %4630 = vmatprep.mubr.f32.mxu1 %v7085_v53  ;;  %v7090_v56 = vld [vmem:[#allocation7_spill] sm:$0xff]  ;;  %v1504_v53 = vld [vmem:[#allocation2 + $0x98] sm:$0xff] }
  0xce   : > { %5006 = vmatprep.mubr.f32.mxu0 %v2970_v46  ;;  %5261 = vmatpush3.bf16.msra.mxu1 %v5258_v2  ;;  %v6858_v2 = vld [vmem:[#allocation2 + $0x141] sm:$0xff] }
  0xcf   : > { %5422 = vmatprep.subr.bf16.mxu1 %v7086_v50  ;;  %v1502_v46 = vld [vmem:[#allocation2 + $0x80] sm:$0xff] }
  0xd0   : > { %4631 = vmatmul.mubr.f32.gmra.mrb[16].mxu1 %v6479_v45  ;;  %v3377_v45 = vld [vmem:[%s6956_s3 + $0x430] sm:$0xff] }
  0xd1   : > { %5007 = vmatmul.mubr.f32.vlgmr.msra.gmra.mrb[0].mxu0 %v2971_v30  ;;  %4633 = vmatprep.mubr.f32.mxu1 %v6481_v8  ;;  %v2975_v8 = vld [vmem:[#allocation2 + $0x69] sm:$0xff]  ;;  %v5402_v21 = vpack.c.bf16 %v3378_v7, %v3377_v45  ;;  %v7095_v45 = vld [vmem:[#allocation10_spill] sm:$0xff]  ;;  %v7096_v7 = vld [vmem:[#allocation13_spill] sm:$0xff] }
  0xd2   : > { %5393 = vmatpush3.bf16.msra.mxu0 %v6686_v52  ;;  %5009 = vmatprep.mubr.f32.mxu0 %v2972_v57  ;;  %v2976_v52 = vld [vmem:[#allocation2 + $0x79] sm:$0xff]  ;;  %v5705_v30 = vld [vmem:[#allocation2 + $0x169] sm:$0xff] }
  0xd3   : > { %5395 = vmatprep.subr.bf16.mxu0 %v5394_v10  ;;  %v1505_v57 = vld [vmem:[#allocation2 + $0xa8] sm:$0xff] }
  0xd4   : > { %4634 = vmatmul.mubr.f32.gmra.mrb[18].mxu1 %v6494_v55  ;;  %v3379_v55 = vld [vmem:[%s6956_s3 + $0x440] sm:$0xff] }
  0xd5   : > { %5010 = vmatmul.mubr.f32.gmra.mrb[2].mxu0 %v2973_v39  ;;  %4636 = vmatprep.mubr.f32.mxu1 %v6496_v18  ;;  %v2977_v18 = vld [vmem:[#allocation2 + $0x81] sm:$0xff]  ;;  %v5406_v29 = vpack.c.bf16 %v3380_v31, %v3379_v55  ;;  %v7094_v39 = vmax.f32 %v7093_v54, 0.0  ;;  %v3339_v55 = vld [vmem:[#allocation2 + $0x32] sm:$0xff] }
  0xd6   : > { %5012 = vmatprep.mubr.f32.mxu0 %v2974_v60  ;;  %5397 = vmatpush3.bf16.msra.mxu0 %v5394_v10  ;;  %v7092_v10 = vld [vmem:[#allocation9_spill] sm:$0xff]  ;;  %v1507_v60 = vld [vmem:[#allocation2 + $0xc0] sm:$0xff]  ;;  %v7098_v31 = vld [vmem:[#allocation11_spill] sm:$0xff] }
  0xd7   : > { %5399 = vmatprep.subr.bf16.mxu0 %v5398_v62 }
  0xd8   : > { %4637 = vmatmul.mubr.f32.gmra.mrb[20].mxu1 %v7087_v49  ;;  %v1509_v49 = vld [vmem:[#allocation2 + $0xd8] sm:$0xff] }
  0xd9   : > { %5013 = vmatmul.mubr.f32.gmra.mrb[4].mxu0 %v2975_v8  ;;  %4639 = vmatprep.mubr.f32.mxu1 %v6511_v47  ;;  %v2979_v47 = vld [vmem:[#allocation2 + $0x99] sm:$0xff]  ;;  %v7097_v8 = vmax.f32 %v7096_v7, 0.0 }
  0xda   : > { %5015 = vmatprep.mubr.f32.mxu0 %v2976_v52  ;;  %5401 = vmatpush3.bf16.msra.mxu0 %v5398_v62  ;;  %v3000_v62 = vld [vmem:[#allocation2 + $0x199] sm:$0xff]  ;;  %v1508_v52 = vld [vmem:[#allocation2 + $0xc8] sm:$0xff] }
  0xdb   : > { %5403 = vmatprep.subr.bf16.mxu0 %v5402_v21 }
  0xdc   : > { %4640 = vmatmul.mubr.f32.gmra.mrb[22].mxu1 %v6523_v51  ;;  %v3383_v51 = vld [vmem:[%s6956_s3 + $0x460] sm:$0xff] }
  0xdd   : > { %5016 = vmatmul.mubr.f32.gmra.mrb[6].mxu0 %v2977_v18  ;;  %4642 = vmatprep.mubr.f32.mxu1 %v6525_v14  ;;  %v2981_v14 = vld [vmem:[#allocation2 + $0xb1] sm:$0xff]  ;;  %v5414_v43 = vpack.c.bf16 %v3384_v23, %v3383_v51  ;;  %v1510_v18 = vld [vmem:[#allocation2 + $0xe0] sm:$0xff] }
  0xde   : > { %5018 = vmatprep.mubr.f32.mxu0 %v2978_v48  ;;  %5405 = vmatpush3.bf16.msra.mxu0 %v5402_v21  ;;  %v3001_v21 = vld [vmem:[#allocation2 + $0x1a1] sm:$0xff]  ;;  %v1514_v51 = vld [vmem:[#allocation2 + $0x110] sm:$0xff] }
  0xdf   : > { %5407 = vmatprep.subr.bf16.mxu0 %v5406_v29  ;;  %v3340_v48 = vld [vmem:[#allocation2 + $0x3a] sm:$0xff]  ;;  %v3344_v23 = vld [vmem:[#allocation2 + $0x6a] sm:$0xff] }
  0xe0   : > { %4643 = vmatmul.mubr.f32.gmra.mrb[24].mxu1 %v6537_v0  ;;  %v3385_v0 = vld [vmem:[%s6956_s3 + $0x470] sm:$0xff] }
  0xe1   : > { %5019 = vmatmul.mubr.f32.gmra.mrb[8].mxu0 %v2979_v47  ;;  %4645 = vmatprep.mubr.f32.mxu1 %v6539_v33  ;;  %v2983_v33 = vld [vmem:[#allocation2 + $0xc9] sm:$0xff]  ;;  %v5418_v1 = vpack.c.bf16 %v3386_v27, %v3385_v0  ;;  %v3342_v47 = vld [vmem:[#allocation2 + $0x52] sm:$0xff] }
  0xe2   : > { %5021 = vmatprep.mubr.f32.mxu0 %v2980_v12  ;;  %5409 = vmatpush3.bf16.msra.mxu0 %v5406_v29  ;;  %v1511_v29 = vld [vmem:[#allocation2 + $0xf0] sm:$0xff]  ;;  %v1513_v12 = vld [vmem:[#allocation2 + $0x108] sm:$0xff]  ;;  %v1517_v27 = vld [vmem:[#allocation2 + $0x138] sm:$0xff] }
  0xe3   : > { %5411 = vmatprep.subr.bf16.mxu0 %v5410_v25  ;;  %v3346_v0 = vld [vmem:[#allocation2 + $0x82] sm:$0xff] }
  0xe4   : > { %4646 = vmatmul.mubr.f32.gmra.mrb[26].mxu1 %v6551_v5  ;;  %v6829_v5 = vld [vmem:[#allocation2 + $0xe1] sm:$0xff] }
  0xe5   : > { %5022 = vmatmul.mubr.f32.gmra.mrb[10].mxu0 %v2981_v14  ;;  %4648 = vmatprep.mubr.f32.mxu1 %v6553_v19  ;;  %v1494_v19 = vld [vmem:[#allocation2 + $0x20] sm:$0xff] }
  0xe6   : > { %5024 = vmatprep.mubr.f32.mxu0 %v2982_v22  ;;  %5413 = vmatpush3.bf16.msra.mxu0 %v5410_v25  ;;  %v3343_v25 = vld [vmem:[#allocation2 + $0x62] sm:$0xff]  ;;  %v3345_v22 = vld [vmem:[#allocation2 + $0x7a] sm:$0xff] }
  0xe7   : > { %5415 = vmatprep.subr.bf16.mxu0 %v5414_v43  ;;  %v1515_v14 = vld [vmem:[#allocation2 + $0x120] sm:$0xff] }
  0xe8   : > { %4649 = vmatmul.mubr.f32.gmra.mrb[28].mxu1 %v6565_v28  ;;  %v6836_v28 = vld [vmem:[#allocation2 + $0xf9] sm:$0xff] }
  0xe9   : > { %5025 = vmatmul.mubr.f32.gmra.mrb[12].mxu0 %v2983_v33  ;;  %4651 = vmatprep.mubr.f32.mxu1 %v6567_v58  ;;  %v1495_v58 = vld [vmem:[#allocation2 + $0x30] sm:$0xff] }
  0xea   : > { %5027 = vmatprep.mubr.f32.mxu0 %v6824_v13  ;;  %5417 = vmatpush3.bf16.msra.mxu0 %v5414_v43  ;;  %v1516_v43 = vld [vmem:[#allocation2 + $0x128] sm:$0xff]  ;;  %v3347_v33 = vld [vmem:[#allocation2 + $0x92] sm:$0xff] }
  0xeb   : > { %5419 = vmatprep.subr.bf16.mxu0 %v5418_v1 }
  0xec   : > { %4652 = vmatmul.mubr.f32.gmra.mrb[30].mxu1 %v6579_v36  ;;  %v6843_v36 = vld [vmem:[#allocation2 + $0x111] sm:$0xff] }
  0xed   : > { %5028 = vmatmul.mubr.f32.gmra.mrb[14].mxu0 %v6829_v5  ;;  %4686 = vmatprep.mubr.f32.mxu1 %v1493_v32  ;;  %v3348_v32 = vld [vmem:[#allocation2 + $0x9a] sm:$0xff] }
  0xee   : > { %5030 = vmatprep.mubr.f32.mxu0 %v6831_v11  ;;  %5421 = vmatpush3.bf16.msra.mxu0 %v5418_v1  ;;  %v1518_v1 = vld [vmem:[#allocation2 + $0x140] sm:$0xff] }
  0xf0   : > { %4687 = vmatmul.mubr.f32.vlgmr.msra.gmra.mrb[0].mxu1 %v1494_v19  ;;  %v1519_v19 = vld [vmem:[#allocation2 + $0x150] sm:$0xff] }
  0xf1   : > { %5031 = vmatmul.mubr.f32.gmra.mrb[16].mxu0 %v6836_v28  ;;  %5430 = vmatpush3.bf16.msra.mxu1 %v7086_v50  ;;  %v5706_v50 = vld [vmem:[#allocation2 + $0x171] sm:$0xff] }
  0xf2   : > { %4689 = vmatprep.mubr.f32.mxu1 %v1495_v58  ;;  %5033 = vmatprep.mubr.f32.mxu0 %v6838_v34  ;;  %v3349_v58 = vld [vmem:[#allocation2 + $0xaa] sm:$0xff] }
  0xf3   : > { %5423 = vmatprep.subr.bf16.mxu1 %v7088_v44 }
  0xf4   : > { %4690 = vmatmul.mubr.f32.gmra.mrb[2].mxu1 %v1496_v38  ;;  %v1520_v38 = vld [vmem:[#allocation2 + $0x158] sm:$0xff] }
  0xf5   : > { %5034 = vmatmul.mubr.f32.gmra.mrb[18].mxu0 %v6843_v36  ;;  %4692 = vmatprep.mubr.f32.mxu1 %v1497_v42  ;;  %v3350_v42 = vld [vmem:[#allocation2 + $0xb2] sm:$0xff] }
  0xf6   : > { %5036 = vmatprep.mubr.f32.mxu0 %v6845_v61  ;;  %5431 = vmatpush3.bf16.msra.mxu1 %v7088_v44  ;;  %v1521_v44 = vld [vmem:[#allocation2 + $0x168] sm:$0xff] }
  0xf7   : > { %5424 = vmatprep.subr.bf16.mxu1 %v7089_v26 }
  0xf8   : > { %4693 = vmatmul.mubr.f32.gmra.mrb[4].mxu1 %v1498_v3  ;;  %v3351_v3 = vld [vmem:[#allocation2 + $0xc2] sm:$0xff] }
  0xf9   : > { %5037 = vmatmul.mubr.f32.gmra.mrb[20].mxu0 %v6850_v16  ;;  %4695 = vmatprep.mubr.f32.mxu1 %v1499_v20  ;;  %v1522_v20 = vld [vmem:[#allocation2 + $0x170] sm:$0xff] }
  0xfa   : > { %5039 = vmatprep.mubr.f32.mxu0 %v6853_v24  ;;  %5432 = vmatpush3.bf16.msra.mxu1 %v7089_v26  ;;  %v3352_v26 = vld [vmem:[#allocation2 + $0xca] sm:$0xff] }
  0xfb   : > { %5425 = vmatprep.subr.bf16.mxu1 %v7090_v56 }
  0xfc   : > { %4696 = vmatmul.mubr.f32.gmra.mrb[6].mxu1 %v1500_v15  ;;  %v3353_v15 = vld [vmem:[#allocation2 + $0xda] sm:$0xff] }
  0xfd   : > { %5040 = vmatmul.mubr.f32.gmra.mrb[22].mxu0 %v6858_v2  ;;  %4698 = vmatprep.mubr.f32.mxu1 %v1501_v63  ;;  %v3354_v63 = vld [vmem:[#allocation2 + $0xe2] sm:$0xff] }
  0xfe   : > { %5042 = vmatprep.mubr.f32.mxu0 %v6861_v6  ;;  %5433 = vmatpush3.bf16.msra.mxu1 %v7090_v56  ;;  %v3355_v56 = vld [vmem:[#allocation2 + $0xf2] sm:$0xff] }
  0xff   : > { %5426 = vmatprep.subr.bf16.mxu1 %v7091_v37 }
 0x100   : > { %4699 = vmatmul.mubr.f32.gmra.mrb[8].mxu1 %v1502_v46  ;;  %v3356_v46 = vld [vmem:[#allocation2 + $0xfa] sm:$0xff] }
 0x101   : > { %5043 = vmatmul.mubr.f32.gmra.mrb[24].mxu0 %v5704_v17  ;;  %4701 = vmatprep.mubr.f32.mxu1 %v1503_v35  ;;  %v3357_v35 = vld [vmem:[#allocation2 + $0x10a] sm:$0xff]  ;;  %v3359_v17 = vld [vmem:[#allocation2 + $0x122] sm:$0xff] }
 0x102   : > { %5045 = vmatprep.mubr.f32.mxu0 %v5705_v30  ;;  %5434 = vmatpush3.bf16.msra.mxu1 %v7091_v37  ;;  %v3358_v37 = vld [vmem:[#allocation2 + $0x112] sm:$0xff]  ;;  %v3368_v30 = vld [vmem:[#allocation2 + $0x18a] sm:$0xff] }
 0x103   : > { %5427 = vmatprep.subr.bf16.mxu1 %v7092_v10 }
 0x104   : > { %4702 = vmatmul.mubr.f32.gmra.mrb[10].mxu1 %v1504_v53  ;;  %v3367_v53 = vld [vmem:[#allocation2 + $0x182] sm:$0xff] }
 0x105   : > { %5046 = vmatmul.mubr.f32.gmra.mrb[26].mxu0 %v5706_v50  ;;  %4704 = vmatprep.mubr.f32.mxu1 %v1505_v57  ;;  %v3369_v57 = vld [vmem:[#allocation2 + $0x19a] sm:$0xff] }
 0x106   : > { %5048 = vmatprep.mubr.f32.mxu0 %v7094_v39  ;;  %5435 = vmatpush3.bf16.msra.mxu1 %v7092_v10  ;;  %v3370_v10 = vld [vmem:[#allocation2 + $0x1a2] sm:$0xff] }
 0x107   : > { %5428 = vmatprep.subr.bf16.mxu1 %v7095_v45 }
 0x108   : > { %4705 = vmatmul.mubr.f32.gmra.mrb[12].mxu1 %v1506_v40 }
 0x109   : > { %5049 = vmatmul.mubr.f32.gmra.mrb[28].mxu0 %v7097_v8  ;;  %4707 = vmatprep.mubr.f32.mxu1 %v1507_v60 }
 0x10a   : > { %5051 = vmatprep.mubr.f32.mxu0 %v3000_v62  ;;  %5436 = vmatpush3.bf16.msra.mxu1 %v7095_v45 }
 0x10b   : > { %5429 = vmatprep.subr.bf16.mxu1 %v7098_v31 }
 0x10c   : > { %4708 = vmatmul.mubr.f32.gmra.mrb[14].mxu1 %v1508_v52 }
 0x10d   : > { %5052 = vmatmul.mubr.f32.gmra.mrb[30].mxu0 %v3001_v21  ;;  %4710 = vmatprep.mubr.f32.mxu1 %v1509_v49 }
 0x10e   : > { %5086 = vmatprep.mubr.f32.mxu0 %v3339_v55  ;;  %5437 = vmatpush3.bf16.msra.mxu1 %v7098_v31 }
 0x110   : > { %4711 = vmatmul.mubr.f32.gmra.mrb[16].mxu1 %v1510_v18 }
 0x111   : > { %5087 = vmatmul.mubr.f32.vlgmr.msra.gmra.mrb[0].mxu0 %v3340_v48  ;;  %4713 = vmatprep.mubr.f32.mxu1 %v1511_v29 }
 0x112   : > { %5089 = vmatprep.mubr.f32.mxu0 %v3341_v4 }
 0x114   : > { %4714 = vmatmul.mubr.f32.gmra.mrb[18].mxu1 %v1512_v59 }
 0x115   : > { %5090 = vmatmul.mubr.f32.gmra.mrb[2].mxu0 %v3342_v47  ;;  %4716 = vmatprep.mubr.f32.mxu1 %v1513_v12 }
 0x116   : > { %5092 = vmatprep.mubr.f32.mxu0 %v3343_v25 }
 0x118   : > { %4717 = vmatmul.mubr.f32.gmra.mrb[20].mxu1 %v1514_v51 }
 0x119   : > { %5093 = vmatmul.mubr.f32.gmra.mrb[4].mxu0 %v3344_v23  ;;  %4719 = vmatprep.mubr.f32.mxu1 %v1515_v14 }
 0x11a   : > { %5095 = vmatprep.mubr.f32.mxu0 %v3345_v22 }
 0x11c   : > { %4720 = vmatmul.mubr.f32.gmra.mrb[22].mxu1 %v1516_v43 }
 0x11d   : > { %5096 = vmatmul.mubr.f32.gmra.mrb[6].mxu0 %v3346_v0  ;;  %4722 = vmatprep.mubr.f32.mxu1 %v1517_v27 }
 0x11e   : > { %5098 = vmatprep.mubr.f32.mxu0 %v3347_v33 }
 0x120   : > { %4723 = vmatmul.mubr.f32.gmra.mrb[24].mxu1 %v1518_v1 }
 0x121   : > { %5099 = vmatmul.mubr.f32.gmra.mrb[8].mxu0 %v3348_v32  ;;  %4725 = vmatprep.mubr.f32.mxu1 %v1519_v19 }
 0x122   : > { %5101 = vmatprep.mubr.f32.mxu0 %v3349_v58 }
 0x124   : > { %4726 = vmatmul.mubr.f32.gmra.mrb[26].mxu1 %v1520_v38 }
 0x125   : > { %5102 = vmatmul.mubr.f32.gmra.mrb[10].mxu0 %v3350_v42  ;;  %4728 = vmatprep.mubr.f32.mxu1 %v1521_v44 }
 0x126   : > { %5104 = vmatprep.mubr.f32.mxu0 %v3351_v3 }
 0x128   : > { %4729 = vmatmul.mubr.f32.gmra.mrb[28].mxu1 %v1522_v20 }
 0x129   : > { %5105 = vmatmul.mubr.f32.gmra.mrb[12].mxu0 %v3352_v26  ;;  %4731 = vmatprep.mubr.f32.mxu1 %v6749_v9  ;;  %v3360_v9 = vld [vmem:[#allocation2 + $0x12a] sm:$0xff] }
 0x12a   : > { %5107 = vmatprep.mubr.f32.mxu0 %v3353_v15 }
 0x12c   : > { %4732 = vmatmul.mubr.f32.gmra.mrb[30].mxu1 %v6761_v41  ;;  %v3361_v41 = vld [vmem:[#allocation2 + $0x13a] sm:$0xff] }
 0x12d   : > { %5108 = vmatmul.mubr.f32.gmra.mrb[14].mxu0 %v3354_v63  ;;  %4790 = vmatprep.mubr.f32.mxu1 %v6824_v13  ;;  %v3362_v13 = vld [vmem:[#allocation2 + $0x142] sm:$0xff] }
 0x12e   : > { %5110 = vmatprep.mubr.f32.mxu0 %v3355_v56 }
 0x130   : > { %4791 = vmatmul.mubr.f32.vlgmr.msra.gmra.mrb[16].mxu1 %v6829_v5  ;;  %v3363_v5 = vld [vmem:[#allocation2 + $0x152] sm:$0xff] }
 0x131   : > { %5111 = vmatmul.mubr.f32.gmra.mrb[16].mxu0 %v3356_v46  ;;  %4793 = vmatprep.mubr.f32.mxu1 %v6831_v11  ;;  %v3364_v11 = vld [vmem:[#allocation2 + $0x15a] sm:$0xff] }
 0x132   : > { %5113 = vmatprep.mubr.f32.mxu0 %v3357_v35 }
 0x134   : > { %4794 = vmatmul.mubr.f32.gmra.mrb[18].mxu1 %v6836_v28  ;;  %v3365_v28 = vld [vmem:[#allocation2 + $0x16a] sm:$0xff] }
 0x135   : > { %5114 = vmatmul.mubr.f32.gmra.mrb[18].mxu0 %v3358_v37  ;;  %4796 = vmatprep.mubr.f32.mxu1 %v6838_v34  ;;  %v1889_v34 = vld [vmem:[#allocation2 + $0x159] sm:$0xff] }
 0x136   : > { %5116 = vmatprep.mubr.f32.mxu0 %v3359_v17 }
 0x138   : > { %4797 = vmatmul.mubr.f32.gmra.mrb[20].mxu1 %v6843_v36  ;;  %v3366_v36 = vld [vmem:[#allocation2 + $0x172] sm:$0xff] }
 0x139   : > { %5117 = vmatmul.mubr.f32.gmra.mrb[20].mxu0 %v3360_v9  ;;  %4799 = vmatprep.mubr.f32.mxu1 %v6845_v61  ;;  %v1890_v61 = vld [vmem:[#allocation2 + $0x169] sm:$0xff] }
 0x13a   : > { %5119 = vmatprep.mubr.f32.mxu0 %v3361_v41 }
 0x13c   : > { %4800 = vmatmul.mubr.f32.gmra.mrb[22].mxu1 %v6850_v16  ;;  %v1891_v16 = vld [vmem:[#allocation2 + $0x171] sm:$0xff] }
 0x13d   : > { %5120 = vmatmul.mubr.f32.gmra.mrb[22].mxu0 %v3362_v13  ;;  %4802 = vmatprep.mubr.f32.mxu1 %v6853_v24  ;;  %v1892_v24 = vld [vmem:[#allocation2 + $0x181] sm:$0xff] }
 0x13e   : > { %5122 = vmatprep.mubr.f32.mxu0 %v3363_v5 }
 0x140   : > { %4803 = vmatmul.mubr.f32.gmra.mrb[24].mxu1 %v6858_v2  ;;  %v1893_v2 = vld [vmem:[#allocation2 + $0x189] sm:$0xff] }
 0x141   : > { %5123 = vmatmul.mubr.f32.gmra.mrb[24].mxu0 %v3364_v11  ;;  %4805 = vmatprep.mubr.f32.mxu1 %v6861_v6 }
 0x142   : > { %5125 = vmatprep.mubr.f32.mxu0 %v3365_v28 }
 0x144   : > { %4806 = vmatmul.mubr.f32.gmra.mrb[26].mxu1 %v1889_v34 }
 0x145   : > { %5126 = vmatmul.mubr.f32.gmra.mrb[26].mxu0 %v3366_v36  ;;  %4808 = vmatprep.mubr.f32.mxu1 %v1890_v61 }
 0x146   : > { %5128 = vmatprep.mubr.f32.mxu0 %v3367_v53 }
 0x148   : > { %4809 = vmatmul.mubr.f32.gmra.mrb[28].mxu1 %v1891_v16 }
 0x149   : > { %5129 = vmatmul.mubr.f32.gmra.mrb[28].mxu0 %v3368_v30  ;;  %4811 = vmatprep.mubr.f32.mxu1 %v1892_v24 }
 0x14a   : > { %5131 = vmatprep.mubr.f32.mxu0 %v3369_v57 }
 0x14c   : > { %4812 = vmatmul.mubr.f32.gmra.mrb[30].mxu1 %v1893_v2 }
 0x14d   : > { %5132 = vmatmul.mubr.f32.gmra.mrb[30].mxu0 %v3370_v10 }
 0x1c3   : > { %v4688_v6 = vpop.f32.mrb[0].mxu1 }
 0x1c4   : > { %v1607_v50 = vpop.f32.mrb[1].mxu1 }
 0x1c7   : > { %v4691_v40 = vpop.f32.mrb[2].mxu1 }
 0x1c8   : > { %v1617_v54 = vpop.f32.mrb[3].mxu1 }
 0x1cb   : > { %v4694_v39 = vpop.f32.mrb[4].mxu1 }
 0x1cc   : > { %v1627_v60 = vpop.f32.mrb[5].mxu1 }
 0x1cf   : > { %v4697_v62 = vpop.f32.mrb[6].mxu1 }
 0x1d0   : > { %v1637_v45 = vpop.f32.mrb[7].mxu1 }
 0x1d3   : > { %v4700_v7 = vpop.f32.mrb[8].mxu1 }
 0x1d4   : > { %v1647_v8 = vpop.f32.mrb[9].mxu1 }
 0x1d7   : > { %v4703_v52 = vpop.f32.mrb[10].mxu1 }
 0x1d8   : > { %v6892_v21 = vpop.f32.mrb[11].mxu1 }
 0x1db   : > { %v6894_v49 = vpop.f32.mrb[12].mxu1 }
 0x1dc   : > { %v6896_v55 = vpop.f32.mrb[13].mxu1 }
 0x1df   : > { %v6898_v31 = vpop.f32.mrb[14].mxu1 }
 0x1e0   : > { %v6900_v18 = vpop.f32.mrb[15].mxu1 }
 0x1e4   : > { %v5088_v48 = vpop.f32.mrb[0].mxu0 }
 0x1e5   : > { %v5438_v29 = vadd.f32 %v5088_v48, %v4688_v6  ;;  %v3453_v4 = vpop.f32.mrb[1].mxu0 }
 0x1e6   : > { %v5439_v59 = vadd.f32 %v3453_v4, %v1607_v50 }
 0x1e7   : > { %v3779_v47 = vmul.f32 %v5438_v29, %v5438_v29  ;;  %3849 = vst [vmem:[%s6907_s12 + $0x8] sm:$0xff] %v5438_v29 }
 0x1e8   : > { %v3740_v12 = vadd.f32 %v5439_v59, %v5438_v29  ;;  %v3778_v25 = vmul.f32 %v5439_v59, %v5439_v59  ;;  %3848 = vst [vmem:[%s6907_s12] sm:$0xff] %v5439_v59  ;;  %v5091_v51 = vpop.f32.mrb[2].mxu0 }
 0x1e9   : > { %v5440_v23 = vadd.f32 %v5091_v51, %v4691_v40  ;;  %v3463_v14 = vpop.f32.mrb[3].mxu0 }
 0x1ea   : > { %v3810_v22 = vadd.f32 %v3779_v47, %v3778_v25  ;;  %v5441_v43 = vadd.f32 %v3463_v14, %v1617_v54 }
 0x1eb   : > { %3851 = vst [vmem:[%s6907_s12 + $0x18] sm:$0xff] %v5440_v23  ;;  %v3781_v19 = vmul.f32 %v5440_v23, %v5440_v23 }
 0x1ec   : > { %v3741_v0 = vadd.f32 %v5441_v43, %v3740_v12  ;;  %v3780_v27 = vmul.f32 %v5441_v43, %v5441_v43  ;;  %3850 = vst [vmem:[%s6907_s12 + $0x10] sm:$0xff] %v5441_v43  ;;  %v5094_v33 = vpop.f32.mrb[4].mxu0 }
 0x1ed   : > { %v5442_v1 = vadd.f32 %v5094_v33, %v4694_v39  ;;  %v3473_v32 = vpop.f32.mrb[5].mxu0 }
 0x1ee   : > { %v3811_v58 = vadd.f32 %v3810_v22, %v3780_v27  ;;  %v5443_v38 = vadd.f32 %v3473_v32, %v1627_v60  ;;  %v3742_v42 = vadd.f32 %v5440_v23, %v3741_v0 }
 0x1ef   : > { %3853 = vst [vmem:[%s6907_s12 + $0x28] sm:$0xff] %v5442_v1  ;;  %v3783_v56 = vmul.f32 %v5442_v1, %v5442_v1 }
 0x1f0   : > { %v3743_v44 = vadd.f32 %v5443_v38, %v3742_v42  ;;  %v3782_v3 = vmul.f32 %v5443_v38, %v5443_v38  ;;  %v3812_v20 = vadd.f32 %v3811_v58, %v3781_v19  ;;  %3852 = vst [vmem:[%s6907_s12 + $0x20] sm:$0xff] %v5443_v38  ;;  %v5097_v26 = vpop.f32.mrb[6].mxu0 }
 0x1f1   : > { %v5444_v15 = vadd.f32 %v5097_v26, %v4697_v62  ;;  %v3483_v63 = vpop.f32.mrb[7].mxu0 }
 0x1f2   : > { %v3813_v46 = vadd.f32 %v3812_v20, %v3782_v3  ;;  %v5445_v35 = vadd.f32 %v3483_v63, %v1637_v45  ;;  %v3744_v37 = vadd.f32 %v5442_v1, %v3743_v44 }
 0x1f3   : > { %3855 = vst [vmem:[%s6907_s12 + $0x38] sm:$0xff] %v5444_v15  ;;  %v3785_v28 = vmul.f32 %v5444_v15, %v5444_v15 }
 0x1f4   : > { %v3745_v17 = vadd.f32 %v5445_v35, %v3744_v37  ;;  %v3784_v9 = vmul.f32 %v5445_v35, %v5445_v35  ;;  %v3814_v41 = vadd.f32 %v3813_v46, %v3783_v56  ;;  %3854 = vst [vmem:[%s6907_s12 + $0x30] sm:$0xff] %v5445_v35  ;;  %v5100_v13 = vpop.f32.mrb[8].mxu0 }
 0x1f5   : > { %v5446_v5 = vadd.f32 %v5100_v13, %v4700_v7  ;;  %v3493_v11 = vpop.f32.mrb[9].mxu0 }
 0x1f6   : > { %v3815_v34 = vadd.f32 %v3814_v41, %v3784_v9  ;;  %v5447_v36 = vadd.f32 %v3493_v11, %v1647_v8  ;;  %v3746_v61 = vadd.f32 %v5444_v15, %v3745_v17 }
 0x1f7   : > { %3857 = vst [vmem:[%s6907_s12 + $0x48] sm:$0xff] %v5446_v5  ;;  %v3787_v10 = vmul.f32 %v5446_v5, %v5446_v5 }
 0x1f8   : > { %v3747_v53 = vadd.f32 %v5447_v36, %v3746_v61  ;;  %v3786_v16 = vmul.f32 %v5447_v36, %v5447_v36  ;;  %v3816_v30 = vadd.f32 %v3815_v34, %v3785_v28  ;;  %3856 = vst [vmem:[%s6907_s12 + $0x40] sm:$0xff] %v5447_v36  ;;  %v5103_v24 = vpop.f32.mrb[10].mxu0 }
 0x1f9   : > { %v5448_v57 = vadd.f32 %v5103_v24, %v4703_v52  ;;  %v3503_v2 = vpop.f32.mrb[11].mxu0 }
 0x1fa   : > { %v3817_v6 = vadd.f32 %v3816_v30, %v3786_v16  ;;  %v5449_v50 = vadd.f32 %v3503_v2, %v6892_v21  ;;  %v3748_v40 = vadd.f32 %v5446_v5, %v3747_v53 }
 0x1fb   : > { %3859 = vst [vmem:[%s6907_s12 + $0x58] sm:$0xff] %v5448_v57  ;;  %v3789_v8 = vmul.f32 %v5448_v57, %v5448_v57 }
 0x1fc   : > { %v3749_v54 = vadd.f32 %v5449_v50, %v3748_v40  ;;  %v3788_v39 = vmul.f32 %v5449_v50, %v5449_v50  ;;  %v3818_v60 = vadd.f32 %v3817_v6, %v3787_v10  ;;  %3858 = vst [vmem:[%s6907_s12 + $0x50] sm:$0xff] %v5449_v50  ;;  %v5106_v62 = vpop.f32.mrb[12].mxu0 }
 0x1fd   : > { %v5450_v45 = vadd.f32 %v5106_v62, %v6894_v49  ;;  %v3513_v7 = vpop.f32.mrb[13].mxu0 }
 0x1fe   : > { %v3819_v52 = vadd.f32 %v3818_v60, %v3788_v39  ;;  %v5451_v48 = vadd.f32 %v3513_v7, %v6896_v55  ;;  %v3750_v29 = vadd.f32 %v5448_v57, %v3749_v54 }
 0x1ff   : > { %3861 = vst [vmem:[%s6907_s12 + $0x68] sm:$0xff] %v5450_v45  ;;  %v3791_v51 = vmul.f32 %v5450_v45, %v5450_v45 }
 0x200   : > { %v3751_v4 = vadd.f32 %v5451_v48, %v3750_v29  ;;  %v3790_v21 = vmul.f32 %v5451_v48, %v5451_v48  ;;  %v3820_v59 = vadd.f32 %v3819_v52, %v3789_v8  ;;  %3860 = vst [vmem:[%s6907_s12 + $0x60] sm:$0xff] %v5451_v48  ;;  %v5109_v47 = vpop.f32.mrb[14].mxu0 }
 0x201   : > { %v5452_v12 = vadd.f32 %v5109_v47, %v6898_v31  ;;  %v3523_v25 = vpop.f32.mrb[15].mxu0 }
 0x202   : > { %v3821_v23 = vadd.f32 %v3820_v59, %v3790_v21  ;;  %v5453_v49 = vadd.f32 %v3523_v25, %v6900_v18  ;;  %v3752_v14 = vadd.f32 %v5450_v45, %v3751_v4 }
 0x203   : > { %3863 = vst [vmem:[%s6907_s12 + $0x78] sm:$0xff] %v5452_v12  ;;  %v4792_v22 = vpop.f32.mrb[16].mxu1  ;;  %v3793_v19 = vmul.f32 %v5452_v12, %v5452_v12 }
 0x204   : > { %v3753_v55 = vadd.f32 %v5453_v49, %v3752_v14  ;;  %v3792_v43 = vmul.f32 %v5453_v49, %v5453_v49  ;;  %v3822_v0 = vadd.f32 %v3821_v23, %v3791_v51  ;;  %3862 = vst [vmem:[%s6907_s12 + $0x70] sm:$0xff] %v5453_v49  ;;  %v5112_v27 = vpop.f32.mrb[16].mxu0  ;;  %v2056_v33 = vpop.f32.mrb[17].mxu1 }
 0x205   : > { %v5454_v1 = vadd.f32 %v5112_v27, %v4792_v22  ;;  %v3533_v32 = vpop.f32.mrb[17].mxu0 }
 0x206   : > { %v3823_v31 = vadd.f32 %v3822_v0, %v3792_v43  ;;  %v5455_v58 = vadd.f32 %v3533_v32, %v2056_v33  ;;  %v3754_v38 = vadd.f32 %v5452_v12, %v3753_v55 }
 0x207   : > { %3865 = vst [vmem:[%s6907_s12 + $0x88] sm:$0xff] %v5454_v1  ;;  %v4795_v18 = vpop.f32.mrb[18].mxu1  ;;  %v3795_v56 = vmul.f32 %v5454_v1, %v5454_v1 }
 0x208   : > { %v3755_v42 = vadd.f32 %v5455_v58, %v3754_v38  ;;  %v3794_v44 = vmul.f32 %v5455_v58, %v5455_v58  ;;  %v3824_v3 = vadd.f32 %v3823_v31, %v3793_v19  ;;  %3864 = vst [vmem:[%s6907_s12 + $0x80] sm:$0xff] %v5455_v58  ;;  %v5115_v20 = vpop.f32.mrb[18].mxu0  ;;  %v2066_v26 = vpop.f32.mrb[19].mxu1 }
 0x209   : > { %v5456_v15 = vadd.f32 %v5115_v20, %v4795_v18  ;;  %v3543_v63 = vpop.f32.mrb[19].mxu0 }
 0x20a   : > { %v3825_v46 = vadd.f32 %v3824_v3, %v3794_v44  ;;  %v5457_v35 = vadd.f32 %v3543_v63, %v2066_v26  ;;  %v3756_v37 = vadd.f32 %v5454_v1, %v3755_v42 }
 0x20b   : > { %3867 = vst [vmem:[%s6907_s12 + $0x98] sm:$0xff] %v5456_v15  ;;  %v4798_v17 = vpop.f32.mrb[20].mxu1  ;;  %v3797_v36 = vmul.f32 %v5456_v15, %v5456_v15 }
 0x20c   : > { %v3757_v9 = vadd.f32 %v5457_v35, %v3756_v37  ;;  %v3796_v41 = vmul.f32 %v5457_v35, %v5457_v35  ;;  %v3826_v13 = vadd.f32 %v3825_v46, %v3795_v56  ;;  %3866 = vst [vmem:[%s6907_s12 + $0x90] sm:$0xff] %v5457_v35  ;;  %v5118_v5 = vpop.f32.mrb[20].mxu0  ;;  %v2076_v11 = vpop.f32.mrb[21].mxu1 }
 0x20d   : > { %v5458_v28 = vadd.f32 %v5118_v5, %v4798_v17  ;;  %v3553_v34 = vpop.f32.mrb[21].mxu0 }
 0x20e   : > { %v3827_v61 = vadd.f32 %v3826_v13, %v3796_v41  ;;  %v5459_v53 = vadd.f32 %v3553_v34, %v2076_v11  ;;  %v3758_v16 = vadd.f32 %v5456_v15, %v3757_v9 }
 0x20f   : > { %3869 = vst [vmem:[%s6907_s12 + $0xa8] sm:$0xff] %v5458_v28  ;;  %v4801_v30 = vpop.f32.mrb[22].mxu1  ;;  %v3799_v54 = vmul.f32 %v5458_v28, %v5458_v28 }
 0x210   : > { %v3759_v24 = vadd.f32 %v5459_v53, %v3758_v16  ;;  %v3798_v57 = vmul.f32 %v5459_v53, %v5459_v53  ;;  %v3828_v2 = vadd.f32 %v3827_v61, %v3797_v36  ;;  %3868 = vst [vmem:[%s6907_s12 + $0xa0] sm:$0xff] %v5459_v53  ;;  %v5121_v10 = vpop.f32.mrb[22].mxu0  ;;  %v2086_v6 = vpop.f32.mrb[23].mxu1 }
 0x211   : > { %v5460_v50 = vadd.f32 %v5121_v10, %v4801_v30  ;;  %v3563_v40 = vpop.f32.mrb[23].mxu0 }
 0x212   : > { %v3829_v39 = vadd.f32 %v3828_v2, %v3798_v57  ;;  %v5461_v60 = vadd.f32 %v3563_v40, %v2086_v6  ;;  %v3760_v62 = vadd.f32 %v5458_v28, %v3759_v24 }
 0x213   : > { %3871 = vst [vmem:[%s6907_s12 + $0xb8] sm:$0xff] %v5460_v50  ;;  %v4804_v45 = vpop.f32.mrb[24].mxu1  ;;  %v3801_v59 = vmul.f32 %v5460_v50, %v5460_v50 }
 0x214   : > { %v3761_v7 = vadd.f32 %v5461_v60, %v3760_v62  ;;  %v3800_v8 = vmul.f32 %v5461_v60, %v5461_v60  ;;  %v3830_v52 = vadd.f32 %v3829_v39, %v3799_v54  ;;  %3870 = vst [vmem:[%s6907_s12 + $0xb0] sm:$0xff] %v5461_v60  ;;  %v5124_v48 = vpop.f32.mrb[24].mxu0  ;;  %v2096_v29 = vpop.f32.mrb[25].mxu1 }
 0x215   : > { %v5462_v4 = vadd.f32 %v5124_v48, %v4804_v45  ;;  %v3573_v21 = vpop.f32.mrb[25].mxu0 }
 0x216   : > { %v3831_v47 = vadd.f32 %v3830_v52, %v3800_v8  ;;  %v5463_v12 = vadd.f32 %v3573_v21, %v2096_v29  ;;  %v3762_v25 = vadd.f32 %v5460_v50, %v3761_v7 }
 0x217   : > { %3873 = vst [vmem:[%s6907_s12 + $0xc8] sm:$0xff] %v5462_v4  ;;  %v4807_v51 = vpop.f32.mrb[26].mxu1  ;;  %v3803_v27 = vmul.f32 %v5462_v4, %v5462_v4 }
 0x218   : > { %v3763_v23 = vadd.f32 %v5463_v12, %v3762_v25  ;;  %v3802_v49 = vmul.f32 %v5463_v12, %v5463_v12  ;;  %v3832_v14 = vadd.f32 %v3831_v47, %v3801_v59  ;;  %3872 = vst [vmem:[%s6907_s12 + $0xc0] sm:$0xff] %v5463_v12  ;;  %v5127_v22 = vpop.f32.mrb[26].mxu0  ;;  %v2106_v55 = vpop.f32.mrb[27].mxu1 }
 0x219   : > { %v5464_v43 = vadd.f32 %v5127_v22, %v4807_v51  ;;  %v3583_v0 = vpop.f32.mrb[27].mxu0 }
 0x21a   : > { %v3833_v33 = vadd.f32 %v3832_v14, %v3802_v49  ;;  %v5465_v1 = vadd.f32 %v3583_v0, %v2106_v55  ;;  %v3764_v32 = vadd.f32 %v5462_v4, %v3763_v23 }
 0x21b   : > { %3875 = vst [vmem:[%s6907_s12 + $0xd8] sm:$0xff] %v5464_v43  ;;  %v4810_v19 = vpop.f32.mrb[28].mxu1  ;;  %v3805_v20 = vmul.f32 %v5464_v43, %v5464_v43 }
 0x21c   : > { %v3765_v31 = vadd.f32 %v5465_v1, %v3764_v32  ;;  %v3804_v58 = vmul.f32 %v5465_v1, %v5465_v1  ;;  %v3834_v38 = vadd.f32 %v3833_v33, %v3803_v27  ;;  %3874 = vst [vmem:[%s6907_s12 + $0xd0] sm:$0xff] %v5465_v1  ;;  %v5130_v18 = vpop.f32.mrb[28].mxu0  ;;  %v2116_v42 = vpop.f32.mrb[29].mxu1 }
 0x21d   : > { %v5466_v44 = vadd.f32 %v5130_v18, %v4810_v19  ;;  %v3593_v3 = vpop.f32.mrb[29].mxu0 }
 0x21e   : > { %v3835_v26 = vadd.f32 %v3834_v38, %v3804_v58  ;;  %v5467_v15 = vadd.f32 %v3593_v3, %v2116_v42  ;;  %v3766_v63 = vadd.f32 %v5464_v43, %v3765_v31 }
 0x21f   : > { %3877 = vst [vmem:[%s6907_s12 + $0xe8] sm:$0xff] %v5466_v44  ;;  %v4813_v56 = vpop.f32.mrb[30].mxu1  ;;  %v3807_v5 = vmul.f32 %v5466_v44, %v5466_v44 }
 0x220   : > { %v3767_v46 = vadd.f32 %v5467_v15, %v3766_v63  ;;  %v3806_v35 = vmul.f32 %v5467_v15, %v5467_v15  ;;  %v3836_v37 = vadd.f32 %v3835_v26, %v3805_v20  ;;  %3876 = vst [vmem:[%s6907_s12 + $0xe0] sm:$0xff] %v5467_v15  ;;  %v5133_v17 = vpop.f32.mrb[30].mxu0  ;;  %v2126_v9 = vpop.f32.mrb[31].mxu1 }
 0x221   : > { %v5468_v41 = vadd.f32 %v5133_v17, %v4813_v56  ;;  %v3603_v13 = vpop.f32.mrb[31].mxu0 }
 0x222   : > { %v3837_v11 = vadd.f32 %v3836_v37, %v3806_v35  ;;  %v5469_v28 = vadd.f32 %v3603_v13, %v2126_v9  ;;  %v3768_v34 = vadd.f32 %v5466_v44, %v3767_v46 }
 0x223   : > { %3879 = vst [vmem:[%s6907_s12 + $0xf8] sm:$0xff] %v5468_v41  ;;  %v3809_v16 = vmul.f32 %v5468_v41, %v5468_v41 }
 0x224   : > { %v3769_v36 = vadd.f32 %v5469_v28, %v3768_v34  ;;  %v3808_v61 = vmul.f32 %v5469_v28, %v5469_v28  ;;  %v3838_v53 = vadd.f32 %v3837_v11, %v3807_v5  ;;  %3878 = vst [vmem:[%s6907_s12 + $0xf0] sm:$0xff] %v5469_v28 }
 0x226   : > { %v3770_v30 = vadd.f32 %v5468_v41, %v3769_v36  ;;  %v3839_v24 = vadd.f32 %v3838_v53, %v3808_v61 }
 0x228   : > { %v3771_v57 = vrot.slane %v3770_v30, 4  ;;  %v3840_v2 = vadd.f32 %v3839_v24, %v3809_v16 }
 0x22a   : > { %v3772_v10 = vadd.f32 %v3771_v57, %v3770_v30  ;;  %v3841_v6 = vrot.slane %v3840_v2, 4 }
 0x22c   : > { %v3773_v50 = vrot.slane %v3772_v10, 2  ;;  %v3842_v40 = vadd.f32 %v3841_v6, %v3840_v2 }
 0x22e   : > { %v3774_v54 = vadd.f32 %v3773_v50, %v3772_v10  ;;  %v3843_v39 = vrot.slane %v3842_v40, 2 }
 0x230   : > { %v3775_v60 = vrot.slane %v3774_v54, 1  ;;  %v3844_v62 = vadd.f32 %v3843_v39, %v3842_v40 }
 0x232   : > { %v3776_v45 = vadd.f32 %v3775_v60, %v3774_v54  ;;  %v3845_v7 = vrot.slane %v3844_v62, 1 }
 0x234   : > { %3777 = vst [vmem:[%s235_s15] sm:$0x1] %v3776_v45  ;;  %v3846_v8 = vadd.f32 %v3845_v7, %v3844_v62 }
 0x236   : > { %3847 = vst [vmem:[%s235_s15 + $0x1] sm:$0x1] %v3846_v8 }
 0x237 PF: > { %s16_s18 = sadd.s32 1, %s5713_s18  }
 0x238   : > { %p13_p4 = scmp.ge.s32.totalorder %s16_s18, 4  }
 0x23a   :  { %15 = sbr.rel (!%p13_p4) target bundleno = 1 (0x1), region = 81 }

</bundles_post_ra>
